<compile_context>
chip_gen: v6e
topology: v6e:2x2x1
jax: 0.10.0
libtpu: 0.0.40
codegen_flags: <defaults>
</compile_context>

<pallas_src>
import math

import jax
import jax.numpy as jnp
from jax import lax
from jax.experimental import pallas as pl
from jax.experimental.pallas import tpu as pltpu


class Param:
    voc_size = 20
    room_emb_size = 32
    nhead = 4
    max_sent_len = 16


E = Param.room_emb_size          # embedding dim
H = Param.nhead                  # attention heads
DH = E // H                      # head dim
FF = 32                          # dim_feedforward
NLAYERS = 3                      # num_layers of TransformerEncoder
LN_EPS = 1e-5

LANE = 128                       # lane width
SUB = 8                          # f32 sublane tile
TARGET_ROWS = 128                # target matmul M per grid step (vreg-friendly)
NSMALL = 10                      # packed small-vector rows per layer
WMAX = max(E, FF)                # packed small-vector width


def _round_up(x, m):
    return ((x + m - 1) // m) * m


# ---------------------------------------------------------------------------
# In-kernel helpers
# ---------------------------------------------------------------------------
def _layernorm(x, w, b):
    mu = jnp.mean(x, axis=-1, keepdims=True)
    xc = x - mu
    var = jnp.mean(xc * xc, axis=-1, keepdims=True)
    return xc * lax.rsqrt(var + LN_EPS) * w + b


# ---------------------------------------------------------------------------
# Pallas kernel: message encoder + room scoring for BT batch elements
# ---------------------------------------------------------------------------
def elu_b_kernel(x_ref,                           # (BT, L, E)
                 env_ref,                         # (BT, NIN, E)
                 obj_ref,                         # (BT, 1, 1) int32
                 w_qkv_ref,                       # (NL, 3, E, E) pre-T, q scaled
                 w_out_ref,                       # (NL, E, E)    pre-T
                 w1_ref,                          # (NL, E, FF)   pre-T
                 w2_ref,                          # (NL, FF, E)   pre-T
                 small_ref,                       # (NL, NSMALL, WMAX)
                 e2iw_ref,                        # (E, E)        pre-T
                 e2ib_ref,                        # (1, E)
                 hmask_ref,                       # (HL, E)  block-diag head mask
                 seg_ref,                         # (HL, HL) same-head ones
                 scores_ref):                     # (BT, 1, OUT_W)
    BT, L, _ = x_ref.shape
    M = BT * L
    HL = H * L

    xf = x_ref[...].reshape(M, E)                 # fold batch into matmul rows
    head_mask = hmask_ref[...]                    # (HL, E)
    seg_ones = seg_ref[...]                       # (HL, HL)

    # TODO(synk): dropout layers (PositionalEncoding / encoder layers) use
    # eval-mode (identity) semantics.
    for layer in range(NLAYERS):
        wqkv = w_qkv_ref[layer]                   # (3, E, E)
        sm = small_ref[layer]                     # (NSMALL, WMAX)
        bq, bk, bv = sm[0:1, :E], sm[1:2, :E], sm[2:3, :E]
        b_out, b1, b2 = sm[3:4, :E], sm[4:5, :FF], sm[5:6, :E]
        n1w, n1b = sm[6:7, :E], sm[7:8, :E]
        n2w, n2b = sm[8:9, :E], sm[9:10, :E]

        # Q/K/V projections (1/sqrt(DH) already folded into W_q / b_q).
        q = jnp.dot(xf, wqkv[0], preferred_element_type=jnp.float32) + bq
        k = jnp.dot(xf, wqkv[1], preferred_element_type=jnp.float32) + bk
        v = jnp.dot(xf, wqkv[2], preferred_element_type=jnp.float32) + bv
        q3 = q.reshape(BT, L, E)
        k3 = k.reshape(BT, L, E)
        v3 = v.reshape(BT, L, E)

        # Block-diagonal head packing: rows indexed by (head, key_pos).
        # k_blk[b, h*L+j, c] = k[b, j, c] if channel c belongs to head h else 0
        k_blk = jnp.concatenate([k3] * H, axis=1) * head_mask     # (BT, HL, E)
        v_blk = jnp.concatenate([v3] * H, axis=1) * head_mask     # (BT, HL, E)

        # scores[b, i, h*L+j] = <q_h(b,i), k_h(b,j)>  (cross-head terms are 0)
        s = lax.dot_general(q3, k_blk, (((2,), (2,)), ((0,), (0,))),
                            preferred_element_type=jnp.float32)   # (BT, L, HL)
        # Global row max as stability shift: constant within every head group,
        # so the per-head softmax result is mathematically unchanged.
        s = s - jnp.max(s, axis=-1, keepdims=True)
        p = jnp.exp(s).reshape(M, HL)
        # Per-head denominators broadcast back onto every lane of its group.
        denom = jnp.dot(p, seg_ones, preferred_element_type=jnp.float32)
        p = (p / denom).reshape(BT, L, HL)                        # exact division

        # p @ V_blk: lanes of the result are already in concatenated-head
        # order, so the output projection is one dense (M,E)x(E,E) matmul.
        o3 = lax.dot_general(p, v_blk, (((2,), (1,)), ((0,), (0,))),
                             preferred_element_type=jnp.float32)  # (BT, L, E)
        attn = jnp.dot(o3.reshape(M, E), w_out_ref[layer],
                       preferred_element_type=jnp.float32) + b_out
        x1 = _layernorm(xf + attn, n1w, n1b)

        ff = jnp.dot(x1, w1_ref[layer], preferred_element_type=jnp.float32) + b1
        ff = jnp.maximum(ff, 0.0)
        ff = jnp.dot(ff, w2_ref[layer], preferred_element_type=jnp.float32) + b2
        xf = _layernorm(x1 + ff, n2w, n2b)

    # emb2idx then sequence mean.  (Mean-first would save ~L x rows on this
    # matmul but needs a 3Dx2D dot / rank-changing reshape with shakier Mosaic
    # lowering; at these shapes the saving is ~50K MACs, i.e. noise.)
    hx = jnp.dot(xf, e2iw_ref[...],
                 preferred_element_type=jnp.float32) + e2ib_ref[...]   # (M, E)
    hx3 = jnp.mean(hx.reshape(BT, L, E), axis=1, keepdims=True)        # (BT,1,E)

    # per-room logits against the narrow (8-multiple padded) env block
    env = env_ref[...]                                                 # (BT,NIN,E)
    logits = lax.dot_general(hx3, env, (((2,), (2,)), ((0,), (0,))),
                             preferred_element_type=jnp.float32)       # (BT,1,NIN)

    # obj_nums masking: res[i, obj_num:] = -inf (also kills room padding)
    nin = logits.shape[-1]
    col = lax.broadcasted_iota(jnp.int32, (BT, 1, nin), 2)
    logits = jnp.where(col < obj_ref[...], logits, jnp.float32(-jnp.inf))

    # softmax(dim=1); approx reciprocal only for the final probabilities
    m = jnp.max(logits, axis=-1, keepdims=True)
    e = jnp.exp(logits - m)
    probs = e * pl.reciprocal(jnp.sum(e, axis=-1, keepdims=True), approx=True)

    # pad in-register up to the lane-dense output width before the store
    pad_w = scores_ref.shape[-1] - nin
    if pad_w:
        probs = jnp.concatenate(
            [probs, jnp.zeros((BT, 1, pad_w), jnp.float32)], axis=-1)
    scores_ref[...] = probs


# ---------------------------------------------------------------------------
# Constant-parameter preparation (transpose / scale-fold / pack) — call ONCE
# ---------------------------------------------------------------------------
def prepare_kernel_params(params):
    scale = 1.0 / math.sqrt(DH)
    in_w = params["in_proj_w"]                                 # (NL, 3E, E)
    in_b = params["in_proj_b"]                                 # (NL, 1, 3E)
    wq_t = jnp.transpose(in_w[:, :E, :], (0, 2, 1)) * scale    # fold 1/sqrt(DH)
    wk_t = jnp.transpose(in_w[:, E:2 * E, :], (0, 2, 1))
    wv_t = jnp.transpose(in_w[:, 2 * E:, :], (0, 2, 1))
    w_qkv_t = jnp.stack([wq_t, wk_t, wv_t], axis=1)            # (NL, 3, E, E)

    def row(v):  # (NL, 1, w) -> (NL, 1, WMAX)
        return jnp.pad(v, ((0, 0), (0, 0), (0, WMAX - v.shape[-1])))

    small = jnp.concatenate(
        [row(in_b[:, :, :E] * scale),           # b_q (scaled)
         row(in_b[:, :, E:2 * E]),              # b_k
         row(in_b[:, :, 2 * E:]),               # b_v
         row(params["out_proj_b"]),
         row(params["lin1_b"]), row(params["lin2_b"]),
         row(params["norm1_w"]), row(params["norm1_b"]),
         row(params["norm2_w"]), row(params["norm2_b"])],
        axis=1)                                                # (NL, NSMALL, WMAX)

    return dict(w_qkv_t=w_qkv_t,
                w_out_t=jnp.transpose(params["out_proj_w"], (0, 2, 1)),
                w1_t=jnp.transpose(params["lin1_w"], (0, 2, 1)),
                w2_t=jnp.transpose(params["lin2_w"], (0, 2, 1)),
                small=small,
                e2iw_t=params["emb2idx_w"].T,
                e2ib=params["emb2idx_b"])


# ---------------------------------------------------------------------------
# Wrapper
# ---------------------------------------------------------------------------
def elu_b_scores(params, message, env_emb, obj_nums=None, kernel_params=None):
    B, L = message.shape
    _, N, _ = env_emb.shape
    HL = H * L

    # glue: vocab embedding gather + positional encoding add (eval dropout)
    emb = params["voc_embedding"][message]                    # (B, L, E)
    x = emb + params["pos_enc"][:L][None]                     # (B, L, E)

    if obj_nums is None:
        obj_arr = jnp.full((B,), N, dtype=jnp.int32)
    else:
        obj_arr = obj_nums.astype(jnp.int32)

    kp = (kernel_params if kernel_params is not None
          else prepare_kernel_params(params))

    # Batch tiling: ~TARGET_ROWS matmul rows per grid step, and >=2 grid steps
    # when the padded batch allows it (v7x has 2 TensorCores; batch axis is
    # "parallel").
    bt = min(max(SUB, _round_up(pl.cdiv(TARGET_ROWS, L), SUB)),
             _round_up(B, SUB))
    b_pad = _round_up(B, bt)
    if b_pad // bt < 2 and b_pad >= 2 * SUB:
        bt = max(SUB, _round_up(b_pad // 2, SUB))
        b_pad = _round_up(b_pad, bt)

    # room axis: narrow 8-multiple padding for the env input DMA; dense
    # 128-lane padding only on the output.
    n_in = max(SUB, _round_up(N, SUB))
    out_w = max(LANE, _round_up(N, LANE))

    x = jnp.pad(x, ((0, b_pad - B), (0, 0), (0, 0)))
    env = jnp.pad(env_emb, ((0, b_pad - B), (0, n_in - N), (0, 0)))
    obj = jnp.pad(obj_arr.reshape(B, 1, 1),
                  ((0, b_pad - B), (0, 0), (0, 0)), constant_values=1)

    # constant block-diagonal head masks (depend only on L)
    head_of_row = jnp.arange(HL, dtype=jnp.int32) // L         # (HL,)
    head_of_col = jnp.arange(E, dtype=jnp.int32) // DH         # (E,)
    head_mask = (head_of_row[:, None]
                 == head_of_col[None, :]).astype(jnp.float32)  # (HL, E)
    seg_ones = (head_of_row[:, None]
                == head_of_row[None, :]).astype(jnp.float32)   # (HL, HL)

    in_specs = [
        pl.BlockSpec((bt, L, E), lambda i: (i, 0, 0)),               # x
        pl.BlockSpec((bt, n_in, E), lambda i: (i, 0, 0)),            # env_emb
        pl.BlockSpec((bt, 1, 1), lambda i: (i, 0, 0)),               # obj_nums
        pl.BlockSpec((NLAYERS, 3, E, E), lambda i: (0, 0, 0, 0)),    # Wq/Wk/Wv^T
        pl.BlockSpec((NLAYERS, E, E), lambda i: (0, 0, 0)),          # out_proj W^T
        pl.BlockSpec((NLAYERS, E, FF), lambda i: (0, 0, 0)),         # lin1 W^T
        pl.BlockSpec((NLAYERS, FF, E), lambda i: (0, 0, 0)),         # lin2 W^T
        pl.BlockSpec((NLAYERS, NSMALL, WMAX), lambda i: (0, 0, 0)),  # biases/LN
        pl.BlockSpec((E, E), lambda i: (0, 0)),                      # emb2idx W^T
        pl.BlockSpec((1, E), lambda i: (0, 0)),                      # emb2idx b
        pl.BlockSpec((HL, E), lambda i: (0, 0)),                     # head mask
        pl.BlockSpec((HL, HL), lambda i: (0, 0)),                    # seg ones
    ]

    out = pl.pallas_call(
        elu_b_kernel,
        out_shape=jax.ShapeDtypeStruct((b_pad, 1, out_w), jnp.float32),
        grid_spec=pltpu.PrefetchScalarGridSpec(
            num_scalar_prefetch=0,
            grid=(b_pad // bt,),
            in_specs=in_specs,
            out_specs=pl.BlockSpec((bt, 1, out_w), lambda i: (i, 0, 0)),
        ),
        compiler_params=pltpu.CompilerParams(
            dimension_semantics=("parallel",)),
    )(x, env, obj,
      kp["w_qkv_t"], kp["w_out_t"], kp["w1_t"], kp["w2_t"],
      kp["small"], kp["e2iw_t"], kp["e2ib"], head_mask, seg_ones)
    return out[:B, 0, :N]                                     # (B, N)


def elu_b_forward(params, env_emb, message, choose_room_method="sample",
                  obj_nums=None, key=None, kernel_params=None):
    scores = elu_b_scores(params, message, env_emb, obj_nums, kernel_params)
    room_prob = []
    if choose_room_method == "greedy":
        room_idx = jnp.argmax(scores, axis=1)
    else:
        # TODO(synk): torch.distributions.Categorical sampling has no Pallas
        # equivalent; done in plain JAX.
        logp = jnp.log(scores)
        room_idx = jax.random.categorical(key, logp, axis=1)
        room_prob.append(jnp.take_along_axis(logp, room_idx[:, None], axis=1)[:, 0])
    return room_idx, room_prob, scores


# ---------------------------------------------------------------------------
# Deterministic parameter init + positional encoding
# ---------------------------------------------------------------------------
def make_pos_enc(max_len, dim):
    positions = jnp.arange(max_len, dtype=jnp.float32)[:, None]
    div_term = jnp.exp(jnp.arange(0, dim, 2, dtype=jnp.float32)
                       * (-math.log(10000.0) / dim))
    pe = jnp.zeros((max_len, dim), jnp.float32)
    pe = pe.at[:, 0::2].set(jnp.sin(positions * div_term))
    pe = pe.at[:, 1::2].set(jnp.cos(positions * div_term))
    return pe


def init_params(key):
    ks = jax.random.split(key, 12)

    def u(k, shape, fan_in):
        bound = 1.0 / math.sqrt(fan_in)
        return jax.random.uniform(k, shape, jnp.float32, -bound, bound)

    return {
        "voc_embedding": jax.random.normal(
            ks[0], (Param.voc_size + 2, E), jnp.float32),
        "in_proj_w": u(ks[1], (NLAYERS, 3 * E, E), E),
        "in_proj_b": u(ks[2], (NLAYERS, 1, 3 * E), E),
        "out_proj_w": u(ks[3], (NLAYERS, E, E), E),
        "out_proj_b": u(ks[4], (NLAYERS, 1, E), E),
        "lin1_w": u(ks[5], (NLAYERS, FF, E), E),
        "lin1_b": u(ks[6], (NLAYERS, 1, FF), E),
        "lin2_w": u(ks[7], (NLAYERS, E, FF), FF),
        "lin2_b": u(ks[8], (NLAYERS, 1, E), FF),
        "norm1_w": jnp.ones((NLAYERS, 1, E), jnp.float32),
        "norm1_b": jnp.zeros((NLAYERS, 1, E), jnp.float32),
        "norm2_w": jnp.ones((NLAYERS, 1, E), jnp.float32),
        "norm2_b": jnp.zeros((NLAYERS, 1, E), jnp.float32),
        "emb2idx_w": u(ks[9], (E, E), E),
        "emb2idx_b": u(ks[10], (1, E), E),
        "pos_enc": make_pos_enc(Param.max_sent_len, E),
    }


# ---------------------------------------------------------------------------
# Pure-JAX reference (exact math, no scale folding) for validation
# ---------------------------------------------------------------------------
def _ref_linear(x, w, b):
    return x @ w.T + b


def _ref_ln(x, w, b):
    mu = jnp.mean(x, -1, keepdims=True)
    xc = x - mu
    var = jnp.mean(xc * xc, -1, keepdims=True)
    return xc / jnp.sqrt(var + LN_EPS) * w + b


def reference_scores(params, message, env_emb, obj_arr):
    emb = params["voc_embedding"][message]
    x_all = emb + params["pos_enc"][: message.shape[1]][None]
    outs = []
    for bi in range(message.shape[0]):
        x = x_all[bi]
        for l in range(NLAYERS):
            qkv = _ref_linear(x, params["in_proj_w"][l], params["in_proj_b"][l])
            q, k, v = qkv[:, :E], qkv[:, E:2 * E], qkv[:, 2 * E:]
            heads = []
            for hd in range(H):
                sl = slice(hd * DH, (hd + 1) * DH)
                s = (q[:, sl] @ k[:, sl].T) / math.sqrt(DH)
                p = jax.nn.softmax(s, axis=-1)
                heads.append(p @ v[:, sl])
            attn = jnp.concatenate(heads, -1)
            attn = _ref_linear(attn, params["out_proj_w"][l], params["out_proj_b"][l])
            x = _ref_ln(x + attn, params["norm1_w"][l], params["norm1_b"][l])
            ff = jnp.maximum(
                _ref_linear(x, params["lin1_w"][l], params["lin1_b"][l]), 0.0)
            ff = _ref_linear(ff, params["lin2_w"][l], params["lin2_b"][l])
            x = _ref_ln(x + ff, params["norm2_w"][l], params["norm2_b"][l])
        hx = jnp.mean(x, axis=0, keepdims=True)
        hx = _ref_linear(hx, params["emb2idx_w"], params["emb2idx_b"])
        logits = (hx @ env_emb[bi].T)[0]
        logits = jnp.where(
            jnp.arange(env_emb.shape[1]) < obj_arr[bi], logits, -jnp.inf)
        outs.append(jax.nn.softmax(logits))
    return jnp.stack(outs)


# ---------------------------------------------------------------------------
if __name__ == "__main__":
    key = jax.random.PRNGKey(0)
    kinit, km, ke, ksamp = jax.random.split(key, 4)
    params = init_params(kinit)
    kparams = prepare_kernel_params(params)   # hoisted out of the per-call path

    B, L, N = 2, 8, 5
    message = jax.random.randint(km, (B, L), 0, Param.voc_size + 2)
    env_emb = jax.random.normal(ke, (B, N, E), jnp.float32)
    obj_nums = jnp.array([5, 3], dtype=jnp.int32)

    room_idx, room_prob, scores = elu_b_forward(
        params, env_emb, message, choose_room_method="sample",
        obj_nums=obj_nums, key=ksamp, kernel_params=kparams)
    jax.block_until_ready((room_idx, room_prob, scores))

    # correctness vs pure-JAX reference
    ref = reference_scores(params, message, env_emb, obj_nums)
    assert jnp.allclose(scores, ref, atol=2e-3), (scores, ref)

    # masked rooms must have exactly zero probability (mirrors the torch assert)
    mask = jnp.arange(N)[None, :] >= obj_nums[:, None]
    assert float(jnp.sum(jnp.where(mask, scores, 0.0))) == 0.0

    # greedy path also exercised
    g_idx, _, _ = elu_b_forward(params, env_emb, message,
                                choose_room_method="greedy",
                                obj_nums=obj_nums, kernel_params=kparams)
    jax.block_until_ready(g_idx)

    print("KERNEL_OK")
</pallas_src>

<mosaic_0001>
module attributes {stable_mosaic.version = 11 : i64} {
  func.func @elu_b_kernel(%arg0: i32, %arg1: memref<8x8x32xf32, #tpu.memory_space<vmem>>, %arg2: memref<8x8x32xf32, #tpu.memory_space<vmem>>, %arg3: memref<8x1x1xi32, #tpu.memory_space<vmem>>, %arg4: memref<3x3x32x32xf32, #tpu.memory_space<vmem>>, %arg5: memref<3x32x32xf32, #tpu.memory_space<vmem>>, %arg6: memref<3x32x32xf32, #tpu.memory_space<vmem>>, %arg7: memref<3x32x32xf32, #tpu.memory_space<vmem>>, %arg8: memref<3x10x32xf32, #tpu.memory_space<vmem>>, %arg9: memref<32x32xf32, #tpu.memory_space<vmem>>, %arg10: memref<1x32xf32, #tpu.memory_space<vmem>>, %arg11: memref<32x32xf32, #tpu.memory_space<vmem>>, %arg12: memref<32x32xf32, #tpu.memory_space<vmem>>, %arg13: memref<8x1x128xf32, #tpu.memory_space<vmem>>) attributes {dimension_semantics = [#tpu.dimension_semantics<parallel>], iteration_bounds = array<i64: 1>, scalar_prefetch = 0 : i64, scratch_operands = 0 : i64, tpu.core_type = #tpu.core_type<tc>, window_params = [{transform_indices = @transform_0, window_bounds = array<i64: 8, 8, 32>}, {transform_indices = @transform_1, window_bounds = array<i64: 8, 8, 32>}, {transform_indices = @transform_2, window_bounds = array<i64: 8, 1, 1>}, {pipeline_mode = #tpu.pipeline_mode<synchronous>, transform_indices = @transform_3, window_bounds = array<i64: 3, 3, 32, 32>}, {pipeline_mode = #tpu.pipeline_mode<synchronous>, transform_indices = @transform_4, window_bounds = array<i64: 3, 32, 32>}, {pipeline_mode = #tpu.pipeline_mode<synchronous>, transform_indices = @transform_5, window_bounds = array<i64: 3, 32, 32>}, {pipeline_mode = #tpu.pipeline_mode<synchronous>, transform_indices = @transform_6, window_bounds = array<i64: 3, 32, 32>}, {pipeline_mode = #tpu.pipeline_mode<synchronous>, transform_indices = @transform_7, window_bounds = array<i64: 3, 10, 32>}, {pipeline_mode = #tpu.pipeline_mode<synchronous>, transform_indices = @transform_8, window_bounds = array<i64: 32, 32>}, {pipeline_mode = #tpu.pipeline_mode<synchronous>, transform_indices = @transform_9, window_bounds = array<i64: 1, 32>}, {pipeline_mode = #tpu.pipeline_mode<synchronous>, transform_indices = @transform_10, window_bounds = array<i64: 32, 32>}, {pipeline_mode = #tpu.pipeline_mode<synchronous>, transform_indices = @transform_11, window_bounds = array<i64: 32, 32>}, {transform_indices = @transform_12, window_bounds = array<i64: 8, 1, 128>}]} {
    %c0 = arith.constant 0 : index
    %c0_0 = arith.constant 0 : index
    %c0_1 = arith.constant 0 : index
    %0 = vector.load %arg1[%c0, %c0_0, %c0_1] : memref<8x8x32xf32, #tpu.memory_space<vmem>>, vector<8x8x32xf32>
    %1 = vector.shape_cast %0 : vector<8x8x32xf32> to vector<64x32xf32>
    %c0_2 = arith.constant 0 : index
    %c0_3 = arith.constant 0 : index
    %2 = vector.load %arg11[%c0_2, %c0_3] : memref<32x32xf32, #tpu.memory_space<vmem>>, vector<32x32xf32>
    %c0_4 = arith.constant 0 : index
    %c0_5 = arith.constant 0 : index
    %3 = vector.load %arg12[%c0_4, %c0_5] : memref<32x32xf32, #tpu.memory_space<vmem>>, vector<32x32xf32>
    %c0_6 = arith.constant 0 : index
    %c0_7 = arith.constant 0 : index
    %c0_8 = arith.constant 0 : index
    %c0_9 = arith.constant 0 : index
    %4 = vector.load %arg4[%c0_6, %c0_7, %c0_8, %c0_9] : memref<3x3x32x32xf32, #tpu.memory_space<vmem>>, vector<1x3x32x32xf32>
    %5 = vector.shape_cast %4 : vector<1x3x32x32xf32> to vector<3x32x32xf32>
    %c0_10 = arith.constant 0 : index
    %c0_11 = arith.constant 0 : index
    %c0_12 = arith.constant 0 : index
    %6 = vector.load %arg8[%c0_10, %c0_11, %c0_12] : memref<3x10x32xf32, #tpu.memory_space<vmem>>, vector<1x10x32xf32>
    %7 = vector.shape_cast %6 : vector<1x10x32xf32> to vector<10x32xf32>
    %8 = vector.extract_strided_slice %7 {offsets = [0, 0], sizes = [1, 32], strides = [1, 1]} : vector<10x32xf32> to vector<1x32xf32>
    %9 = vector.extract_strided_slice %7 {offsets = [1, 0], sizes = [1, 32], strides = [1, 1]} : vector<10x32xf32> to vector<1x32xf32>
    %10 = vector.extract_strided_slice %7 {offsets = [2, 0], sizes = [1, 32], strides = [1, 1]} : vector<10x32xf32> to vector<1x32xf32>
    %11 = vector.extract_strided_slice %7 {offsets = [3, 0], sizes = [1, 32], strides = [1, 1]} : vector<10x32xf32> to vector<1x32xf32>
    %12 = vector.extract_strided_slice %7 {offsets = [4, 0], sizes = [1, 32], strides = [1, 1]} : vector<10x32xf32> to vector<1x32xf32>
    %13 = vector.extract_strided_slice %7 {offsets = [5, 0], sizes = [1, 32], strides = [1, 1]} : vector<10x32xf32> to vector<1x32xf32>
    %14 = vector.extract_strided_slice %7 {offsets = [6, 0], sizes = [1, 32], strides = [1, 1]} : vector<10x32xf32> to vector<1x32xf32>
    %15 = vector.extract_strided_slice %7 {offsets = [7, 0], sizes = [1, 32], strides = [1, 1]} : vector<10x32xf32> to vector<1x32xf32>
    %16 = vector.extract_strided_slice %7 {offsets = [8, 0], sizes = [1, 32], strides = [1, 1]} : vector<10x32xf32> to vector<1x32xf32>
    %17 = vector.extract_strided_slice %7 {offsets = [9, 0], sizes = [1, 32], strides = [1, 1]} : vector<10x32xf32> to vector<1x32xf32>
    %18 = vector.extract_strided_slice %5 {offsets = [0, 0, 0], sizes = [1, 32, 32], strides = [1, 1, 1]} : vector<3x32x32xf32> to vector<1x32x32xf32>
    %19 = vector.shape_cast %18 : vector<1x32x32xf32> to vector<32x32xf32>
    %cst = arith.constant dense<0.000000e+00> : vector<64x32xf32>
    %20 = tpu.matmul %1, %19, %cst {dimension_numbers = #tpu.dot_dimension_numbers<[1], [0], [0], [1], [0, 0, 1, 1], [], []>} : vector<64x32xf32>, vector<32x32xf32>, vector<64x32xf32> -> vector<64x32xf32>
    %21 = vector.broadcast %8 : vector<1x32xf32> to vector<64x32xf32>
    %22 = arith.addf %20, %21 : vector<64x32xf32>
    %23 = vector.extract_strided_slice %5 {offsets = [1, 0, 0], sizes = [1, 32, 32], strides = [1, 1, 1]} : vector<3x32x32xf32> to vector<1x32x32xf32>
    %24 = vector.shape_cast %23 : vector<1x32x32xf32> to vector<32x32xf32>
    %cst_13 = arith.constant dense<0.000000e+00> : vector<64x32xf32>
    %25 = tpu.matmul %1, %24, %cst_13 {dimension_numbers = #tpu.dot_dimension_numbers<[1], [0], [0], [1], [0, 0, 1, 1], [], []>} : vector<64x32xf32>, vector<32x32xf32>, vector<64x32xf32> -> vector<64x32xf32>
    %26 = vector.broadcast %9 : vector<1x32xf32> to vector<64x32xf32>
    %27 = arith.addf %25, %26 : vector<64x32xf32>
    %28 = vector.extract_strided_slice %5 {offsets = [2, 0, 0], sizes = [1, 32, 32], strides = [1, 1, 1]} : vector<3x32x32xf32> to vector<1x32x32xf32>
    %29 = vector.shape_cast %28 : vector<1x32x32xf32> to vector<32x32xf32>
    %cst_14 = arith.constant dense<0.000000e+00> : vector<64x32xf32>
    %30 = tpu.matmul %1, %29, %cst_14 {dimension_numbers = #tpu.dot_dimension_numbers<[1], [0], [0], [1], [0, 0, 1, 1], [], []>} : vector<64x32xf32>, vector<32x32xf32>, vector<64x32xf32> -> vector<64x32xf32>
    %31 = vector.broadcast %10 : vector<1x32xf32> to vector<64x32xf32>
    %32 = arith.addf %30, %31 : vector<64x32xf32>
    %33 = vector.shape_cast %22 : vector<64x32xf32> to vector<8x8x32xf32>
    %34 = vector.shape_cast %27 : vector<64x32xf32> to vector<8x8x32xf32>
    %35 = vector.shape_cast %32 : vector<64x32xf32> to vector<8x8x32xf32>
    %36 = tpu.concatenate %34, %34, %34, %34 in 1 : vector<8x8x32xf32>, vector<8x8x32xf32>, vector<8x8x32xf32>, vector<8x8x32xf32> -> vector<8x32x32xf32>
    %37 = vector.shape_cast %2 : vector<32x32xf32> to vector<1x32x32xf32>
    %38 = vector.broadcast %37 : vector<1x32x32xf32> to vector<8x32x32xf32>
    %39 = arith.mulf %36, %38 : vector<8x32x32xf32>
    %40 = tpu.concatenate %35, %35, %35, %35 in 1 : vector<8x8x32xf32>, vector<8x8x32xf32>, vector<8x8x32xf32>, vector<8x8x32xf32> -> vector<8x32x32xf32>
    %41 = vector.shape_cast %2 : vector<32x32xf32> to vector<1x32x32xf32>
    %42 = vector.broadcast %41 : vector<1x32x32xf32> to vector<8x32x32xf32>
    %43 = arith.mulf %40, %42 : vector<8x32x32xf32>
    %cst_15 = arith.constant dense<0.000000e+00> : vector<8x8x32xf32>
    %44 = tpu.matmul %33, %39, %cst_15 {dimension_numbers = #tpu.dot_dimension_numbers<[2], [2], [1], [1], [0, 0, 0, 1, 1, 1], [0], [0]>} : vector<8x8x32xf32>, vector<8x32x32xf32>, vector<8x8x32xf32> -> vector<8x8x32xf32>
    %cst_16 = arith.constant dense<0xFF800000> : vector<8x8xf32>
    %45 = vector.multi_reduction <maximumf>, %44, %cst_16 [2] : vector<8x8x32xf32> to vector<8x8xf32>
    %46 = vector.shape_cast %45 : vector<8x8xf32> to vector<8x8x1xf32>
    %47 = vector.broadcast %46 : vector<8x8x1xf32> to vector<8x8x32xf32>
    %48 = arith.subf %44, %47 : vector<8x8x32xf32>
    %49 = math.exp %48 : vector<8x8x32xf32>
    %50 = vector.shape_cast %49 : vector<8x8x32xf32> to vector<64x32xf32>
    %cst_17 = arith.constant dense<0.000000e+00> : vector<64x32xf32>
    %51 = tpu.matmul %50, %3, %cst_17 {dimension_numbers = #tpu.dot_dimension_numbers<[1], [0], [0], [1], [0, 0, 1, 1], [], []>} : vector<64x32xf32>, vector<32x32xf32>, vector<64x32xf32> -> vector<64x32xf32>
    %52 = arith.divf %50, %51 : vector<64x32xf32>
    %53 = vector.shape_cast %52 : vector<64x32xf32> to vector<8x8x32xf32>
    %cst_18 = arith.constant dense<0.000000e+00> : vector<8x8x32xf32>
    %54 = tpu.matmul %53, %43, %cst_18 {dimension_numbers = #tpu.dot_dimension_numbers<[2], [1], [1], [2], [0, 0, 0, 1, 1, 2], [0], [0]>} : vector<8x8x32xf32>, vector<8x32x32xf32>, vector<8x8x32xf32> -> vector<8x8x32xf32>
    %55 = vector.shape_cast %54 : vector<8x8x32xf32> to vector<64x32xf32>
    %c0_19 = arith.constant 0 : index
    %c0_20 = arith.constant 0 : index
    %c0_21 = arith.constant 0 : index
    %56 = vector.load %arg5[%c0_19, %c0_20, %c0_21] : memref<3x32x32xf32, #tpu.memory_space<vmem>>, vector<1x32x32xf32>
    %57 = vector.shape_cast %56 : vector<1x32x32xf32> to vector<32x32xf32>
    %cst_22 = arith.constant dense<0.000000e+00> : vector<64x32xf32>
    %58 = tpu.matmul %55, %57, %cst_22 {dimension_numbers = #tpu.dot_dimension_numbers<[1], [0], [0], [1], [0, 0, 1, 1], [], []>} : vector<64x32xf32>, vector<32x32xf32>, vector<64x32xf32> -> vector<64x32xf32>
    %59 = vector.broadcast %11 : vector<1x32xf32> to vector<64x32xf32>
    %60 = arith.addf %58, %59 : vector<64x32xf32>
    %61 = arith.addf %1, %60 : vector<64x32xf32>
    %cst_23 = arith.constant dense<0.000000e+00> : vector<64xf32>
    %62 = vector.multi_reduction <add>, %61, %cst_23 [1] : vector<64x32xf32> to vector<64xf32>
    %63 = vector.shape_cast %62 : vector<64xf32> to vector<64x1xf32>
    %cst_24 = arith.constant 3.200000e+01 : f32
    %64 = vector.broadcast %cst_24 : f32 to vector<64x1xf32>
    %65 = arith.divf %63, %64 : vector<64x1xf32>
    %66 = vector.broadcast %65 : vector<64x1xf32> to vector<64x32xf32>
    %67 = arith.subf %61, %66 : vector<64x32xf32>
    %68 = arith.mulf %67, %67 : vector<64x32xf32>
    %cst_25 = arith.constant dense<0.000000e+00> : vector<64xf32>
    %69 = vector.multi_reduction <add>, %68, %cst_25 [1] : vector<64x32xf32> to vector<64xf32>
    %70 = vector.shape_cast %69 : vector<64xf32> to vector<64x1xf32>
    %cst_26 = arith.constant 3.200000e+01 : f32
    %71 = vector.broadcast %cst_26 : f32 to vector<64x1xf32>
    %72 = arith.divf %70, %71 : vector<64x1xf32>
    %cst_27 = arith.constant 9.99999974E-6 : f32
    %73 = vector.broadcast %cst_27 : f32 to vector<64x1xf32>
    %74 = arith.addf %72, %73 : vector<64x1xf32>
    %75 = math.rsqrt %74 : vector<64x1xf32>
    %76 = vector.broadcast %75 : vector<64x1xf32> to vector<64x32xf32>
    %77 = arith.mulf %67, %76 : vector<64x32xf32>
    %78 = vector.broadcast %14 : vector<1x32xf32> to vector<64x32xf32>
    %79 = arith.mulf %77, %78 : vector<64x32xf32>
    %80 = vector.broadcast %15 : vector<1x32xf32> to vector<64x32xf32>
    %81 = arith.addf %79, %80 : vector<64x32xf32>
    %c0_28 = arith.constant 0 : index
    %c0_29 = arith.constant 0 : index
    %c0_30 = arith.constant 0 : index
    %82 = vector.load %arg6[%c0_28, %c0_29, %c0_30] : memref<3x32x32xf32, #tpu.memory_space<vmem>>, vector<1x32x32xf32>
    %83 = vector.shape_cast %82 : vector<1x32x32xf32> to vector<32x32xf32>
    %cst_31 = arith.constant dense<0.000000e+00> : vector<64x32xf32>
    %84 = tpu.matmul %81, %83, %cst_31 {dimension_numbers = #tpu.dot_dimension_numbers<[1], [0], [0], [1], [0, 0, 1, 1], [], []>} : vector<64x32xf32>, vector<32x32xf32>, vector<64x32xf32> -> vector<64x32xf32>
    %85 = vector.broadcast %12 : vector<1x32xf32> to vector<64x32xf32>
    %86 = arith.addf %84, %85 : vector<64x32xf32>
    %cst_32 = arith.constant 0.000000e+00 : f32
    %87 = vector.broadcast %cst_32 : f32 to vector<64x32xf32>
    %88 = arith.maximumf %86, %87 : vector<64x32xf32>
    %c0_33 = arith.constant 0 : index
    %c0_34 = arith.constant 0 : index
    %c0_35 = arith.constant 0 : index
    %89 = vector.load %arg7[%c0_33, %c0_34, %c0_35] : memref<3x32x32xf32, #tpu.memory_space<vmem>>, vector<1x32x32xf32>
    %90 = vector.shape_cast %89 : vector<1x32x32xf32> to vector<32x32xf32>
    %cst_36 = arith.constant dense<0.000000e+00> : vector<64x32xf32>
    %91 = tpu.matmul %88, %90, %cst_36 {dimension_numbers = #tpu.dot_dimension_numbers<[1], [0], [0], [1], [0, 0, 1, 1], [], []>} : vector<64x32xf32>, vector<32x32xf32>, vector<64x32xf32> -> vector<64x32xf32>
    %92 = vector.broadcast %13 : vector<1x32xf32> to vector<64x32xf32>
    %93 = arith.addf %91, %92 : vector<64x32xf32>
    %94 = arith.addf %81, %93 : vector<64x32xf32>
    %cst_37 = arith.constant dense<0.000000e+00> : vector<64xf32>
    %95 = vector.multi_reduction <add>, %94, %cst_37 [1] : vector<64x32xf32> to vector<64xf32>
    %96 = vector.shape_cast %95 : vector<64xf32> to vector<64x1xf32>
    %cst_38 = arith.constant 3.200000e+01 : f32
    %97 = vector.broadcast %cst_38 : f32 to vector<64x1xf32>
    %98 = arith.divf %96, %97 : vector<64x1xf32>
    %99 = vector.broadcast %98 : vector<64x1xf32> to vector<64x32xf32>
    %100 = arith.subf %94, %99 : vector<64x32xf32>
    %101 = arith.mulf %100, %100 : vector<64x32xf32>
    %cst_39 = arith.constant dense<0.000000e+00> : vector<64xf32>
    %102 = vector.multi_reduction <add>, %101, %cst_39 [1] : vector<64x32xf32> to vector<64xf32>
    %103 = vector.shape_cast %102 : vector<64xf32> to vector<64x1xf32>
    %cst_40 = arith.constant 3.200000e+01 : f32
    %104 = vector.broadcast %cst_40 : f32 to vector<64x1xf32>
    %105 = arith.divf %103, %104 : vector<64x1xf32>
    %cst_41 = arith.constant 9.99999974E-6 : f32
    %106 = vector.broadcast %cst_41 : f32 to vector<64x1xf32>
    %107 = arith.addf %105, %106 : vector<64x1xf32>
    %108 = math.rsqrt %107 : vector<64x1xf32>
    %109 = vector.broadcast %108 : vector<64x1xf32> to vector<64x32xf32>
    %110 = arith.mulf %100, %109 : vector<64x32xf32>
    %111 = vector.broadcast %16 : vector<1x32xf32> to vector<64x32xf32>
    %112 = arith.mulf %110, %111 : vector<64x32xf32>
    %113 = vector.broadcast %17 : vector<1x32xf32> to vector<64x32xf32>
    %114 = arith.addf %112, %113 : vector<64x32xf32>
    %c1 = arith.constant 1 : index
    %c0_42 = arith.constant 0 : index
    %c0_43 = arith.constant 0 : index
    %c0_44 = arith.constant 0 : index
    %115 = vector.load %arg4[%c1, %c0_42, %c0_43, %c0_44] : memref<3x3x32x32xf32, #tpu.memory_space<vmem>>, vector<1x3x32x32xf32>
    %116 = vector.shape_cast %115 : vector<1x3x32x32xf32> to vector<3x32x32xf32>
    %c1_45 = arith.constant 1 : index
    %c0_46 = arith.constant 0 : index
    %c0_47 = arith.constant 0 : index
    %117 = vector.load %arg8[%c1_45, %c0_46, %c0_47] : memref<3x10x32xf32, #tpu.memory_space<vmem>>, vector<1x10x32xf32>
    %118 = vector.shape_cast %117 : vector<1x10x32xf32> to vector<10x32xf32>
    %119 = vector.extract_strided_slice %118 {offsets = [0, 0], sizes = [1, 32], strides = [1, 1]} : vector<10x32xf32> to vector<1x32xf32>
    %120 = vector.extract_strided_slice %118 {offsets = [1, 0], sizes = [1, 32], strides = [1, 1]} : vector<10x32xf32> to vector<1x32xf32>
    %121 = vector.extract_strided_slice %118 {offsets = [2, 0], sizes = [1, 32], strides = [1, 1]} : vector<10x32xf32> to vector<1x32xf32>
    %122 = vector.extract_strided_slice %118 {offsets = [3, 0], sizes = [1, 32], strides = [1, 1]} : vector<10x32xf32> to vector<1x32xf32>
    %123 = vector.extract_strided_slice %118 {offsets = [4, 0], sizes = [1, 32], strides = [1, 1]} : vector<10x32xf32> to vector<1x32xf32>
    %124 = vector.extract_strided_slice %118 {offsets = [5, 0], sizes = [1, 32], strides = [1, 1]} : vector<10x32xf32> to vector<1x32xf32>
    %125 = vector.extract_strided_slice %118 {offsets = [6, 0], sizes = [1, 32], strides = [1, 1]} : vector<10x32xf32> to vector<1x32xf32>
    %126 = vector.extract_strided_slice %118 {offsets = [7, 0], sizes = [1, 32], strides = [1, 1]} : vector<10x32xf32> to vector<1x32xf32>
    %127 = vector.extract_strided_slice %118 {offsets = [8, 0], sizes = [1, 32], strides = [1, 1]} : vector<10x32xf32> to vector<1x32xf32>
    %128 = vector.extract_strided_slice %118 {offsets = [9, 0], sizes = [1, 32], strides = [1, 1]} : vector<10x32xf32> to vector<1x32xf32>
    %129 = vector.extract_strided_slice %116 {offsets = [0, 0, 0], sizes = [1, 32, 32], strides = [1, 1, 1]} : vector<3x32x32xf32> to vector<1x32x32xf32>
    %130 = vector.shape_cast %129 : vector<1x32x32xf32> to vector<32x32xf32>
    %cst_48 = arith.constant dense<0.000000e+00> : vector<64x32xf32>
    %131 = tpu.matmul %114, %130, %cst_48 {dimension_numbers = #tpu.dot_dimension_numbers<[1], [0], [0], [1], [0, 0, 1, 1], [], []>} : vector<64x32xf32>, vector<32x32xf32>, vector<64x32xf32> -> vector<64x32xf32>
    %132 = vector.broadcast %119 : vector<1x32xf32> to vector<64x32xf32>
    %133 = arith.addf %131, %132 : vector<64x32xf32>
    %134 = vector.extract_strided_slice %116 {offsets = [1, 0, 0], sizes = [1, 32, 32], strides = [1, 1, 1]} : vector<3x32x32xf32> to vector<1x32x32xf32>
    %135 = vector.shape_cast %134 : vector<1x32x32xf32> to vector<32x32xf32>
    %cst_49 = arith.constant dense<0.000000e+00> : vector<64x32xf32>
    %136 = tpu.matmul %114, %135, %cst_49 {dimension_numbers = #tpu.dot_dimension_numbers<[1], [0], [0], [1], [0, 0, 1, 1], [], []>} : vector<64x32xf32>, vector<32x32xf32>, vector<64x32xf32> -> vector<64x32xf32>
    %137 = vector.broadcast %120 : vector<1x32xf32> to vector<64x32xf32>
    %138 = arith.addf %136, %137 : vector<64x32xf32>
    %139 = vector.extract_strided_slice %116 {offsets = [2, 0, 0], sizes = [1, 32, 32], strides = [1, 1, 1]} : vector<3x32x32xf32> to vector<1x32x32xf32>
    %140 = vector.shape_cast %139 : vector<1x32x32xf32> to vector<32x32xf32>
    %cst_50 = arith.constant dense<0.000000e+00> : vector<64x32xf32>
    %141 = tpu.matmul %114, %140, %cst_50 {dimension_numbers = #tpu.dot_dimension_numbers<[1], [0], [0], [1], [0, 0, 1, 1], [], []>} : vector<64x32xf32>, vector<32x32xf32>, vector<64x32xf32> -> vector<64x32xf32>
    %142 = vector.broadcast %121 : vector<1x32xf32> to vector<64x32xf32>
    %143 = arith.addf %141, %142 : vector<64x32xf32>
    %144 = vector.shape_cast %133 : vector<64x32xf32> to vector<8x8x32xf32>
    %145 = vector.shape_cast %138 : vector<64x32xf32> to vector<8x8x32xf32>
    %146 = vector.shape_cast %143 : vector<64x32xf32> to vector<8x8x32xf32>
    %147 = tpu.concatenate %145, %145, %145, %145 in 1 : vector<8x8x32xf32>, vector<8x8x32xf32>, vector<8x8x32xf32>, vector<8x8x32xf32> -> vector<8x32x32xf32>
    %148 = vector.shape_cast %2 : vector<32x32xf32> to vector<1x32x32xf32>
    %149 = vector.broadcast %148 : vector<1x32x32xf32> to vector<8x32x32xf32>
    %150 = arith.mulf %147, %149 : vector<8x32x32xf32>
    %151 = tpu.concatenate %146, %146, %146, %146 in 1 : vector<8x8x32xf32>, vector<8x8x32xf32>, vector<8x8x32xf32>, vector<8x8x32xf32> -> vector<8x32x32xf32>
    %152 = vector.shape_cast %2 : vector<32x32xf32> to vector<1x32x32xf32>
    %153 = vector.broadcast %152 : vector<1x32x32xf32> to vector<8x32x32xf32>
    %154 = arith.mulf %151, %153 : vector<8x32x32xf32>
    %cst_51 = arith.constant dense<0.000000e+00> : vector<8x8x32xf32>
    %155 = tpu.matmul %144, %150, %cst_51 {dimension_numbers = #tpu.dot_dimension_numbers<[2], [2], [1], [1], [0, 0, 0, 1, 1, 1], [0], [0]>} : vector<8x8x32xf32>, vector<8x32x32xf32>, vector<8x8x32xf32> -> vector<8x8x32xf32>
    %cst_52 = arith.constant dense<0xFF800000> : vector<8x8xf32>
    %156 = vector.multi_reduction <maximumf>, %155, %cst_52 [2] : vector<8x8x32xf32> to vector<8x8xf32>
    %157 = vector.shape_cast %156 : vector<8x8xf32> to vector<8x8x1xf32>
    %158 = vector.broadcast %157 : vector<8x8x1xf32> to vector<8x8x32xf32>
    %159 = arith.subf %155, %158 : vector<8x8x32xf32>
    %160 = math.exp %159 : vector<8x8x32xf32>
    %161 = vector.shape_cast %160 : vector<8x8x32xf32> to vector<64x32xf32>
    %cst_53 = arith.constant dense<0.000000e+00> : vector<64x32xf32>
    %162 = tpu.matmul %161, %3, %cst_53 {dimension_numbers = #tpu.dot_dimension_numbers<[1], [0], [0], [1], [0, 0, 1, 1], [], []>} : vector<64x32xf32>, vector<32x32xf32>, vector<64x32xf32> -> vector<64x32xf32>
    %163 = arith.divf %161, %162 : vector<64x32xf32>
    %164 = vector.shape_cast %163 : vector<64x32xf32> to vector<8x8x32xf32>
    %cst_54 = arith.constant dense<0.000000e+00> : vector<8x8x32xf32>
    %165 = tpu.matmul %164, %154, %cst_54 {dimension_numbers = #tpu.dot_dimension_numbers<[2], [1], [1], [2], [0, 0, 0, 1, 1, 2], [0], [0]>} : vector<8x8x32xf32>, vector<8x32x32xf32>, vector<8x8x32xf32> -> vector<8x8x32xf32>
    %166 = vector.shape_cast %165 : vector<8x8x32xf32> to vector<64x32xf32>
    %c1_55 = arith.constant 1 : index
    %c0_56 = arith.constant 0 : index
    %c0_57 = arith.constant 0 : index
    %167 = vector.load %arg5[%c1_55, %c0_56, %c0_57] : memref<3x32x32xf32, #tpu.memory_space<vmem>>, vector<1x32x32xf32>
    %168 = vector.shape_cast %167 : vector<1x32x32xf32> to vector<32x32xf32>
    %cst_58 = arith.constant dense<0.000000e+00> : vector<64x32xf32>
    %169 = tpu.matmul %166, %168, %cst_58 {dimension_numbers = #tpu.dot_dimension_numbers<[1], [0], [0], [1], [0, 0, 1, 1], [], []>} : vector<64x32xf32>, vector<32x32xf32>, vector<64x32xf32> -> vector<64x32xf32>
    %170 = vector.broadcast %122 : vector<1x32xf32> to vector<64x32xf32>
    %171 = arith.addf %169, %170 : vector<64x32xf32>
    %172 = arith.addf %114, %171 : vector<64x32xf32>
    %cst_59 = arith.constant dense<0.000000e+00> : vector<64xf32>
    %173 = vector.multi_reduction <add>, %172, %cst_59 [1] : vector<64x32xf32> to vector<64xf32>
    %174 = vector.shape_cast %173 : vector<64xf32> to vector<64x1xf32>
    %cst_60 = arith.constant 3.200000e+01 : f32
    %175 = vector.broadcast %cst_60 : f32 to vector<64x1xf32>
    %176 = arith.divf %174, %175 : vector<64x1xf32>
    %177 = vector.broadcast %176 : vector<64x1xf32> to vector<64x32xf32>
    %178 = arith.subf %172, %177 : vector<64x32xf32>
    %179 = arith.mulf %178, %178 : vector<64x32xf32>
    %cst_61 = arith.constant dense<0.000000e+00> : vector<64xf32>
    %180 = vector.multi_reduction <add>, %179, %cst_61 [1] : vector<64x32xf32> to vector<64xf32>
    %181 = vector.shape_cast %180 : vector<64xf32> to vector<64x1xf32>
    %cst_62 = arith.constant 3.200000e+01 : f32
    %182 = vector.broadcast %cst_62 : f32 to vector<64x1xf32>
    %183 = arith.divf %181, %182 : vector<64x1xf32>
    %cst_63 = arith.constant 9.99999974E-6 : f32
    %184 = vector.broadcast %cst_63 : f32 to vector<64x1xf32>
    %185 = arith.addf %183, %184 : vector<64x1xf32>
    %186 = math.rsqrt %185 : vector<64x1xf32>
    %187 = vector.broadcast %186 : vector<64x1xf32> to vector<64x32xf32>
    %188 = arith.mulf %178, %187 : vector<64x32xf32>
    %189 = vector.broadcast %125 : vector<1x32xf32> to vector<64x32xf32>
    %190 = arith.mulf %188, %189 : vector<64x32xf32>
    %191 = vector.broadcast %126 : vector<1x32xf32> to vector<64x32xf32>
    %192 = arith.addf %190, %191 : vector<64x32xf32>
    %c1_64 = arith.constant 1 : index
    %c0_65 = arith.constant 0 : index
    %c0_66 = arith.constant 0 : index
    %193 = vector.load %arg6[%c1_64, %c0_65, %c0_66] : memref<3x32x32xf32, #tpu.memory_space<vmem>>, vector<1x32x32xf32>
    %194 = vector.shape_cast %193 : vector<1x32x32xf32> to vector<32x32xf32>
    %cst_67 = arith.constant dense<0.000000e+00> : vector<64x32xf32>
    %195 = tpu.matmul %192, %194, %cst_67 {dimension_numbers = #tpu.dot_dimension_numbers<[1], [0], [0], [1], [0, 0, 1, 1], [], []>} : vector<64x32xf32>, vector<32x32xf32>, vector<64x32xf32> -> vector<64x32xf32>
    %196 = vector.broadcast %123 : vector<1x32xf32> to vector<64x32xf32>
    %197 = arith.addf %195, %196 : vector<64x32xf32>
    %cst_68 = arith.constant 0.000000e+00 : f32
    %198 = vector.broadcast %cst_68 : f32 to vector<64x32xf32>
    %199 = arith.maximumf %197, %198 : vector<64x32xf32>
    %c1_69 = arith.constant 1 : index
    %c0_70 = arith.constant 0 : index
    %c0_71 = arith.constant 0 : index
    %200 = vector.load %arg7[%c1_69, %c0_70, %c0_71] : memref<3x32x32xf32, #tpu.memory_space<vmem>>, vector<1x32x32xf32>
    %201 = vector.shape_cast %200 : vector<1x32x32xf32> to vector<32x32xf32>
    %cst_72 = arith.constant dense<0.000000e+00> : vector<64x32xf32>
    %202 = tpu.matmul %199, %201, %cst_72 {dimension_numbers = #tpu.dot_dimension_numbers<[1], [0], [0], [1], [0, 0, 1, 1], [], []>} : vector<64x32xf32>, vector<32x32xf32>, vector<64x32xf32> -> vector<64x32xf32>
    %203 = vector.broadcast %124 : vector<1x32xf32> to vector<64x32xf32>
    %204 = arith.addf %202, %203 : vector<64x32xf32>
    %205 = arith.addf %192, %204 : vector<64x32xf32>
    %cst_73 = arith.constant dense<0.000000e+00> : vector<64xf32>
    %206 = vector.multi_reduction <add>, %205, %cst_73 [1] : vector<64x32xf32> to vector<64xf32>
    %207 = vector.shape_cast %206 : vector<64xf32> to vector<64x1xf32>
    %cst_74 = arith.constant 3.200000e+01 : f32
    %208 = vector.broadcast %cst_74 : f32 to vector<64x1xf32>
    %209 = arith.divf %207, %208 : vector<64x1xf32>
    %210 = vector.broadcast %209 : vector<64x1xf32> to vector<64x32xf32>
    %211 = arith.subf %205, %210 : vector<64x32xf32>
    %212 = arith.mulf %211, %211 : vector<64x32xf32>
    %cst_75 = arith.constant dense<0.000000e+00> : vector<64xf32>
    %213 = vector.multi_reduction <add>, %212, %cst_75 [1] : vector<64x32xf32> to vector<64xf32>
    %214 = vector.shape_cast %213 : vector<64xf32> to vector<64x1xf32>
    %cst_76 = arith.constant 3.200000e+01 : f32
    %215 = vector.broadcast %cst_76 : f32 to vector<64x1xf32>
    %216 = arith.divf %214, %215 : vector<64x1xf32>
    %cst_77 = arith.constant 9.99999974E-6 : f32
    %217 = vector.broadcast %cst_77 : f32 to vector<64x1xf32>
    %218 = arith.addf %216, %217 : vector<64x1xf32>
    %219 = math.rsqrt %218 : vector<64x1xf32>
    %220 = vector.broadcast %219 : vector<64x1xf32> to vector<64x32xf32>
    %221 = arith.mulf %211, %220 : vector<64x32xf32>
    %222 = vector.broadcast %127 : vector<1x32xf32> to vector<64x32xf32>
    %223 = arith.mulf %221, %222 : vector<64x32xf32>
    %224 = vector.broadcast %128 : vector<1x32xf32> to vector<64x32xf32>
    %225 = arith.addf %223, %224 : vector<64x32xf32>
    %c2 = arith.constant 2 : index
    %c0_78 = arith.constant 0 : index
    %c0_79 = arith.constant 0 : index
    %c0_80 = arith.constant 0 : index
    %226 = vector.load %arg4[%c2, %c0_78, %c0_79, %c0_80] : memref<3x3x32x32xf32, #tpu.memory_space<vmem>>, vector<1x3x32x32xf32>
    %227 = vector.shape_cast %226 : vector<1x3x32x32xf32> to vector<3x32x32xf32>
    %c2_81 = arith.constant 2 : index
    %c0_82 = arith.constant 0 : index
    %c0_83 = arith.constant 0 : index
    %228 = vector.load %arg8[%c2_81, %c0_82, %c0_83] : memref<3x10x32xf32, #tpu.memory_space<vmem>>, vector<1x10x32xf32>
    %229 = vector.shape_cast %228 : vector<1x10x32xf32> to vector<10x32xf32>
    %230 = vector.extract_strided_slice %229 {offsets = [0, 0], sizes = [1, 32], strides = [1, 1]} : vector<10x32xf32> to vector<1x32xf32>
    %231 = vector.extract_strided_slice %229 {offsets = [1, 0], sizes = [1, 32], strides = [1, 1]} : vector<10x32xf32> to vector<1x32xf32>
    %232 = vector.extract_strided_slice %229 {offsets = [2, 0], sizes = [1, 32], strides = [1, 1]} : vector<10x32xf32> to vector<1x32xf32>
    %233 = vector.extract_strided_slice %229 {offsets = [3, 0], sizes = [1, 32], strides = [1, 1]} : vector<10x32xf32> to vector<1x32xf32>
    %234 = vector.extract_strided_slice %229 {offsets = [4, 0], sizes = [1, 32], strides = [1, 1]} : vector<10x32xf32> to vector<1x32xf32>
    %235 = vector.extract_strided_slice %229 {offsets = [5, 0], sizes = [1, 32], strides = [1, 1]} : vector<10x32xf32> to vector<1x32xf32>
    %236 = vector.extract_strided_slice %229 {offsets = [6, 0], sizes = [1, 32], strides = [1, 1]} : vector<10x32xf32> to vector<1x32xf32>
    %237 = vector.extract_strided_slice %229 {offsets = [7, 0], sizes = [1, 32], strides = [1, 1]} : vector<10x32xf32> to vector<1x32xf32>
    %238 = vector.extract_strided_slice %229 {offsets = [8, 0], sizes = [1, 32], strides = [1, 1]} : vector<10x32xf32> to vector<1x32xf32>
    %239 = vector.extract_strided_slice %229 {offsets = [9, 0], sizes = [1, 32], strides = [1, 1]} : vector<10x32xf32> to vector<1x32xf32>
    %240 = vector.extract_strided_slice %227 {offsets = [0, 0, 0], sizes = [1, 32, 32], strides = [1, 1, 1]} : vector<3x32x32xf32> to vector<1x32x32xf32>
    %241 = vector.shape_cast %240 : vector<1x32x32xf32> to vector<32x32xf32>
    %cst_84 = arith.constant dense<0.000000e+00> : vector<64x32xf32>
    %242 = tpu.matmul %225, %241, %cst_84 {dimension_numbers = #tpu.dot_dimension_numbers<[1], [0], [0], [1], [0, 0, 1, 1], [], []>} : vector<64x32xf32>, vector<32x32xf32>, vector<64x32xf32> -> vector<64x32xf32>
    %243 = vector.broadcast %230 : vector<1x32xf32> to vector<64x32xf32>
    %244 = arith.addf %242, %243 : vector<64x32xf32>
    %245 = vector.extract_strided_slice %227 {offsets = [1, 0, 0], sizes = [1, 32, 32], strides = [1, 1, 1]} : vector<3x32x32xf32> to vector<1x32x32xf32>
    %246 = vector.shape_cast %245 : vector<1x32x32xf32> to vector<32x32xf32>
    %cst_85 = arith.constant dense<0.000000e+00> : vector<64x32xf32>
    %247 = tpu.matmul %225, %246, %cst_85 {dimension_numbers = #tpu.dot_dimension_numbers<[1], [0], [0], [1], [0, 0, 1, 1], [], []>} : vector<64x32xf32>, vector<32x32xf32>, vector<64x32xf32> -> vector<64x32xf32>
    %248 = vector.broadcast %231 : vector<1x32xf32> to vector<64x32xf32>
    %249 = arith.addf %247, %248 : vector<64x32xf32>
    %250 = vector.extract_strided_slice %227 {offsets = [2, 0, 0], sizes = [1, 32, 32], strides = [1, 1, 1]} : vector<3x32x32xf32> to vector<1x32x32xf32>
    %251 = vector.shape_cast %250 : vector<1x32x32xf32> to vector<32x32xf32>
    %cst_86 = arith.constant dense<0.000000e+00> : vector<64x32xf32>
    %252 = tpu.matmul %225, %251, %cst_86 {dimension_numbers = #tpu.dot_dimension_numbers<[1], [0], [0], [1], [0, 0, 1, 1], [], []>} : vector<64x32xf32>, vector<32x32xf32>, vector<64x32xf32> -> vector<64x32xf32>
    %253 = vector.broadcast %232 : vector<1x32xf32> to vector<64x32xf32>
    %254 = arith.addf %252, %253 : vector<64x32xf32>
    %255 = vector.shape_cast %244 : vector<64x32xf32> to vector<8x8x32xf32>
    %256 = vector.shape_cast %249 : vector<64x32xf32> to vector<8x8x32xf32>
    %257 = vector.shape_cast %254 : vector<64x32xf32> to vector<8x8x32xf32>
    %258 = tpu.concatenate %256, %256, %256, %256 in 1 : vector<8x8x32xf32>, vector<8x8x32xf32>, vector<8x8x32xf32>, vector<8x8x32xf32> -> vector<8x32x32xf32>
    %259 = vector.shape_cast %2 : vector<32x32xf32> to vector<1x32x32xf32>
    %260 = vector.broadcast %259 : vector<1x32x32xf32> to vector<8x32x32xf32>
    %261 = arith.mulf %258, %260 : vector<8x32x32xf32>
    %262 = tpu.concatenate %257, %257, %257, %257 in 1 : vector<8x8x32xf32>, vector<8x8x32xf32>, vector<8x8x32xf32>, vector<8x8x32xf32> -> vector<8x32x32xf32>
    %263 = vector.shape_cast %2 : vector<32x32xf32> to vector<1x32x32xf32>
    %264 = vector.broadcast %263 : vector<1x32x32xf32> to vector<8x32x32xf32>
    %265 = arith.mulf %262, %264 : vector<8x32x32xf32>
    %cst_87 = arith.constant dense<0.000000e+00> : vector<8x8x32xf32>
    %266 = tpu.matmul %255, %261, %cst_87 {dimension_numbers = #tpu.dot_dimension_numbers<[2], [2], [1], [1], [0, 0, 0, 1, 1, 1], [0], [0]>} : vector<8x8x32xf32>, vector<8x32x32xf32>, vector<8x8x32xf32> -> vector<8x8x32xf32>
    %cst_88 = arith.constant dense<0xFF800000> : vector<8x8xf32>
    %267 = vector.multi_reduction <maximumf>, %266, %cst_88 [2] : vector<8x8x32xf32> to vector<8x8xf32>
    %268 = vector.shape_cast %267 : vector<8x8xf32> to vector<8x8x1xf32>
    %269 = vector.broadcast %268 : vector<8x8x1xf32> to vector<8x8x32xf32>
    %270 = arith.subf %266, %269 : vector<8x8x32xf32>
    %271 = math.exp %270 : vector<8x8x32xf32>
    %272 = vector.shape_cast %271 : vector<8x8x32xf32> to vector<64x32xf32>
    %cst_89 = arith.constant dense<0.000000e+00> : vector<64x32xf32>
    %273 = tpu.matmul %272, %3, %cst_89 {dimension_numbers = #tpu.dot_dimension_numbers<[1], [0], [0], [1], [0, 0, 1, 1], [], []>} : vector<64x32xf32>, vector<32x32xf32>, vector<64x32xf32> -> vector<64x32xf32>
    %274 = arith.divf %272, %273 : vector<64x32xf32>
    %275 = vector.shape_cast %274 : vector<64x32xf32> to vector<8x8x32xf32>
    %cst_90 = arith.constant dense<0.000000e+00> : vector<8x8x32xf32>
    %276 = tpu.matmul %275, %265, %cst_90 {dimension_numbers = #tpu.dot_dimension_numbers<[2], [1], [1], [2], [0, 0, 0, 1, 1, 2], [0], [0]>} : vector<8x8x32xf32>, vector<8x32x32xf32>, vector<8x8x32xf32> -> vector<8x8x32xf32>
    %277 = vector.shape_cast %276 : vector<8x8x32xf32> to vector<64x32xf32>
    %c2_91 = arith.constant 2 : index
    %c0_92 = arith.constant 0 : index
    %c0_93 = arith.constant 0 : index
    %278 = vector.load %arg5[%c2_91, %c0_92, %c0_93] : memref<3x32x32xf32, #tpu.memory_space<vmem>>, vector<1x32x32xf32>
    %279 = vector.shape_cast %278 : vector<1x32x32xf32> to vector<32x32xf32>
    %cst_94 = arith.constant dense<0.000000e+00> : vector<64x32xf32>
    %280 = tpu.matmul %277, %279, %cst_94 {dimension_numbers = #tpu.dot_dimension_numbers<[1], [0], [0], [1], [0, 0, 1, 1], [], []>} : vector<64x32xf32>, vector<32x32xf32>, vector<64x32xf32> -> vector<64x32xf32>
    %281 = vector.broadcast %233 : vector<1x32xf32> to vector<64x32xf32>
    %282 = arith.addf %280, %281 : vector<64x32xf32>
    %283 = arith.addf %225, %282 : vector<64x32xf32>
    %cst_95 = arith.constant dense<0.000000e+00> : vector<64xf32>
    %284 = vector.multi_reduction <add>, %283, %cst_95 [1] : vector<64x32xf32> to vector<64xf32>
    %285 = vector.shape_cast %284 : vector<64xf32> to vector<64x1xf32>
    %cst_96 = arith.constant 3.200000e+01 : f32
    %286 = vector.broadcast %cst_96 : f32 to vector<64x1xf32>
    %287 = arith.divf %285, %286 : vector<64x1xf32>
    %288 = vector.broadcast %287 : vector<64x1xf32> to vector<64x32xf32>
    %289 = arith.subf %283, %288 : vector<64x32xf32>
    %290 = arith.mulf %289, %289 : vector<64x32xf32>
    %cst_97 = arith.constant dense<0.000000e+00> : vector<64xf32>
    %291 = vector.multi_reduction <add>, %290, %cst_97 [1] : vector<64x32xf32> to vector<64xf32>
    %292 = vector.shape_cast %291 : vector<64xf32> to vector<64x1xf32>
    %cst_98 = arith.constant 3.200000e+01 : f32
    %293 = vector.broadcast %cst_98 : f32 to vector<64x1xf32>
    %294 = arith.divf %292, %293 : vector<64x1xf32>
    %cst_99 = arith.constant 9.99999974E-6 : f32
    %295 = vector.broadcast %cst_99 : f32 to vector<64x1xf32>
    %296 = arith.addf %294, %295 : vector<64x1xf32>
    %297 = math.rsqrt %296 : vector<64x1xf32>
    %298 = vector.broadcast %297 : vector<64x1xf32> to vector<64x32xf32>
    %299 = arith.mulf %289, %298 : vector<64x32xf32>
    %300 = vector.broadcast %236 : vector<1x32xf32> to vector<64x32xf32>
    %301 = arith.mulf %299, %300 : vector<64x32xf32>
    %302 = vector.broadcast %237 : vector<1x32xf32> to vector<64x32xf32>
    %303 = arith.addf %301, %302 : vector<64x32xf32>
    %c2_100 = arith.constant 2 : index
    %c0_101 = arith.constant 0 : index
    %c0_102 = arith.constant 0 : index
    %304 = vector.load %arg6[%c2_100, %c0_101, %c0_102] : memref<3x32x32xf32, #tpu.memory_space<vmem>>, vector<1x32x32xf32>
    %305 = vector.shape_cast %304 : vector<1x32x32xf32> to vector<32x32xf32>
    %cst_103 = arith.constant dense<0.000000e+00> : vector<64x32xf32>
    %306 = tpu.matmul %303, %305, %cst_103 {dimension_numbers = #tpu.dot_dimension_numbers<[1], [0], [0], [1], [0, 0, 1, 1], [], []>} : vector<64x32xf32>, vector<32x32xf32>, vector<64x32xf32> -> vector<64x32xf32>
    %307 = vector.broadcast %234 : vector<1x32xf32> to vector<64x32xf32>
    %308 = arith.addf %306, %307 : vector<64x32xf32>
    %cst_104 = arith.constant 0.000000e+00 : f32
    %309 = vector.broadcast %cst_104 : f32 to vector<64x32xf32>
    %310 = arith.maximumf %308, %309 : vector<64x32xf32>
    %c2_105 = arith.constant 2 : index
    %c0_106 = arith.constant 0 : index
    %c0_107 = arith.constant 0 : index
    %311 = vector.load %arg7[%c2_105, %c0_106, %c0_107] : memref<3x32x32xf32, #tpu.memory_space<vmem>>, vector<1x32x32xf32>
    %312 = vector.shape_cast %311 : vector<1x32x32xf32> to vector<32x32xf32>
    %cst_108 = arith.constant dense<0.000000e+00> : vector<64x32xf32>
    %313 = tpu.matmul %310, %312, %cst_108 {dimension_numbers = #tpu.dot_dimension_numbers<[1], [0], [0], [1], [0, 0, 1, 1], [], []>} : vector<64x32xf32>, vector<32x32xf32>, vector<64x32xf32> -> vector<64x32xf32>
    %314 = vector.broadcast %235 : vector<1x32xf32> to vector<64x32xf32>
    %315 = arith.addf %313, %314 : vector<64x32xf32>
    %316 = arith.addf %303, %315 : vector<64x32xf32>
    %cst_109 = arith.constant dense<0.000000e+00> : vector<64xf32>
    %317 = vector.multi_reduction <add>, %316, %cst_109 [1] : vector<64x32xf32> to vector<64xf32>
    %318 = vector.shape_cast %317 : vector<64xf32> to vector<64x1xf32>
    %cst_110 = arith.constant 3.200000e+01 : f32
    %319 = vector.broadcast %cst_110 : f32 to vector<64x1xf32>
    %320 = arith.divf %318, %319 : vector<64x1xf32>
    %321 = vector.broadcast %320 : vector<64x1xf32> to vector<64x32xf32>
    %322 = arith.subf %316, %321 : vector<64x32xf32>
    %323 = arith.mulf %322, %322 : vector<64x32xf32>
    %cst_111 = arith.constant dense<0.000000e+00> : vector<64xf32>
    %324 = vector.multi_reduction <add>, %323, %cst_111 [1] : vector<64x32xf32> to vector<64xf32>
    %325 = vector.shape_cast %324 : vector<64xf32> to vector<64x1xf32>
    %cst_112 = arith.constant 3.200000e+01 : f32
    %326 = vector.broadcast %cst_112 : f32 to vector<64x1xf32>
    %327 = arith.divf %325, %326 : vector<64x1xf32>
    %cst_113 = arith.constant 9.99999974E-6 : f32
    %328 = vector.broadcast %cst_113 : f32 to vector<64x1xf32>
    %329 = arith.addf %327, %328 : vector<64x1xf32>
    %330 = math.rsqrt %329 : vector<64x1xf32>
    %331 = vector.broadcast %330 : vector<64x1xf32> to vector<64x32xf32>
    %332 = arith.mulf %322, %331 : vector<64x32xf32>
    %333 = vector.broadcast %238 : vector<1x32xf32> to vector<64x32xf32>
    %334 = arith.mulf %332, %333 : vector<64x32xf32>
    %335 = vector.broadcast %239 : vector<1x32xf32> to vector<64x32xf32>
    %336 = arith.addf %334, %335 : vector<64x32xf32>
    %c0_114 = arith.constant 0 : index
    %c0_115 = arith.constant 0 : index
    %337 = vector.load %arg9[%c0_114, %c0_115] : memref<32x32xf32, #tpu.memory_space<vmem>>, vector<32x32xf32>
    %cst_116 = arith.constant dense<0.000000e+00> : vector<64x32xf32>
    %338 = tpu.matmul %336, %337, %cst_116 {dimension_numbers = #tpu.dot_dimension_numbers<[1], [0], [0], [1], [0, 0, 1, 1], [], []>} : vector<64x32xf32>, vector<32x32xf32>, vector<64x32xf32> -> vector<64x32xf32>
    %c0_117 = arith.constant 0 : index
    %c0_118 = arith.constant 0 : index
    %339 = vector.load %arg10[%c0_117, %c0_118] : memref<1x32xf32, #tpu.memory_space<vmem>>, vector<1x32xf32>
    %340 = vector.broadcast %339 : vector<1x32xf32> to vector<64x32xf32>
    %341 = arith.addf %338, %340 : vector<64x32xf32>
    %342 = vector.shape_cast %341 : vector<64x32xf32> to vector<8x8x32xf32>
    %cst_119 = arith.constant dense<0.000000e+00> : vector<8x32xf32>
    %343 = vector.multi_reduction <add>, %342, %cst_119 [1] : vector<8x8x32xf32> to vector<8x32xf32>
    %344 = vector.shape_cast %343 : vector<8x32xf32> to vector<8x1x32xf32>
    %cst_120 = arith.constant 8.000000e+00 : f32
    %345 = vector.broadcast %cst_120 : f32 to vector<8x1x32xf32>
    %346 = arith.divf %344, %345 : vector<8x1x32xf32>
    %c0_121 = arith.constant 0 : index
    %c0_122 = arith.constant 0 : index
    %c0_123 = arith.constant 0 : index
    %347 = vector.load %arg2[%c0_121, %c0_122, %c0_123] : memref<8x8x32xf32, #tpu.memory_space<vmem>>, vector<8x8x32xf32>
    %cst_124 = arith.constant dense<0.000000e+00> : vector<8x1x8xf32>
    %348 = tpu.matmul %346, %347, %cst_124 {dimension_numbers = #tpu.dot_dimension_numbers<[2], [2], [1], [1], [0, 0, 0, 1, 1, 1], [0], [0]>} : vector<8x1x32xf32>, vector<8x8x32xf32>, vector<8x1x8xf32> -> vector<8x1x8xf32>
    %349 = tpu.iota {dimensions = array<i32: 2>} : vector<8x1x8xi32>
    %c0_125 = arith.constant 0 : index
    %c0_126 = arith.constant 0 : index
    %c0_127 = arith.constant 0 : index
    %350 = vector.load %arg3[%c0_125, %c0_126, %c0_127] : memref<8x1x1xi32, #tpu.memory_space<vmem>>, vector<8x1x1xi32>
    %351 = vector.broadcast %350 : vector<8x1x1xi32> to vector<8x1x8xi32>
    %352 = arith.cmpi slt, %349, %351 : vector<8x1x8xi32>
    %cst_128 = arith.constant 0xFF800000 : f32
    %353 = vector.broadcast %cst_128 : f32 to vector<8x1x8xf32>
    %354 = arith.select %352, %348, %353 : vector<8x1x8xi1>, vector<8x1x8xf32>
    %cst_129 = arith.constant dense<0xFF800000> : vector<8x1xf32>
    %355 = vector.multi_reduction <maximumf>, %354, %cst_129 [2] : vector<8x1x8xf32> to vector<8x1xf32>
    %356 = vector.shape_cast %355 : vector<8x1xf32> to vector<8x1x1xf32>
    %357 = vector.broadcast %356 : vector<8x1x1xf32> to vector<8x1x8xf32>
    %358 = arith.subf %354, %357 : vector<8x1x8xf32>
    %359 = math.exp %358 : vector<8x1x8xf32>
    %cst_130 = arith.constant dense<0.000000e+00> : vector<8x1xf32>
    %360 = vector.multi_reduction <add>, %359, %cst_130 [2] : vector<8x1x8xf32> to vector<8x1xf32>
    %361 = vector.shape_cast %360 : vector<8x1xf32> to vector<8x1x1xf32>
    %362 = tpu.reciprocal %361 {approx = true} : vector<8x1x1xf32> -> vector<8x1x1xf32>
    %363 = vector.broadcast %362 : vector<8x1x1xf32> to vector<8x1x8xf32>
    %364 = arith.mulf %359, %363 : vector<8x1x8xf32>
    %cst_131 = arith.constant 0.000000e+00 : f32
    %365 = vector.broadcast %cst_131 : f32 to vector<8x1x120xf32>
    %366 = tpu.concatenate %364, %365 in 2 : vector<8x1x8xf32>, vector<8x1x120xf32> -> vector<8x1x128xf32>
    %c0_132 = arith.constant 0 : index
    %c0_133 = arith.constant 0 : index
    %c0_134 = arith.constant 0 : index
    %367 = vector.load %arg13[%c0_132, %c0_133, %c0_134] : memref<8x1x128xf32, #tpu.memory_space<vmem>>, vector<8x1x128xf32>
    tpu.vector_store %arg13[%c0_132, %c0_133, %c0_134], %366 {strides = array<i32>} : memref<8x1x128xf32, #tpu.memory_space<vmem>>, vector<8x1x128xf32>,
    return
  }
  func.func @transform_0(%arg0: i32) -> (i32, i32, i32) {
    %c0_i32 = arith.constant 0 : i32
    %c0_i32_0 = arith.constant 0 : i32
    %c0_i32_1 = arith.constant 0 : i32
    return %arg0, %c0_i32, %c0_i32_0 : i32, i32, i32
  }
  func.func @transform_1(%arg0: i32) -> (i32, i32, i32) {
    %c0_i32 = arith.constant 0 : i32
    %c0_i32_0 = arith.constant 0 : i32
    %c0_i32_1 = arith.constant 0 : i32
    return %arg0, %c0_i32, %c0_i32_0 : i32, i32, i32
  }
  func.func @transform_2(%arg0: i32) -> (i32, i32, i32) {
    %c0_i32 = arith.constant 0 : i32
    %c0_i32_0 = arith.constant 0 : i32
    %c0_i32_1 = arith.constant 0 : i32
    return %arg0, %c0_i32, %c0_i32_0 : i32, i32, i32
  }
  func.func @transform_3(%arg0: i32) -> (i32, i32, i32, i32) {
    %c0_i32 = arith.constant 0 : i32
    %c0_i32_0 = arith.constant 0 : i32
    %c0_i32_1 = arith.constant 0 : i32
    %c0_i32_2 = arith.constant 0 : i32
    %c0_i32_3 = arith.constant 0 : i32
    return %c0_i32, %c0_i32_0, %c0_i32_1, %c0_i32_2 : i32, i32, i32, i32
  }
  func.func @transform_4(%arg0: i32) -> (i32, i32, i32) {
    %c0_i32 = arith.constant 0 : i32
    %c0_i32_0 = arith.constant 0 : i32
    %c0_i32_1 = arith.constant 0 : i32
    %c0_i32_2 = arith.constant 0 : i32
    return %c0_i32, %c0_i32_0, %c0_i32_1 : i32, i32, i32
  }
  func.func @transform_5(%arg0: i32) -> (i32, i32, i32) {
    %c0_i32 = arith.constant 0 : i32
    %c0_i32_0 = arith.constant 0 : i32
    %c0_i32_1 = arith.constant 0 : i32
    %c0_i32_2 = arith.constant 0 : i32
    return %c0_i32, %c0_i32_0, %c0_i32_1 : i32, i32, i32
  }
  func.func @transform_6(%arg0: i32) -> (i32, i32, i32) {
    %c0_i32 = arith.constant 0 : i32
    %c0_i32_0 = arith.constant 0 : i32
    %c0_i32_1 = arith.constant 0 : i32
    %c0_i32_2 = arith.constant 0 : i32
    return %c0_i32, %c0_i32_0, %c0_i32_1 : i32, i32, i32
  }
  func.func @transform_7(%arg0: i32) -> (i32, i32, i32) {
    %c0_i32 = arith.constant 0 : i32
    %c0_i32_0 = arith.constant 0 : i32
    %c0_i32_1 = arith.constant 0 : i32
    %c0_i32_2 = arith.constant 0 : i32
    return %c0_i32, %c0_i32_0, %c0_i32_1 : i32, i32, i32
  }
  func.func @transform_8(%arg0: i32) -> (i32, i32) {
    %c0_i32 = arith.constant 0 : i32
    %c0_i32_0 = arith.constant 0 : i32
    %c0_i32_1 = arith.constant 0 : i32
    return %c0_i32, %c0_i32_0 : i32, i32
  }
  func.func @transform_9(%arg0: i32) -> (i32, i32) {
    %c0_i32 = arith.constant 0 : i32
    %c0_i32_0 = arith.constant 0 : i32
    %c0_i32_1 = arith.constant 0 : i32
    return %c0_i32, %c0_i32_0 : i32, i32
  }
  func.func @transform_10(%arg0: i32) -> (i32, i32) {
    %c0_i32 = arith.constant 0 : i32
    %c0_i32_0 = arith.constant 0 : i32
    %c0_i32_1 = arith.constant 0 : i32
    return %c0_i32, %c0_i32_0 : i32, i32
  }
  func.func @transform_11(%arg0: i32) -> (i32, i32) {
    %c0_i32 = arith.constant 0 : i32
    %c0_i32_0 = arith.constant 0 : i32
    %c0_i32_1 = arith.constant 0 : i32
    return %c0_i32, %c0_i32_0 : i32, i32
  }
  func.func @transform_12(%arg0: i32) -> (i32, i32, i32) {
    %c0_i32 = arith.constant 0 : i32
    %c0_i32_0 = arith.constant 0 : i32
    %c0_i32_1 = arith.constant 0 : i32
    return %arg0, %c0_i32, %c0_i32_0 : i32, i32, i32
  }
}

</mosaic_0001>

<bundles_post_ra>
// kernel: tpu_custom_call.1
= control target key start
LH: loop header
LB: loop body
LE: loop exit
PB: predicated region body
PF: predicated region fallthrough
CT: control target
= control target key end

     0   :  { %17 = vsyncpa [#allocation3], 0  ;;  %s13434_s0 = inlined_call_operand.hbm [shape: f32[8,8,32], index: 0, kind: input, shape index: {}]   ;;  %s13435_s1 = inlined_call_operand.hbm [shape: f32[8,8,32], index: 1, kind: input, shape index: {}]   ;;  %s13436_s2 = inlined_call_operand.vmem [shape: s32[8,1,1], index: 2, kind: input, shape index: {}]   ;;  %s13437_s3 = inlined_call_operand.hbm [shape: f32[3,3,32,32], index: 3, kind: input, shape index: {}]   ;;  %s13438_s4 = inlined_call_operand.vmem [shape: f32[3,32,32], index: 4, kind: input, shape index: {}]   ;;  %s13439_s5 = inlined_call_operand.hbm [shape: f32[3,32,32], index: 5, kind: input, shape index: {}]   ;;  %s13440_s6 = inlined_call_operand.hbm [shape: f32[3,32,32], index: 6, kind: input, shape index: {}]   ;;  %s13441_s7 = inlined_call_operand.vmem [shape: f32[3,10,32], index: 7, kind: input, shape index: {}]   ;;  %s13442_s8 = inlined_call_operand.hbm [shape: f32[32,32], index: 8, kind: input, shape index: {}]   ;;  %s13443_s9 = inlined_call_operand.vmem [shape: f32[1,32], index: 9, kind: input, shape index: {}]   ;;  %s13444_s10 = inlined_call_operand.hbm [shape: f32[32,32], index: 10, kind: input, shape index: {}]   ;;  %s13445_s11 = inlined_call_operand.hbm [shape: f32[32,32], index: 11, kind: input, shape index: {}]   ;;  %s13446_s12 = inlined_call_operand.hbm [shape: f32[8,1,128], index: 12, kind: output, shape index: {}]  }
   0x1   :  { %18 = vsyncpa [#allocation6], 0 }
   0x2   :  { %19 = vsyncpa [#allocation9], 0 }
   0x3   :  { %20 = vsyncpa [#allocation12], 0 }
   0x4   :  { %21 = vsyncpa [#allocation15], 0 }
   0x5   :  { %22 = vsyncpa [#allocation4], 0  ;;  %s11271_s21 = smov [#allocation5]   ;;  %s11272_s23 = smov [#allocation8]  }
   0x6   :  { %s40_s22 = sshll.u32 %s11271_s21, 4  ;;  %s68_s24 = sshll.u32 %s11272_s23, 4  ;;  %s41_s22 = int_to_ptr.vmem [resolvable:$true] %s40_s22  ;;  %s69_s24 = int_to_ptr.vmem [resolvable:$true] %s68_s24 }
   0x7   :  { %s11087_s25 = scalar_lea.vmem %s41_s22, 1024  ;;  %p11092_p1 = scmp.lt.s32.totalorder %s41_s22, %s41_s22 }
   0x8   :  { %p11088_p0 = scmp.ne.s32.totalorder %s41_s22, %s11087_s25  ;;  %p11093_p2 = scmp.lt.s32.totalorder %s11087_s25, %s11087_s25 }
   0xa   :  { %p11094_p3 = por %p11093_p2, %p11092_p1 }
   0xc   :  { %p11095_p4 = pnand %p11094_p3, %p11088_p0 }
   0xe   :  { %11098 = shalt.err (!%p11095_p4)
}
   0xf   :  { %s11273_s26 = smov 128   ;;  %s11274_s27 = smov 8  }
  0x10   :  { %46 = dma.hbm_to_vmem [thread:$0]  %s13435_s1, 1024, %s41_s22, [#allocation6], %s11273_s26, %s11273_s26, %s11274_s27  }
  0x11   :  { %s11107_s30 = scalar_lea.vmem %s69_s24, 1536  ;;  %p11112_p6 = scmp.lt.s32.totalorder %s69_s24, %s69_s24 }
  0x12   :  { %p11108_p5 = scmp.ne.s32.totalorder %s69_s24, %s11107_s30  ;;  %p11113_p7 = scmp.lt.s32.totalorder %s11107_s30, %s11107_s30 }
  0x14   :  { %p11114_p8 = por %p11113_p7, %p11112_p6 }
  0x16   :  { %p11115_p9 = pnand %p11114_p8, %p11108_p5 }
  0x18   :  { %11118 = shalt.err (!%p11115_p9)
}
  0x19   :  { %74 = dma.hbm_to_vmem [thread:$0]  %s13439_s5, 1536, %s69_s24, [#allocation9], %s11273_s26, %s11273_s26, %s11274_s27  }
  0x1a   :  { %s11275_s15 = smov [#allocation11]   ;;  %s11276_s17 = smov [#allocation2]  }
  0x1b   :  { %s94_s16 = sshll.u32 %s11275_s15, 4  ;;  %s28_s18 = sshll.u32 %s11276_s17, 4  ;;  %s95_s16 = int_to_ptr.vmem [resolvable:$true] %s94_s16  ;;  %s29_s18 = int_to_ptr.vmem [resolvable:$true] %s28_s18 }
  0x1c   :  { %s11127_s1 = scalar_lea.vmem %s95_s16, 512  ;;  %p11132_p11 = scmp.lt.s32.totalorder %s95_s16, %s95_s16 }
  0x1d   :  { %p11128_p10 = scmp.ne.s32.totalorder %s95_s16, %s11127_s1  ;;  %p11133_p12 = scmp.lt.s32.totalorder %s11127_s1, %s11127_s1 }
  0x1f   :  { %p11134_p13 = por %p11133_p12, %p11132_p11 }
  0x21   :  { %p11135_p0 = pnand %p11134_p13, %p11128_p10 }
  0x23   :  { %11138 = shalt.err (!%p11135_p0)
}
  0x24   :  { %100 = dma.hbm_to_vmem [thread:$0]  %s13442_s8, 512, %s95_s16, [#allocation12], %s11273_s26, %s11273_s26, %s11274_s27  }
  0x25   :  { %s11147_s5 = scalar_lea.vmem %s29_s18, 1024  ;;  %p11152_p2 = scmp.lt.s32.totalorder %s29_s18, %s29_s18 }
  0x26   :  { %p11148_p1 = scmp.ne.s32.totalorder %s29_s18, %s11147_s5  ;;  %p11153_p3 = scmp.lt.s32.totalorder %s11147_s5, %s11147_s5 }
  0x28   :  { %p11154_p4 = por %p11153_p3, %p11152_p2 }
  0x2a   :  { %p11155_p5 = pnand %p11154_p4, %p11148_p1 }
  0x2c   :  { %11158 = shalt.err (!%p11155_p5)
}
  0x2d   :  { %34 = dma.hbm_to_vmem [thread:$0]  %s13434_s0, 1024, %s29_s18, [#allocation3], %s11273_s26, %s11273_s26, %s11274_s27  }
  0x2e   :  { %s11277_s23 = smov [#allocation7]   ;;  %s11278_s25 = smov [#allocation10]  }
  0x2f   :  { %s54_s24 = sshll.u32 %s11277_s23, 4  ;;  %s80_s28 = sshll.u32 %s11278_s25, 4  ;;  %s55_s24 = int_to_ptr.vmem [resolvable:$true] %s54_s24  ;;  %s81_s28 = int_to_ptr.vmem [resolvable:$true] %s80_s28 }
  0x30   :  { %s11167_s8 = scalar_lea.vmem %s55_s24, 4608  ;;  %p11172_p7 = scmp.lt.s32.totalorder %s55_s24, %s55_s24 }
  0x31   :  { %p11168_p6 = scmp.ne.s32.totalorder %s55_s24, %s11167_s8  ;;  %p11173_p8 = scmp.lt.s32.totalorder %s11167_s8, %s11167_s8 }
  0x33   :  { %p11174_p9 = por %p11173_p8, %p11172_p7 }
  0x35   :  { %p11175_p10 = pnand %p11174_p9, %p11168_p6 }
  0x37   :  { %11178 = shalt.err (!%p11175_p10)
}
  0x38   :  { %60 = dma.hbm_to_vmem [thread:$0]  %s13437_s3, 4608, %s55_s24, [#allocation6], %s11273_s26, %s11273_s26, %s11274_s27  }
  0x39   :  { %s11187_s0 = scalar_lea.vmem %s81_s28, 1536  ;;  %p11192_p12 = scmp.lt.s32.totalorder %s81_s28, %s81_s28 }
  0x3a   :  { %p11188_p11 = scmp.ne.s32.totalorder %s81_s28, %s11187_s0  ;;  %p11193_p13 = scmp.lt.s32.totalorder %s11187_s0, %s11187_s0 }
  0x3c   :  { %p11194_p0 = por %p11193_p13, %p11192_p12 }
  0x3e   :  { %p11195_p1 = pnand %p11194_p0, %p11188_p11 }
  0x40   :  { %11198 = shalt.err (!%p11195_p1)
}
  0x41   :  { %86 = dma.hbm_to_vmem [thread:$0]  %s13440_s6, 1536, %s81_s28, [#allocation9], %s11273_s26, %s11273_s26, %s11274_s27  }
  0x42   :  { %s11279_s15 = smov [#allocation13]   ;;  %s11280_s17 = smov [#allocation14]  }
  0x43   :  { %s108_s16 = sshll.u32 %s11279_s15, 4  ;;  %s120_s18 = sshll.u32 %s11280_s17, 4  ;;  %s109_s16 = int_to_ptr.vmem [resolvable:$true] %s108_s16  ;;  %s121_s18 = int_to_ptr.vmem [resolvable:$true] %s120_s18 }
  0x44   :  { %s11207_s3 = scalar_lea.vmem %s109_s16, 512  ;;  %p11212_p3 = scmp.lt.s32.totalorder %s109_s16, %s109_s16 }
  0x45   :  { %p11208_p2 = scmp.ne.s32.totalorder %s109_s16, %s11207_s3  ;;  %p11213_p4 = scmp.lt.s32.totalorder %s11207_s3, %s11207_s3 }
  0x47   :  { %p11214_p5 = por %p11213_p4, %p11212_p3 }
  0x49   :  { %p11215_p6 = pnand %p11214_p5, %p11208_p2 }
  0x4b   :  { %11218 = shalt.err (!%p11215_p6)
}
  0x4c   :  { %114 = dma.hbm_to_vmem [thread:$0]  %s13444_s10, 512, %s109_s16, [#allocation12], %s11273_s26, %s11273_s26, %s11274_s27  }
  0x4d   :  { %s11227_s6 = scalar_lea.vmem %s121_s18, 512  ;;  %p11232_p8 = scmp.lt.s32.totalorder %s121_s18, %s121_s18 }
  0x4e   :  { %p11228_p7 = scmp.ne.s32.totalorder %s121_s18, %s11227_s6  ;;  %p11233_p9 = scmp.lt.s32.totalorder %s11227_s6, %s11227_s6 }
  0x50   :  { %p11234_p10 = por %p11233_p9, %p11232_p8 }
  0x52   :  { %p11235_p11 = pnand %p11234_p10, %p11228_p7 }
  0x54   :  { %11238 = shalt.err (!%p11235_p11)
}
  0x55   :  { %126 = dma.hbm_to_vmem [thread:$0]  %s13445_s11, 512, %s121_s18, [#allocation15], %s11273_s26, %s11273_s26, %s11274_s27  }
  0x56   :  { %11259 = dma.done.wait [#allocation3], 1024  }
  0x57   :  { %11260 = vsyncadd [#allocation3], 4294966272 }
  0x58   :  { %11261 = dma.done.wait [#allocation6], 5632  }
  0x59   :  { %11262 = vsyncadd [#allocation6], 4294961664 }
  0x5a   :  { %11263 = dma.done.wait [#allocation9], 3072  }
  0x5b   :  { %11264 = vsyncadd [#allocation9], 4294964224 }
  0x5c   :  { %11265 = dma.done.wait [#allocation12], 1024  }
  0x5d   :  { %11266 = vsyncadd [#allocation12], 4294966272 }
  0x5e   :  { %11267 = dma.done.wait [#allocation15], 512  }
  0x5f   :  { %11268 = vsyncadd [#allocation15], 4294966784  ;;  %vm185_vm0 = vcmask 261120   ;;  %v174_v0 = vld [vmem:[#allocation7 + $0x38] sm:$0xff]  ;;  %v173_v1 = vld [vmem:[#allocation7 + $0x30] sm:$0xff]  ;;  %v11281_v20 = vmov 0.0   ;;  %v181_v21 = vlaneseq }
  0x60   :  { %9829 = vmatprep.subr.mxu1 %v174_v0  ;;  %v151_v2 = vld [vmem:[#allocation2] sm:$0xff]  ;;  %v172_v3 = vld [vmem:[#allocation7 + $0x28] sm:$0xff]  ;;  %v170_v4 = vld [vmem:[#allocation7 + $0x18] sm:$0xff]  ;;  %vm11282_vm1 = vmmov 0   ;;  %vm8813_vm3 = vcmask 57344   ;;  %vm8902_vm11 = vcmask 64512  }
  0x61   :  { %9830 = vmatpush3.msra.mxu1 %v174_v0  ;;  %9837 = vmatprep.mubr.msk.f32.mxu1 %vm185_vm0, %v151_v2  ;;  %v169_v5 = vld [vmem:[#allocation7 + $0x10] sm:$0xff]  ;;  %v171_v6 = vld [vmem:[#allocation7 + $0x20] sm:$0xff]  ;;  %v168_v7 = vld [vmem:[#allocation7 + $0x8] sm:$0xff]  ;;  %v11466_v22 = vshrl.u32 %v181_v21, 7 }
  0x62   :  { %9831 = vmatprep.subr.mxu1 %v173_v1  ;;  %9809 = vmatprep.subr.mxu0 %v170_v4  ;;  %v11401_v8 = vld [vmem:[#allocation2 + $0x8] sm:$0xff]  ;;  %v167_v9 = vld [vmem:[#allocation7] sm:$0xff]  ;;  %v11403_v10 = vld [vmem:[#allocation2 + $0x10] sm:$0xff] }
  0x63   :  { %9832 = vmatpush3.msra.mxu1 %v173_v1  ;;  %9810 = vmatpush3.msra.mxu0 %v170_v4  ;;  %v178_v11 = vld [vmem:[#allocation7 + $0x58] sm:$0xff]  ;;  %v11414_v13 = vld [vmem:[#allocation2 + $0x20] sm:$0xff]  ;;  %v177_v14 = vld [vmem:[#allocation7 + $0x50] sm:$0xff]  ;;  %v11469_v23 = vsub.s32 1, %v11466_v22  ;;  %v11494_v36 = vsub.s32 0, %v11466_v22 }
  0x64   :  { %9833 = vmatprep.subr.mxu1 %v172_v3  ;;  %9811 = vmatprep.subr.mxu0 %v169_v5  ;;  %v11408_v12 = vld [vmem:[#allocation2 + $0x18] sm:$0xff]  ;;  %v11422_v15 = vld [vmem:[#allocation2 + $0x28] sm:$0xff]  ;;  %v11426_v17 = vld [vmem:[#allocation2 + $0x30] sm:$0xff] }
  0x65   :  { %9834 = vmatpush3.msra.mxu1 %v172_v3  ;;  %9812 = vmatpush3.msra.mxu0 %v169_v5  ;;  %v176_v16 = vld [vmem:[#allocation7 + $0x48] sm:$0xff]  ;;  %v11434_v18 = vld [vmem:[#allocation2 + $0x38] sm:$0xff]  ;;  %v175_v19 = vld [vmem:[#allocation7 + $0x40] sm:$0xff] }
  0x66   :  { %9835 = vmatprep.subr.mxu1 %v171_v6  ;;  %9813 = vmatprep.subr.mxu0 %v168_v7  ;;  %v11474_v24 = vld [vmem:[%s13441_s7] sm:$0xff]  ;;  %v11480_v26 = vld [vmem:[#allocation13 + $0x18] sm:$0xff]  ;;  %v11484_v31 = vld [vmem:[#allocation13 + $0x10] sm:$0xff] }
  0x67   :  { %9836 = vmatpush3.msra.mxu1 %v171_v6  ;;  %9814 = vmatpush3.msra.mxu0 %v168_v7  ;;  %v11478_v25 = vrot.slane %v11474_v24, %v11469_v23  ;;  %v11491_v35 = vld [vmem:[#allocation13 + $0x8] sm:$0xff]  ;;  %v11502_v40 = vld [vmem:[#allocation13] sm:$0xff]  ;;  %v11507_v41 = vrot.slane %v11474_v24, %v11494_v36 }
  0x68   :  { %9838 = vmatmul.mubr.msk.f32.vlgmr.msra.gmra.mxu1 %vm185_vm0, %v11401_v8  ;;  %9815 = vmatprep.subr.mxu0 %v167_v9 }
  0x69   :  { %9816 = vmatpush3.msra.mxu0 %v167_v9  ;;  %9817 = vmatprep.mubr.msk.f32.mxu0 %vm185_vm0, %v151_v2 }
  0x6a   :  { %9818 = vmatmul.mubr.msk.f32.vlgmr.msra.gmra.mxu0 %vm185_vm0, %v11401_v8  ;;  %9840 = vmatprep.mubr.msk.f32.mxu1 %vm185_vm0, %v11403_v10 }
  0x6b   :  { %9820 = vmatprep.mubr.msk.f32.mxu0 %vm185_vm0, %v11403_v10  ;;  %9849 = vmatprep.subr.mxu0 %v178_v11 }
  0x6c   :  { %9841 = vmatmul.mubr.msk.f32.gmra.mxu1 %vm185_vm0, %v11408_v12  ;;  %9850 = vmatpush3.msra.mxu0 %v178_v11 }
  0x6d   :  { %9843 = vmatprep.mubr.msk.f32.mxu1 %vm185_vm0, %v11414_v13  ;;  %9851 = vmatprep.subr.mxu0 %v177_v14 }
  0x6e   :  { %9821 = vmatmul.mubr.msk.f32.gmra.mxu0 %vm185_vm0, %v11408_v12  ;;  %9869 = vmatprep.subr.mxu1 %v11281_v20 }
  0x6f   :  { %9823 = vmatprep.mubr.msk.f32.mxu0 %vm185_vm0, %v11414_v13  ;;  %9852 = vmatpush3.msra.mxu0 %v177_v14 }
  0x70   :  { %9844 = vmatmul.mubr.msk.f32.gmra.mxu1 %vm185_vm0, %v11422_v15  ;;  %9853 = vmatprep.subr.mxu0 %v176_v16 }
  0x71   :  { %9846 = vmatprep.mubr.msk.f32.mxu1 %vm185_vm0, %v11426_v17  ;;  %9854 = vmatpush3.msra.mxu0 %v176_v16 }
  0x72   :  { %9824 = vmatmul.mubr.msk.f32.gmra.mxu0 %vm185_vm0, %v11422_v15  ;;  %9855 = vmatprep.subr.mxu0 %v175_v19 }
  0x73   :  { %9826 = vmatprep.mubr.msk.f32.mxu0 %vm185_vm0, %v11426_v17  ;;  %9856 = vmatpush3.msra.mxu0 %v175_v19 }
  0x74   :  { %9847 = vmatmul.mubr.msk.f32.gmra.mxu1 %vm185_vm0, %v11434_v18  ;;  %9880 = vmatprep.subr.mxu0 %v11281_v20 }
  0x75   :  { %9877 = vmatprep.mubr.msk.f32.mxu1 %vm11282_vm1, %v11281_v20 }
  0x76   :  { %9827 = vmatmul.mubr.msk.f32.gmra.mxu0 %vm185_vm0, %v11434_v18 }
  0x77   :  { %9857 = vmatprep.mubr.msk.f32.mxu0 %vm185_vm0, %v151_v2 }
  0x7a   :  { %9858 = vmatmul.mubr.msk.f32.vlgmr.msra.gmra.mxu0 %vm185_vm0, %v11401_v8 }
  0x7b   :  { %9860 = vmatprep.mubr.msk.f32.mxu0 %vm185_vm0, %v11403_v10 }
  0x7e   :  { %9861 = vmatmul.mubr.msk.f32.gmra.mxu0 %vm185_vm0, %v11408_v12 }
  0x7f   :  { %9863 = vmatprep.mubr.msk.f32.mxu0 %vm185_vm0, %v11414_v13 }
  0x82   :  { %9864 = vmatmul.mubr.msk.f32.gmra.mxu0 %vm185_vm0, %v11422_v15 }
  0x83   :  { %9866 = vmatprep.mubr.msk.f32.mxu0 %vm185_vm0, %v11426_v17 }
  0x86   :  { %9867 = vmatmul.mubr.msk.f32.gmra.mxu0 %vm185_vm0, %v11434_v18 }
  0x87   :  { %9888 = vmatprep.mubr.msk.f32.mxu0 %vm11282_vm1, %v11281_v20 }
 0x128   :  { %v9839_v27 = vpop.f32.mrf.mxu1 }
 0x129   :  { %v391_v28 = vadd.f32 %v9839_v27, %v11478_v25 }
 0x12a   :  { %v385_v29 = vpop.f32.mrf.mxu1  ;;  %v9819_v45 = vpop.f32.mrf.mxu0 }
 0x12b   :  { %v540_v30 = vmul.f32 %v391_v28, %v11480_v26  ;;  %v386_v32 = vadd.f32 %v385_v29, %v11478_v25  ;;  %v539_v34 = vmul.f32 %v391_v28, %v11484_v31  ;;  %v538_v39 = vmul.f32 %v391_v28, %v11491_v35 }
 0x12c   :  { %v9842_v37 = vpop.f32.mrf.mxu1  ;;  %v537_v46 = vmul.f32 %v391_v28, %v11502_v40  ;;  %v282_v47 = vadd.f32 %v9819_v45, %v11507_v41  ;;  %v276_v51 = vpop.f32.mrf.mxu0  ;;  %v11615_v45 = vsub.s32 2, %v11466_v22 }
 0x12d   :  { %9881 = vmatpush3.xpose.msk.msra.mxu0 %vm185_vm0, %v540_v30  ;;  %v536_v33 = vmul.f32 %v386_v32, %v11480_v26  ;;  %v535_v38 = vmul.f32 %v386_v32, %v11484_v31  ;;  %v401_v42 = vadd.f32 %v9842_v37, %v11478_v25  ;;  %v534_v44 = vmul.f32 %v386_v32, %v11491_v35 }
 0x12e   :  { %9882 = vmatprep.subr.mxu0 %v11281_v20  ;;  %v395_v43 = vpop.f32.mrf.mxu1  ;;  %v533_v50 = vmul.f32 %v386_v32, %v11502_v40  ;;  %v277_v54 = vadd.f32 %v276_v51, %v11507_v41  ;;  %v9822_v58 = vpop.f32.mrf.mxu0 }
 0x12f   :  { %9870 = vmatpush3.xpose.msk.msra.mxu1 %vm185_vm0, %v536_v33  ;;  %v396_v48 = vadd.f32 %v395_v43, %v11478_v25  ;;  %v548_v49 = vmul.f32 %v401_v42, %v11480_v26  ;;  %v547_v53 = vmul.f32 %v401_v42, %v11484_v31  ;;  %v546_v57 = vmul.f32 %v401_v42, %v11491_v35 }
 0x130   :  { %9871 = vmatprep.subr.mxu1 %v11281_v20  ;;  %v9845_v56 = vpop.f32.mrf.mxu1  ;;  %v545_v62 = vmul.f32 %v401_v42, %v11502_v40  ;;  %v292_v63 = vadd.f32 %v9822_v58, %v11507_v41  ;;  %v286_v1 = vpop.f32.mrf.mxu0 }
 0x131   :  { %9883 = vmatpush3.xpose.msk.msra.mxu0 %vm185_vm0, %v539_v34  ;;  %v544_v52 = vmul.f32 %v396_v48, %v11480_v26  ;;  %v543_v55 = vmul.f32 %v396_v48, %v11484_v31  ;;  %v411_v59 = vadd.f32 %v9845_v56, %v11478_v25  ;;  %v542_v61 = vmul.f32 %v396_v48, %v11491_v35 }
 0x132   :  { %9884 = vmatprep.subr.mxu0 %v11281_v20  ;;  %v405_v60 = vpop.f32.mrf.mxu1  ;;  %v541_v3 = vmul.f32 %v396_v48, %v11502_v40  ;;  %v287_v4 = vadd.f32 %v286_v1, %v11507_v41  ;;  %v9825_v16 = vpop.f32.mrf.mxu0 }
 0x133   :  { %9872 = vmatpush3.xpose.msk.msra.mxu1 %vm185_vm0, %v535_v38  ;;  %v406_v0 = vadd.f32 %v405_v60, %v11478_v25  ;;  %v556_v2 = vmul.f32 %v411_v59, %v11480_v26  ;;  %v555_v6 = vmul.f32 %v411_v59, %v11484_v31  ;;  %v554_v9 = vmul.f32 %v411_v59, %v11491_v35 }
 0x134   :  { %9873 = vmatprep.subr.mxu1 %v11281_v20  ;;  %v9848_v11 = vpop.f32.mrf.mxu1  ;;  %v553_v28 = vmul.f32 %v411_v59, %v11502_v40  ;;  %v302_v29 = vadd.f32 %v9825_v16, %v11507_v41  ;;  %v296_v32 = vpop.f32.mrf.mxu0 }
 0x135   :  { %9885 = vmatpush3.xpose.msk.msra.mxu0 %vm185_vm0, %v538_v39  ;;  %v552_v5 = vmul.f32 %v406_v0, %v11480_v26  ;;  %v551_v7 = vmul.f32 %v406_v0, %v11484_v31  ;;  %v550_v14 = vmul.f32 %v406_v0, %v11491_v35  ;;  %v421_v19 = vadd.f32 %v9848_v11, %v11478_v25 }
 0x136   :  { %9886 = vmatprep.subr.mxu0 %v11281_v20  ;;  %v415_v27 = vpop.f32.mrf.mxu1  ;;  %v549_v34 = vmul.f32 %v406_v0, %v11502_v40  ;;  %v297_v37 = vadd.f32 %v296_v32, %v11507_v41  ;;  %v165_v32 = vld [vmem:[#allocation14 + $0x10] sm:$0xff] }
 0x137   :  { %9874 = vmatpush3.xpose.msk.msra.mxu1 %vm185_vm0, %v534_v44  ;;  %v416_v30 = vadd.f32 %v415_v27, %v11478_v25  ;;  %v564_v33 = vmul.f32 %v421_v19, %v11480_v26  ;;  %v563_v25 = vmul.f32 %v421_v19, %v11484_v31  ;;  %v562_v42 = vmul.f32 %v421_v19, %v11491_v35  ;;  %v9828_v44 = vpop.f32.mrf.mxu0 }
 0x138   :  { %9875 = vmatprep.subr.mxu1 %v11281_v20 }
 0x139   :  { %9887 = vmatpush3.xpose.msk.msra.mxu0 %vm185_vm0, %v537_v46  ;;  %v560_v38 = vmul.f32 %v416_v30, %v11480_v26  ;;  %v559_v39 = vmul.f32 %v416_v30, %v11484_v31  ;;  %v558_v43 = vmul.f32 %v416_v30, %v11491_v35  ;;  %v561_v46 = vmul.f32 %v421_v19, %v11502_v40  ;;  %v306_v48 = vpop.f32.mrf.mxu0 }
 0x13a   :  { %9902 = vmatprep.subr.mxu0 %v11281_v20 }
 0x13b   :  { %9876 = vmatpush3.xpose.msk.msra.mxu1 %vm185_vm0, %v533_v50  ;;  %v557_v50 = vmul.f32 %v416_v30, %v11502_v40  ;;  %v9859_v51 = vpop.f32.mrf.mxu0  ;;  %v166_v30 = vld [vmem:[#allocation14 + $0x18] sm:$0xff] }
 0x13c   :  { %9889 = vmatmul.mubr.msk.f32.vlgmr.msra.gmra.mxu0 %vm185_vm0, %v282_v47  ;;  %9891 = vmatprep.subr.mxu1 %v11281_v20  ;;  %v312_v47 = vadd.f32 %v9828_v44, %v11507_v41 }
 0x13d   :  { %9903 = vmatpush3.xpose.msk.msra.mxu0 %vm185_vm0, %v548_v49  ;;  %9910 = vmatprep.mubr.msk.f32.mxu0 %vm11282_vm1, %v11281_v20  ;;  %v11625_v49 = vrot.slane %v11474_v24, %v11615_v45 }
 0x13e   :  { %9904 = vmatprep.subr.mxu0 %v11281_v20  ;;  %9878 = vmatmul.mubr.msk.f32.vlgmr.msra.gmra.mxu1 %vm185_vm0, %v277_v54  ;;  %v494_v54 = vpop.f32.mrf.mxu0 }
 0x13f   :  { %9892 = vmatpush3.xpose.msk.msra.mxu1 %vm185_vm0, %v544_v52  ;;  %9899 = vmatprep.mubr.msk.f32.mxu1 %vm11282_vm1, %v11281_v20  ;;  %v307_v52 = vadd.f32 %v306_v48, %v11507_v41 }
 0x140   :  { %9893 = vmatprep.subr.mxu1 %v11281_v20  ;;  %v9862_v56 = vpop.f32.mrf.mxu0 }
 0x141   :  { %9905 = vmatpush3.xpose.msk.msra.mxu0 %vm185_vm0, %v547_v53  ;;  %v11631_v53 = vadd.f32 %v9859_v51, %v11625_v49 }
 0x142   :  { %9906 = vmatprep.subr.mxu0 %v11281_v20  ;;  %v11644_v59 = vpop.f32.mrf.mxu0 }
 0x143   :  { %9894 = vmatpush3.xpose.msk.msra.mxu1 %vm185_vm0, %v543_v55  ;;  %v495_v55 = vadd.f32 %v494_v54, %v11625_v49 }
 0x144   :  { %9895 = vmatprep.subr.mxu1 %v11281_v20 }
 0x145   :  { %9907 = vmatpush3.xpose.msk.msra.mxu0 %vm185_vm0, %v546_v57  ;;  %v11640_v57 = vadd.f32 %v9862_v56, %v11625_v49  ;;  %v568_v41 = vmul.f32 %v495_v55, %v11480_v26  ;;  %v567_v58 = vmul.f32 %v495_v55, %v11484_v31  ;;  %v566_v60 = vmul.f32 %v495_v55, %v11491_v35 }
 0x146   :  { %9908 = vmatprep.subr.mxu0 %v11281_v20 }
 0x147   :  { %9896 = vmatpush3.xpose.msk.msra.mxu1 %vm185_vm0, %v542_v61  ;;  %v9865_v61 = vpop.f32.mrf.mxu0 }
 0x148   :  { %9897 = vmatprep.subr.mxu1 %v11281_v20 }
 0x149   :  { %9909 = vmatpush3.xpose.msk.msra.mxu0 %vm185_vm0, %v545_v62  ;;  %v11649_v62 = vadd.f32 %v9865_v61, %v11625_v49  ;;  %v11653_v0 = vpop.f32.mrf.mxu0 }
 0x14a   :  { %9924 = vmatprep.subr.mxu0 %v11281_v20 }
 0x14b   :  { %9898 = vmatpush3.xpose.msk.msra.mxu1 %vm185_vm0, %v541_v3  ;;  %v9868_v1 = vpop.f32.mrf.mxu0 }
 0x14c   :  { %9911 = vmatmul.mubr.msk.f32.vlgmr.msra.gmra.mxu0 %vm185_vm0, %v292_v63  ;;  %9913 = vmatprep.subr.mxu1 %v11281_v20  ;;  %v565_v63 = vmul.f32 %v495_v55, %v11502_v40 }
 0x14d   :  { %9925 = vmatpush3.xpose.msk.msra.mxu0 %vm185_vm0, %v556_v2  ;;  %9932 = vmatprep.mubr.msk.f32.mxu0 %vm11282_vm1, %v11281_v20  ;;  %v11657_v2 = vadd.f32 %v9868_v1, %v11625_v49  ;;  %v11660_v3 = vpop.f32.mrf.mxu0 }
 0x14e   :  { %9926 = vmatprep.subr.mxu0 %v11281_v20  ;;  %9900 = vmatmul.mubr.msk.f32.vlgmr.msra.gmra.mxu1 %vm185_vm0, %v287_v4 }
 0x14f   :  { %9914 = vmatpush3.xpose.msk.msra.mxu1 %vm185_vm0, %v552_v5  ;;  %9921 = vmatprep.mubr.msk.f32.mxu1 %vm11282_vm1, %v11281_v20 }
 0x150   :  { %9915 = vmatprep.subr.mxu1 %v11281_v20 }
 0x151   :  { %9927 = vmatpush3.xpose.msk.msra.mxu0 %vm185_vm0, %v555_v6 }
 0x152   :  { %9928 = vmatprep.subr.mxu0 %v11281_v20 }
 0x153   :  { %9916 = vmatpush3.xpose.msk.msra.mxu1 %vm185_vm0, %v551_v7 }
 0x154   :  { %9917 = vmatprep.subr.mxu1 %v11281_v20 }
 0x155   :  { %9929 = vmatpush3.xpose.msk.msra.mxu0 %vm185_vm0, %v554_v9 }
 0x156   :  { %9930 = vmatprep.subr.mxu0 %v11281_v20 }
 0x157   :  { %9918 = vmatpush3.xpose.msk.msra.mxu1 %vm185_vm0, %v550_v14 }
 0x158   :  { %9919 = vmatprep.subr.mxu1 %v11281_v20 }
 0x159   :  { %9931 = vmatpush3.xpose.msk.msra.mxu0 %vm185_vm0, %v553_v28 }
 0x15a   :  { %9946 = vmatprep.subr.mxu0 %v11281_v20 }
 0x15b   :  { %9920 = vmatpush3.xpose.msk.msra.mxu1 %vm185_vm0, %v549_v34 }
 0x15c   :  { %9933 = vmatmul.mubr.msk.f32.vlgmr.msra.gmra.mxu0 %vm185_vm0, %v302_v29  ;;  %9935 = vmatprep.subr.mxu1 %v11281_v20 }
 0x15d   :  { %9947 = vmatpush3.xpose.msk.msra.mxu0 %vm185_vm0, %v564_v33  ;;  %9954 = vmatprep.mubr.msk.f32.mxu0 %vm11282_vm1, %v11281_v20  ;;  %v164_v33 = vld [vmem:[#allocation14 + $0x8] sm:$0xff] }
 0x15e   :  { %9948 = vmatprep.subr.mxu0 %v11281_v20  ;;  %9922 = vmatmul.mubr.msk.f32.vlgmr.msra.gmra.mxu1 %vm185_vm0, %v297_v37 }
 0x15f   :  { %9936 = vmatpush3.xpose.msk.msra.mxu1 %vm185_vm0, %v560_v38  ;;  %9943 = vmatprep.mubr.msk.f32.mxu1 %vm11282_vm1, %v11281_v20  ;;  %v163_v38 = vld [vmem:[#allocation14] sm:$0xff] }
 0x160   :  { %9937 = vmatprep.subr.mxu1 %v11281_v20 }
 0x161   :  { %9949 = vmatpush3.xpose.msk.msra.mxu0 %vm185_vm0, %v563_v25 }
 0x162   :  { %9950 = vmatprep.subr.mxu0 %v11281_v20 }
 0x163   :  { %9938 = vmatpush3.xpose.msk.msra.mxu1 %vm185_vm0, %v559_v39 }
 0x164   :  { %9939 = vmatprep.subr.mxu1 %v11281_v20 }
 0x165   :  { %9951 = vmatpush3.xpose.msk.msra.mxu0 %vm185_vm0, %v562_v42 }
 0x166   :  { %9952 = vmatprep.subr.mxu0 %v11281_v20 }
 0x167   :  { %9940 = vmatpush3.xpose.msk.msra.mxu1 %vm185_vm0, %v558_v43 }
 0x168   :  { %9941 = vmatprep.subr.mxu1 %v11281_v20 }
 0x169   :  { %9953 = vmatpush3.xpose.msk.msra.mxu0 %vm185_vm0, %v561_v46 }
 0x16a   :  { %9977 = vmatprep.subr.mxu0 %v11281_v20 }
 0x16b   :  { %9942 = vmatpush3.xpose.msk.msra.mxu1 %vm185_vm0, %v557_v50 }
 0x16c   :  { %9955 = vmatmul.mubr.msk.f32.vlgmr.msra.gmra.mxu0 %vm185_vm0, %v312_v47  ;;  %9957 = vmatprep.subr.mxu1 %v166_v30 }
 0x16d   :  { %9985 = vmatprep.mubr.msk.f32.mxu0 %vm11282_vm1, %v11281_v20  ;;  %9978 = vmatpush3.msra.mxu0 %v568_v41 }
 0x16e   :  { %9944 = vmatmul.mubr.msk.f32.vlgmr.msra.gmra.mxu1 %vm185_vm0, %v307_v52  ;;  %9979 = vmatprep.subr.mxu0 %v11281_v20 }
 0x16f   :  { %9980 = vmatpush3.msra.mxu0 %v567_v58  ;;  %9958 = vmatpush3.msra.mxu1 %v166_v30 }
 0x170   :  { %9981 = vmatprep.subr.mxu0 %v11281_v20  ;;  %9959 = vmatprep.subr.mxu1 %v165_v32 }
 0x171   :  { %9982 = vmatpush3.msra.mxu0 %v566_v60  ;;  %9960 = vmatpush3.msra.mxu1 %v165_v32 }
 0x172   :  { %9983 = vmatprep.subr.mxu0 %v11281_v20  ;;  %9961 = vmatprep.subr.mxu1 %v164_v33 }
 0x173   :  { %9984 = vmatpush3.msra.mxu0 %v565_v63  ;;  %9962 = vmatpush3.msra.mxu1 %v164_v33 }
 0x174   :  { %9999 = vmatprep.subr.mxu0 %v11281_v20  ;;  %9963 = vmatprep.subr.mxu1 %v163_v38 }
 0x175   :  { %9964 = vmatpush3.msra.mxu1 %v163_v38 }
 0x176   :  { %9988 = vmatprep.subr.mxu1 %v11281_v20 }
 0x1fc   :  { %v763_v4 = vpop.f32.mrf.mxu0 }
 0x1fd   :  { %v1280_v11 = vsel %vm185_vm0, %v763_v4, -inf }
 0x1fe   :  { %v9890_v5 = vpop.f32.mrf.mxu0  ;;  %v678_v6 = vpop.f32.mrf.mxu1 }
 0x1ff   :  { %v1277_v7 = vsel %vm185_vm0, %v678_v6, -inf }
 0x200   :  { %1278 = vmax.xlane.f32.xlu0 %v1277_v7  ;;  %v9879_v9 = vpop.f32.mrf.mxu1 }
 0x204   :  { %1281 = vmax.xlane.f32.xlu0 %v1280_v11 }
 0x20c   :  { %v933_v14 = vpop.f32.mrf.mxu0 }
 0x20d   :  { %v1286_v29 = vsel %vm185_vm0, %v933_v14, -inf }
 0x20e   :  { %v9912_v16 = vpop.f32.mrf.mxu0  ;;  %v848_v19 = vpop.f32.mrf.mxu1 }
 0x20f   :  { %v1283_v27 = vsel %vm185_vm0, %v848_v19, -inf  ;;  %v570_v16 = vmul.f32 %v11631_v53, %v11491_v35 }
 0x210   :  { %1284 = vmax.xlane.f32.xlu1 %v1283_v27  ;;  %v9901_v28 = vpop.f32.mrf.mxu1 }
 0x214   :  { %1287 = vmax.xlane.f32.xlu1 %v1286_v29 }
 0x21c   :  { %v1103_v34 = vpop.f32.mrf.mxu0 }
 0x21d   :  { %v1292_v37 = vsel %vm185_vm0, %v1103_v34, -inf }
 0x21e   :  { %1293 = vmax.xlane.f32.xlu1 %v1292_v37  ;;  %v9934_v25 = vpop.f32.mrf.mxu0  ;;  %v1018_v39 = vpop.f32.mrf.mxu1 }
 0x21f   :  { %v1289_v42 = vsel %vm185_vm0, %v1018_v39, -inf }
 0x220   :  { %1290 = vmax.xlane.f32.xlu0 %v1289_v42  ;;  %v9923_v43 = vpop.f32.mrf.mxu1 }
 0x22c   :  { %v1273_v44 = vpop.f32.mrf.mxu0 }
 0x22d   :  { %v1298_v46 = vsel %vm185_vm0, %v1273_v44, -inf }
 0x22e   :  { %1299 = vmax.xlane.f32.xlu1 %v1298_v46  ;;  %v9956_v47 = vpop.f32.mrf.mxu0  ;;  %v1188_v48 = vpop.f32.mrf.mxu1 }
 0x22f   :  { %v1295_v50 = vsel %vm185_vm0, %v1188_v48, -inf }
 0x230   :  { %1296 = vmax.xlane.f32.xlu0 %v1295_v50  ;;  %v9945_v51 = vpop.f32.mrf.mxu1 }
 0x289   :  { %v1279_v52 = vpop.xlane.xlu0 %1278 }
 0x28a   :  { %v1301_v54 = vsub.f32 %v678_v6, %v1279_v52  ;;  %v572_v6 = vmul.f32 %v11631_v53, %v11480_v26  ;;  %v505_v52 = vadd.f32 %v11644_v59, %v11625_v49 }
 0x28c   :  { %v1309_v55 = vmul.f32 1.442695, %v1301_v54  ;;  %v575_v59 = vmul.f32 %v505_v52, %v11484_v31 }
 0x28d   :  { %v1282_v56 = vpop.xlane.xlu0 %1281 }
 0x28e   :  { %10835 = vpow2.f32 %v1309_v55  ;;  %v1302_v41 = vsub.f32 %v763_v4, %v1282_v56  ;;  %v571_v4 = vmul.f32 %v11631_v53, %v11484_v31 }
 0x290   :  { %v1311_v58 = vmul.f32 1.442695, %v1302_v41  ;;  %v580_v41 = vmul.f32 %v11640_v57, %v11480_v26 }
 0x292   :  { %10837 = vpow2.f32 %v1311_v58 }
 0x299   :  { %v1285_v60 = vpop.xlane.xlu1 %1284 }
 0x29a   :  { %v1303_v61 = vsub.f32 %v848_v19, %v1285_v60 }
 0x29b   :  { %v11671_v63 = vpop.eup %10835 }
 0x29c   :  { %v1313_v1 = vmul.f32 1.442695, %v1303_v61  ;;  %9965 = vmatprep.mubr.msk.f32.mxu1 %vm185_vm0, %v11671_v63  ;;  %v576_v61 = vmul.f32 %v505_v52, %v11480_v26 }
 0x29d   :  { %v1288_v5 = vpop.xlane.xlu1 %1287 }
 0x29e   :  { %10839 = vpow2.f32 %v1313_v1  ;;  %v1304_v7 = vsub.f32 %v933_v14, %v1288_v5  ;;  %v569_v14 = vmul.f32 %v11631_v53, %v11502_v40  ;;  %v579_v1 = vmul.f32 %v11640_v57, %v11484_v31 }
 0x29f   :  { %v10838_v9 = vpop.eup %10837  ;;  %v574_v5 = vmul.f32 %v505_v52, %v11491_v35 }
 0x2a0   :  { %v1315_v11 = vmul.f32 1.442695, %v1304_v7  ;;  %9966 = vmatmul.mubr.msk.f32.vlgmr.msra.gmra.mxu1 %vm185_vm0, %v10838_v9  ;;  %v577_v7 = vmul.f32 %v11640_v57, %v11502_v40 }
 0x2a1   :  { %9989 = vmatpush3.msra.mxu1 %v572_v6 }
 0x2a2   :  { %10841 = vpow2.f32 %v1315_v11  ;;  %9990 = vmatprep.subr.mxu1 %v11281_v20  ;;  %v515_v11 = vadd.f32 %v11653_v0, %v11625_v49 }
 0x2a3   :  { %9991 = vmatpush3.msra.mxu1 %v571_v4 }
 0x2a4   :  { %9992 = vmatprep.subr.mxu1 %v11281_v20  ;;  %v583_v0 = vmul.f32 %v515_v11, %v11484_v31 }
 0x2a5   :  { %9993 = vmatpush3.msra.mxu1 %v570_v16 }
 0x2a6   :  { %9994 = vmatprep.subr.mxu1 %v11281_v20 }
 0x2a7   :  { %v1294_v19 = vpop.xlane.xlu1 %1293  ;;  %9995 = vmatpush3.msra.mxu1 %v569_v14 }
 0x2a8   :  { %v1306_v27 = vsub.f32 %v1103_v34, %v1294_v19  ;;  %10010 = vmatprep.subr.mxu1 %v11281_v20  ;;  %v588_v19 = vmul.f32 %v11649_v62, %v11480_v26 }
 0x2a9   :  { %v1291_v28 = vpop.xlane.xlu0 %1290 }
 0x2aa   :  { %v1305_v29 = vsub.f32 %v1018_v39, %v1291_v28  ;;  %v1319_v32 = vmul.f32 1.442695, %v1306_v27  ;;  %v584_v28 = vmul.f32 %v515_v11, %v11480_v26 }
 0x2ab   :  { %v11688_v30 = vpop.eup %10839 }
 0x2ac   :  { %v1317_v33 = vmul.f32 1.442695, %v1305_v29  ;;  %9968 = vmatprep.mubr.msk.f32.mxu1 %vm185_vm0, %v11688_v30  ;;  %v587_v29 = vmul.f32 %v11649_v62, %v11484_v31 }
 0x2ae   :  { %10843 = vpow2.f32 %v1317_v33  ;;  %v585_v33 = vmul.f32 %v11649_v62, %v11502_v40 }
 0x2af   :  { %v11692_v37 = vpop.eup %10841  ;;  %10845 = vpow2.f32 %v1319_v32  ;;  %v582_v32 = vmul.f32 %v515_v11, %v11491_v35 }
 0x2b0   :  { %9969 = vmatmul.mubr.msk.f32.gmra.mxu1 %vm185_vm0, %v11692_v37 }
 0x2b7   :  { %v1300_v53 = vpop.xlane.xlu1 %1299 }
 0x2b8   :  { %v1308_v34 = vsub.f32 %v1273_v44, %v1300_v53 }
 0x2b9   :  { %v1297_v38 = vpop.xlane.xlu0 %1296 }
 0x2ba   :  { %v1307_v25 = vsub.f32 %v1188_v48, %v1297_v38  ;;  %v1323_v39 = vmul.f32 1.442695, %v1308_v34 }
 0x2bb   :  { %v11696_v42 = vpop.eup %10843 }
 0x2bc   :  { %v11698_v43 = vpop.eup %10845  ;;  %v1321_v46 = vmul.f32 1.442695, %v1307_v25  ;;  %9971 = vmatprep.mubr.msk.f32.mxu1 %vm185_vm0, %v11696_v42 }
 0x2bd   :  { %9972 = vmatmul.mubr.msk.f32.gmra.mxu1 %vm185_vm0, %v11698_v43 }
 0x2be   :  { %10847 = vpow2.f32 %v1321_v46 }
 0x2bf   :  { %10849 = vpow2.f32 %v1323_v39  ;;  %v596_v39 = vmul.f32 %v11657_v2, %v11480_v26 }
 0x2cb   :  { %v11704_v47 = vpop.eup %10847 }
 0x2cc   :  { %v11706_v50 = vpop.eup %10849  ;;  %9974 = vmatprep.mubr.msk.f32.mxu1 %vm185_vm0, %v11704_v47 }
 0x2cd   :  { %9975 = vmatmul.mubr.msk.f32.gmra.mxu1 %vm185_vm0, %v11706_v50 }
 0x2ce   :  { %9996 = vmatprep.mubr.msk.f32.mxu1 %vm11282_vm1, %v11281_v20 }
 0x360   :  { %v9967_v44 = vpop.f32.mrf.mxu1 }
 0x361   :  { %10851 = vrcp.f32 %v9967_v44 }
 0x362   :  { %v1415_v48 = vpop.f32.mrf.mxu1 }
 0x363   :  { %10853 = vrcp.f32 %v1415_v48 }
 0x36e   :  { %v10852_v51 = vpop.eup %10851 }
 0x36f   :  { %v1457_v54 = vmul.f32 %v10852_v51, %v10838_v9  ;;  %v573_v9 = vmul.f32 %v505_v52, %v11502_v40  ;;  %v2057_v51 = vld [vmem:[%s13438_s4 + $0x18] sm:$0xff] }
 0x370   :  { %v10854_v55 = vpop.eup %10853  ;;  %v9970_v56 = vpop.f32.mrf.mxu1 }
 0x371   :  { %10855 = vrcp.f32 %v9970_v56  ;;  %9997 = vmatmul.mubr.msk.f32.vlgmr.msra.gmra.mxu1 %vm185_vm0, %v1457_v54  ;;  %v1455_v58 = vmul.f32 %v10854_v55, %v11671_v63  ;;  %v578_v63 = vmul.f32 %v11640_v57, %v11491_v35  ;;  %v2055_v55 = vld [vmem:[%s13438_s4 + $0x8] sm:$0xff] }
 0x372   :  { %10011 = vmatpush3.msra.mxu1 %v580_v41  ;;  %v1425_v60 = vpop.f32.mrf.mxu1  ;;  %10018 = vmatprep.mubr.msk.f32.mxu1 %vm11282_vm1, %v11281_v20 }
 0x373   :  { %10857 = vrcp.f32 %v1425_v60  ;;  %10012 = vmatprep.subr.mxu1 %v11281_v20  ;;  %9986 = vmatmul.mubr.msk.f32.vlgmr.msra.gmra.mxu0 %vm185_vm0, %v1455_v58 }
 0x374   :  { %10000 = vmatpush3.msra.mxu0 %v576_v61  ;;  %10013 = vmatpush3.msra.mxu1 %v579_v1 }
 0x375   :  { %10001 = vmatprep.subr.mxu0 %v11281_v20  ;;  %10014 = vmatprep.subr.mxu1 %v11281_v20 }
 0x376   :  { %10002 = vmatpush3.msra.mxu0 %v575_v59  ;;  %10015 = vmatpush3.msra.mxu1 %v578_v63 }
 0x377   :  { %10003 = vmatprep.subr.mxu0 %v11281_v20  ;;  %10016 = vmatprep.subr.mxu1 %v11281_v20 }
 0x378   :  { %10004 = vmatpush3.msra.mxu0 %v574_v5  ;;  %10017 = vmatpush3.msra.mxu1 %v577_v7 }
 0x379   :  { %10005 = vmatprep.subr.mxu0 %v11281_v20  ;;  %10032 = vmatprep.subr.mxu1 %v11281_v20 }
 0x37a   :  { %10006 = vmatpush3.msra.mxu0 %v573_v9  ;;  %10007 = vmatprep.mubr.msk.f32.mxu0 %vm11282_vm1, %v11281_v20 }
 0x37b   :  { %10021 = vmatprep.subr.mxu0 %v11281_v20 }
 0x37d   :  { %v9973_v6 = vpop.f32.mrf.mxu1 }
 0x37e   :  { %v10856_v57 = vpop.eup %10855  ;;  %10859 = vrcp.f32 %v9973_v6 }
 0x37f   :  { %v1435_v4 = vpop.f32.mrf.mxu1  ;;  %v1461_v16 = vmul.f32 %v10856_v57, %v11692_v37  ;;  %v581_v37 = vmul.f32 %v515_v11, %v11502_v40 }
 0x380   :  { %v10858_v14 = vpop.eup %10857  ;;  %10861 = vrcp.f32 %v1435_v4 }
 0x381   :  { %10019 = vmatmul.mubr.msk.f32.vlgmr.msra.gmra.mxu1 %vm185_vm0, %v1461_v16  ;;  %v1459_v27 = vmul.f32 %v10858_v14, %v11688_v30  ;;  %v586_v30 = vmul.f32 %v11649_v62, %v11491_v35  ;;  %v525_v62 = vadd.f32 %v11660_v3, %v11625_v49  ;;  %v595_v49 = vmul.f32 %v11657_v2, %v11484_v31 }
 0x382   :  { %10033 = vmatpush3.msra.mxu1 %v588_v19  ;;  %10040 = vmatprep.mubr.msk.f32.mxu1 %vm11282_vm1, %v11281_v20  ;;  %v11826_v16 = vsub.s32 3, %v11466_v22 }
 0x383   :  { %10034 = vmatprep.subr.mxu1 %v11281_v20  ;;  %10008 = vmatmul.mubr.msk.f32.vlgmr.msra.gmra.mxu0 %vm185_vm0, %v1459_v27  ;;  %v592_v48 = vmul.f32 %v525_v62, %v11480_v26  ;;  %v591_v3 = vmul.f32 %v525_v62, %v11484_v31  ;;  %v590_v26 = vmul.f32 %v525_v62, %v11491_v35 }
 0x384   :  { %10022 = vmatpush3.msra.mxu0 %v584_v28  ;;  %10035 = vmatpush3.msra.mxu1 %v587_v29  ;;  %v589_v31 = vmul.f32 %v525_v62, %v11502_v40  ;;  %v2061_v14 = vrot.slane %v11474_v24, %v11826_v16 }
 0x385   :  { %10023 = vmatprep.subr.mxu0 %v11281_v20  ;;  %10036 = vmatprep.subr.mxu1 %v11281_v20 }
 0x386   :  { %10024 = vmatpush3.msra.mxu0 %v583_v0  ;;  %10037 = vmatpush3.msra.mxu1 %v586_v30 }
 0x387   :  { %10025 = vmatprep.subr.mxu0 %v11281_v20  ;;  %10038 = vmatprep.subr.mxu1 %v11281_v20 }
 0x388   :  { %10026 = vmatpush3.msra.mxu0 %v582_v32  ;;  %10039 = vmatpush3.msra.mxu1 %v585_v33  ;;  %v11059_v32 = vld [vmem:[#allocation2] sm:$0xff] }
 0x389   :  { %10027 = vmatprep.subr.mxu0 %v11281_v20  ;;  %10054 = vmatprep.subr.mxu1 %v11281_v20 }
 0x38a   :  { %10028 = vmatpush3.msra.mxu0 %v581_v37  ;;  %10029 = vmatprep.mubr.msk.f32.mxu0 %vm11282_vm1, %v11281_v20 }
 0x38b   :  { %v10860_v53 = vpop.eup %10859  ;;  %10043 = vmatprep.subr.mxu0 %v11281_v20 }
 0x38c   :  { %v1465_v34 = vmul.f32 %v10860_v53, %v11698_v43  ;;  %v593_v43 = vmul.f32 %v11657_v2, %v11502_v40  ;;  %v2056_v40 = vld [vmem:[%s13438_s4 + $0x10] sm:$0xff] }
 0x38d   :  { %v10862_v38 = vpop.eup %10861  ;;  %v9976_v25 = vpop.f32.mrf.mxu1 }
 0x38e   :  { %10863 = vrcp.f32 %v9976_v25  ;;  %10041 = vmatmul.mubr.msk.f32.vlgmr.msra.gmra.mxu1 %vm185_vm0, %v1465_v34  ;;  %v1463_v46 = vmul.f32 %v10862_v38, %v11696_v42  ;;  %v594_v42 = vmul.f32 %v11657_v2, %v11491_v35 }
 0x38f   :  { %10055 = vmatpush3.msra.mxu1 %v596_v39  ;;  %v1445_v44 = vpop.f32.mrf.mxu1  ;;  %10062 = vmatprep.mubr.msk.f32.mxu1 %vm11282_vm1, %v11281_v20 }
 0x390   :  { %10865 = vrcp.f32 %v1445_v44  ;;  %10056 = vmatprep.subr.mxu1 %v11281_v20  ;;  %10030 = vmatmul.mubr.msk.f32.vlgmr.msra.gmra.mxu0 %vm185_vm0, %v1463_v46 }
 0x391   :  { %10044 = vmatpush3.msra.mxu0 %v592_v48  ;;  %10057 = vmatpush3.msra.mxu1 %v595_v49 }
 0x392   :  { %10045 = vmatprep.subr.mxu0 %v11281_v20  ;;  %10058 = vmatprep.subr.mxu1 %v11281_v20 }
 0x393   :  { %10046 = vmatpush3.msra.mxu0 %v591_v3  ;;  %10059 = vmatpush3.msra.mxu1 %v594_v42 }
 0x394   :  { %10047 = vmatprep.subr.mxu0 %v11281_v20  ;;  %10060 = vmatprep.subr.mxu1 %v11281_v20 }
 0x395   :  { %10048 = vmatpush3.msra.mxu0 %v590_v26  ;;  %10061 = vmatpush3.msra.mxu1 %v593_v43 }
 0x396   :  { %10049 = vmatprep.subr.mxu0 %v11281_v20  ;;  %10051 = vmatprep.mubr.msk.f32.mxu0 %vm11282_vm1, %v11281_v20 }
 0x397   :  { %10050 = vmatpush3.msra.mxu0 %v589_v31 }
 0x398   :  { %10065 = vmatprep.subr.mxu0 %v2057_v51 }
 0x39b   :  { %v10864_v35 = vpop.eup %10863 }
 0x39c   :  { %v1469_v2 = vmul.f32 %v10864_v35, %v11706_v50  ;;  %v2054_v50 = vld [vmem:[%s13438_s4] sm:$0xff] }
 0x39d   :  { %v10866_v52 = vpop.eup %10865 }
 0x39e   :  { %10063 = vmatmul.mubr.msk.f32.vlgmr.msra.gmra.mxu1 %vm185_vm0, %v1469_v2  ;;  %v1467_v54 = vmul.f32 %v10866_v52, %v11704_v47 }
 0x3a0   :  { %10052 = vmatmul.mubr.msk.f32.vlgmr.msra.gmra.mxu0 %vm185_vm0, %v1467_v54 }
 0x3a1   :  { %10066 = vmatpush3.msra.mxu0 %v2057_v51 }
 0x3a2   :  { %10067 = vmatprep.subr.mxu0 %v2056_v40 }
 0x3a3   :  { %10068 = vmatpush3.msra.mxu0 %v2056_v40 }
 0x3a4   :  { %10069 = vmatprep.subr.mxu0 %v2055_v55 }
 0x3a5   :  { %10070 = vmatpush3.msra.mxu0 %v2055_v55 }
 0x3a6   :  { %10071 = vmatprep.subr.mxu0 %v2054_v50 }
 0x3a7   :  { %10072 = vmatpush3.msra.mxu0 %v2054_v50 }
 0x431   :  { %v1612_v47 = vpop.f32.mrf.mxu1 }
 0x433   :  { %v1539_v56 = vpop.f32.mrf.mxu0  ;;  %v9998_v41 = vpop.f32.mrf.mxu1 }
 0x434   :  { %10073 = vmatprep.mubr.msk.f32.mxu0 %vm185_vm0, %v1539_v56 }
 0x435   :  { %v9987_v58 = vpop.f32.mrf.mxu0  ;;  %10074 = vmatmul.mubr.msk.f32.vlgmr.msra.gmra.mxu0 %vm185_vm0, %v1612_v47 }
 0x441   :  { %v1758_v60 = vpop.f32.mrf.mxu1 }
 0x443   :  { %v1685_v61 = vpop.f32.mrf.mxu0  ;;  %v10020_v1 = vpop.f32.mrf.mxu1 }
 0x444   :  { %10076 = vmatprep.mubr.msk.f32.mxu0 %vm185_vm0, %v1685_v61 }
 0x445   :  { %v10009_v59 = vpop.f32.mrf.mxu0  ;;  %10077 = vmatmul.mubr.msk.f32.gmra.mxu0 %vm185_vm0, %v1758_v60 }
 0x44e   :  { %v1904_v63 = vpop.f32.mrf.mxu1 }
 0x450   :  { %v1831_v5 = vpop.f32.mrf.mxu0  ;;  %v10042_v7 = vpop.f32.mrf.mxu1 }
 0x451   :  { %10079 = vmatprep.mubr.msk.f32.mxu0 %vm185_vm0, %v1831_v5 }
 0x452   :  { %v10031_v9 = vpop.f32.mrf.mxu0  ;;  %10080 = vmatmul.mubr.msk.f32.gmra.mxu0 %vm185_vm0, %v1904_v63 }
 0x45e   :  { %v2050_v6 = vpop.f32.mrf.mxu1 }
 0x460   :  { %v1977_v57 = vpop.f32.mrf.mxu0  ;;  %v10064_v11 = vpop.f32.mrf.mxu1 }
 0x461   :  { %10082 = vmatprep.mubr.msk.f32.mxu0 %vm185_vm0, %v1977_v57 }
 0x462   :  { %v10053_v4 = vpop.f32.mrf.mxu0  ;;  %10083 = vmatmul.mubr.msk.f32.gmra.mxu0 %vm185_vm0, %v2050_v6 }
 0x4f5   :  { %v10075_v19 = vpop.f32.mrf.mxu0 }
 0x4f6   :  { %v2158_v27 = vadd.f32 %v10075_v19, %v2061_v14 }
 0x4f7   :  { %v2152_v28 = vpop.f32.mrf.mxu0 }
 0x4f8   :  { %v2153_v29 = vadd.f32 %v2152_v28, %v2061_v14  ;;  %v2192_v0 = vadd.f32 %v2158_v27, %v11401_v8 }
 0x4fa   :  { %v2202_v30 = vsel %vm185_vm0, %v2192_v0, 0.0  ;;  %v2191_v33 = vadd.f32 %v11059_v32, %v2153_v29 }
 0x4fb   :  { %2203 = vadd.xlane.f32.xlu1 %v2202_v30  ;;  %v2331_v30 = vld [vmem:[#allocation8 + $0x18] sm:$0xff] }
 0x4fc   :  { %v2199_v37 = vsel %vm185_vm0, %v2191_v33, 0.0  ;;  %10085 = vmatprep.subr.mxu1 %v2331_v30 }
 0x4fd   :  { %2200 = vadd.xlane.f32.xlu0 %v2199_v37  ;;  %10086 = vmatpush3.msra.mxu1 %v2331_v30  ;;  %v2329_v37 = vld [vmem:[#allocation8 + $0x8] sm:$0xff] }
 0x505   :  { %v10078_v53 = vpop.f32.mrf.mxu0 }
 0x506   :  { %v2168_v62 = vadd.f32 %v10078_v53, %v2061_v14  ;;  %v2328_v53 = vld [vmem:[#allocation8] sm:$0xff] }
 0x507   :  { %v2162_v34 = vpop.f32.mrf.mxu0 }
 0x508   :  { %v2163_v38 = vadd.f32 %v2162_v34, %v2061_v14  ;;  %v2194_v24 = vadd.f32 %v2168_v62, %v11408_v12 }
 0x50a   :  { %v2208_v25 = vsel %vm185_vm0, %v2194_v24, 0.0  ;;  %v2193_v39 = vadd.f32 %v2163_v38, %v11403_v10 }
 0x50b   :  { %2209 = vadd.xlane.f32.xlu1 %v2208_v25 }
 0x50c   :  { %v2205_v8 = vsel %vm185_vm0, %v2193_v39, 0.0 }
 0x50d   :  { %2206 = vadd.xlane.f32.xlu0 %v2205_v8 }
 0x512   :  { %v10081_v46 = vpop.f32.mrf.mxu0 }
 0x513   :  { %v2178_v44 = vadd.f32 %v10081_v46, %v2061_v14 }
 0x514   :  { %v2172_v48 = vpop.f32.mrf.mxu0 }
 0x515   :  { %v2173_v49 = vadd.f32 %v2172_v48, %v2061_v14  ;;  %v2196_v3 = vadd.f32 %v2178_v44, %v11422_v15 }
 0x517   :  { %v2214_v42 = vsel %vm185_vm0, %v2196_v3, 0.0  ;;  %v2195_v26 = vadd.f32 %v2173_v49, %v11414_v13  ;;  %v2476_v49 = vld [vmem:[#allocation10 + $0x18] sm:$0xff] }
 0x518   :  { %2215 = vadd.xlane.f32.xlu1 %v2214_v42  ;;  %10105 = vmatprep.subr.mxu0 %v2476_v49 }
 0x519   :  { %v2211_v12 = vsel %vm185_vm0, %v2195_v26, 0.0  ;;  %10106 = vmatpush3.msra.mxu0 %v2476_v49 }
 0x51a   :  { %2212 = vadd.xlane.f32.xlu0 %v2211_v12 }
 0x522   :  { %v10084_v43 = vpop.f32.mrf.mxu0 }
 0x523   :  { %v2188_v10 = vadd.f32 %v10084_v43, %v2061_v14 }
 0x524   :  { %v2182_v31 = vpop.f32.mrf.mxu0 }
 0x525   :  { %v2183_v51 = vadd.f32 %v2182_v31, %v2061_v14  ;;  %v2198_v35 = vadd.f32 %v2188_v10, %v11434_v18 }
 0x527   :  { %v2220_v2 = vsel %vm185_vm0, %v2198_v35, 0.0  ;;  %v2197_v52 = vadd.f32 %v2183_v51, %v11426_v17  ;;  %v11886_v51 = vsub.s32 6, %v11466_v22 }
 0x528   :  { %2221 = vadd.xlane.f32.xlu1 %v2220_v2 }
 0x529   :  { %v2217_v15 = vsel %vm185_vm0, %v2197_v52, 0.0 }
 0x52a   :  { %2218 = vadd.xlane.f32.xlu0 %v2217_v15 }
 0x584   :  { %v2204_v54 = vpop.xlane.xlu1 %2203 }
 0x585   :  { %v2225_v13 = vmul.f32 0.03125, %v2204_v54  ;;  %v11891_v54 = vld [vmem:[%s13441_s7] sm:$0xff] }
 0x586   :  { %v2201_v40 = vpop.xlane.xlu0 %2200 }
 0x587   :  { %v11845_v55 = vsub.f32 %v2192_v0, %v2225_v13  ;;  %v2224_v50 = vmul.f32 0.03125, %v2201_v40  ;;  %v2307_v13 = vrot.slane %v11891_v54, %v11886_v51  ;;  %v11896_v40 = vsub.s32 7, %v11466_v22 }
 0x589   :  { %v11847_v47 = vsub.f32 %v2191_v33, %v2224_v50  ;;  %v2241_v56 = vmul.f32 %v11845_v55, %v11845_v55  ;;  %v2330_v33 = vld [vmem:[#allocation8 + $0x10] sm:$0xff] }
 0x58a   :  { %10087 = vmatprep.subr.mxu1 %v2330_v33 }
 0x58b   :  { %v2251_v18 = vsel %vm185_vm0, %v2241_v56, 0.0  ;;  %v2240_v17 = vmul.f32 %v11847_v47, %v11847_v47  ;;  %10088 = vmatpush3.msra.mxu1 %v2330_v33 }
 0x58c   :  { %2252 = vadd.xlane.f32.xlu1 %v2251_v18  ;;  %10089 = vmatprep.subr.mxu1 %v2329_v37 }
 0x58d   :  { %v2248_v41 = vsel %vm185_vm0, %v2240_v17, 0.0  ;;  %10090 = vmatpush3.msra.mxu1 %v2329_v37 }
 0x58e   :  { %2249 = vadd.xlane.f32.xlu0 %v2248_v41  ;;  %10091 = vmatprep.subr.mxu1 %v2328_v53 }
 0x58f   :  { %10092 = vmatpush3.msra.mxu1 %v2328_v53 }
 0x594   :  { %v2210_v58 = vpop.xlane.xlu1 %2209 }
 0x595   :  { %v2227_v60 = vmul.f32 0.03125, %v2210_v58 }
 0x596   :  { %v2207_v61 = vpop.xlane.xlu0 %2206 }
 0x597   :  { %v11855_v1 = vsub.f32 %v2194_v24, %v2227_v60  ;;  %v2226_v59 = vmul.f32 0.03125, %v2207_v61  ;;  %v2319_v60 = vrot.slane %v11891_v54, %v11896_v40 }
 0x599   :  { %v11857_v63 = vsub.f32 %v2193_v39, %v2226_v59  ;;  %v2243_v5 = vmul.f32 %v11855_v1, %v11855_v1 }
 0x59b   :  { %v2257_v7 = vsel %vm185_vm0, %v2243_v5, 0.0  ;;  %v2242_v9 = vmul.f32 %v11857_v63, %v11857_v63 }
 0x59c   :  { %2258 = vadd.xlane.f32.xlu1 %v2257_v7 }
 0x59d   :  { %v2254_v6 = vsel %vm185_vm0, %v2242_v9, 0.0 }
 0x59e   :  { %2255 = vadd.xlane.f32.xlu0 %v2254_v6 }
 0x5a1   :  { %v2216_v57 = vpop.xlane.xlu1 %2215 }
 0x5a2   :  { %v2229_v11 = vmul.f32 0.03125, %v2216_v57 }
 0x5a3   :  { %v2213_v4 = vpop.xlane.xlu0 %2212 }
 0x5a4   :  { %v11865_v14 = vsub.f32 %v2196_v3, %v2229_v11  ;;  %v2228_v19 = vmul.f32 0.03125, %v2213_v4  ;;  %v2475_v3 = vld [vmem:[#allocation10 + $0x10] sm:$0xff] }
 0x5a5   :  { %10107 = vmatprep.subr.mxu0 %v2475_v3 }
 0x5a6   :  { %v11867_v27 = vsub.f32 %v2195_v26, %v2228_v19  ;;  %v2245_v28 = vmul.f32 %v11865_v14, %v11865_v14  ;;  %10108 = vmatpush3.msra.mxu0 %v2475_v3 }
 0x5a8   :  { %v2263_v29 = vsel %vm185_vm0, %v2245_v28, 0.0  ;;  %v2244_v0 = vmul.f32 %v11867_v27, %v11867_v27 }
 0x5a9   :  { %2264 = vadd.xlane.f32.xlu1 %v2263_v29 }
 0x5aa   :  { %v2260_v32 = vsel %vm185_vm0, %v2244_v0, 0.0 }
 0x5ab   :  { %2261 = vadd.xlane.f32.xlu0 %v2260_v32 }
 0x5b1   :  { %v2222_v62 = vpop.xlane.xlu1 %2221 }
 0x5b2   :  { %v2231_v34 = vmul.f32 0.03125, %v2222_v62 }
 0x5b3   :  { %v2219_v38 = vpop.xlane.xlu0 %2218 }
 0x5b4   :  { %v11875_v24 = vsub.f32 %v2198_v35, %v2231_v34  ;;  %v2230_v25 = vmul.f32 0.03125, %v2219_v38 }
 0x5b6   :  { %v11877_v39 = vsub.f32 %v2197_v52, %v2230_v25  ;;  %v2247_v8 = vmul.f32 %v11875_v24, %v11875_v24 }
 0x5b8   :  { %v2269_v46 = vsel %vm185_vm0, %v2247_v8, 0.0  ;;  %v2246_v44 = vmul.f32 %v11877_v39, %v11877_v39 }
 0x5b9   :  { %2270 = vadd.xlane.f32.xlu1 %v2269_v46 }
 0x5ba   :  { %v2266_v48 = vsel %vm185_vm0, %v2246_v44, 0.0 }
 0x5bb   :  { %2267 = vadd.xlane.f32.xlu0 %v2266_v48 }
 0x615   :  { %v2253_v42 = vpop.xlane.xlu1 %2252 }
 0x616   :  { %v2273_v26 = vmul.f32 0.03125, %v2253_v42 }
 0x617   :  { %v2250_v12 = vpop.xlane.xlu0 %2249 }
 0x618   :  { %v2281_v43 = vadd.f32 1e-05, %v2273_v26  ;;  %v2272_v10 = vmul.f32 0.03125, %v2250_v12 }
 0x61a   :  { %10867 = vrsqrt.f32 %v2281_v43  ;;  %v2280_v31 = vadd.f32 1e-05, %v2272_v10 }
 0x61c   :  { %10869 = vrsqrt.f32 %v2280_v31 }
 0x625   :  { %v2259_v35 = vpop.xlane.xlu1 %2258 }
 0x626   :  { %v2275_v2 = vmul.f32 0.03125, %v2259_v35  ;;  %v2474_v35 = vld [vmem:[#allocation10 + $0x8] sm:$0xff] }
 0x627   :  { %v10868_v52 = vpop.eup %10867  ;;  %v2256_v15 = vpop.xlane.xlu0 %2255  ;;  %10109 = vmatprep.subr.mxu0 %v2474_v35 }
 0x628   :  { %v2283_v50 = vadd.f32 1e-05, %v2275_v2  ;;  %v2274_v56 = vmul.f32 0.03125, %v2256_v15  ;;  %v2297_v18 = vmul.f32 %v10868_v52, %v11845_v55  ;;  %10110 = vmatpush3.msra.mxu0 %v2474_v35  ;;  %v2473_v2 = vld [vmem:[#allocation10] sm:$0xff] }
 0x629   :  { %v10870_v17 = vpop.eup %10869  ;;  %10111 = vmatprep.subr.mxu0 %v2473_v2 }
 0x62a   :  { %10871 = vrsqrt.f32 %v2283_v50  ;;  %v2282_v41 = vadd.f32 1e-05, %v2274_v56  ;;  %v2296_v58 = vmul.f32 %v10870_v17, %v11847_v47  ;;  %v2309_v61 = vmul.f32 %v2307_v13, %v2297_v18  ;;  %10112 = vmatpush3.msra.mxu0 %v2473_v2 }
 0x62c   :  { %10873 = vrsqrt.f32 %v2282_v41  ;;  %v2308_v59 = vmul.f32 %v2307_v13, %v2296_v58  ;;  %v11904_v7 = vadd.f32 %v2319_v60, %v2309_v61 }
 0x62e   :  { %v11902_v5 = vadd.f32 %v2319_v60, %v2308_v59 }
 0x630   :  { %10093 = vmatprep.mubr.msk.f32.mxu1 %vm185_vm0, %v11902_v5 }
 0x631   :  { %10094 = vmatmul.mubr.msk.f32.vlgmr.msra.gmra.mxu1 %vm185_vm0, %v11904_v7 }
 0x632   :  { %v2265_v55 = vpop.xlane.xlu1 %2264 }
 0x633   :  { %v2277_v9 = vmul.f32 0.03125, %v2265_v55 }
 0x634   :  { %v2262_v6 = vpop.xlane.xlu0 %2261 }
 0x635   :  { %v2285_v47 = vadd.f32 1e-05, %v2277_v9  ;;  %v2276_v57 = vmul.f32 0.03125, %v2262_v6 }
 0x637   :  { %v10872_v11 = vpop.eup %10871  ;;  %10875 = vrsqrt.f32 %v2285_v47  ;;  %v2284_v4 = vadd.f32 1e-05, %v2276_v57 }
 0x638   :  { %v2299_v19 = vmul.f32 %v10872_v11, %v11855_v1 }
 0x639   :  { %v10874_v28 = vpop.eup %10873  ;;  %10877 = vrsqrt.f32 %v2284_v4 }
 0x63a   :  { %v2298_v29 = vmul.f32 %v10874_v28, %v11857_v63  ;;  %v2311_v0 = vmul.f32 %v2307_v13, %v2299_v19 }
 0x63c   :  { %v2310_v30 = vmul.f32 %v2307_v13, %v2298_v29  ;;  %v11914_v33 = vadd.f32 %v2319_v60, %v2311_v0 }
 0x63e   :  { %v11912_v32 = vadd.f32 %v2319_v60, %v2310_v30 }
 0x640   :  { %10096 = vmatprep.mubr.msk.f32.mxu1 %vm185_vm0, %v11912_v32 }
 0x641   :  { %10097 = vmatmul.mubr.msk.f32.gmra.mxu1 %vm185_vm0, %v11914_v33 }
 0x642   :  { %v2271_v37 = vpop.xlane.xlu1 %2270 }
 0x643   :  { %v2279_v53 = vmul.f32 0.03125, %v2271_v37  ;;  %v11954_v37 = vsub.s32 5, %v11466_v22 }
 0x644   :  { %v10876_v62 = vpop.eup %10875  ;;  %v2268_v1 = vpop.xlane.xlu0 %2267 }
 0x645   :  { %v2287_v34 = vadd.f32 1e-05, %v2279_v53  ;;  %v2278_v38 = vmul.f32 0.03125, %v2268_v1  ;;  %v2301_v63 = vmul.f32 %v10876_v62, %v11865_v14  ;;  %v2480_v53 = vrot.slane %v11891_v54, %v11954_v37 }
 0x646   :  { %v10878_v25 = vpop.eup %10877 }
 0x647   :  { %10879 = vrsqrt.f32 %v2287_v34  ;;  %v2286_v8 = vadd.f32 1e-05, %v2278_v38  ;;  %v2300_v46 = vmul.f32 %v10878_v25, %v11867_v27  ;;  %v2313_v44 = vmul.f32 %v2307_v13, %v2301_v63 }
 0x649   :  { %10881 = vrsqrt.f32 %v2286_v8  ;;  %v2312_v48 = vmul.f32 %v2307_v13, %v2300_v46  ;;  %v11924_v3 = vadd.f32 %v2319_v60, %v2313_v44 }
 0x64b   :  { %v11922_v49 = vadd.f32 %v2319_v60, %v2312_v48 }
 0x64d   :  { %10099 = vmatprep.mubr.msk.f32.mxu1 %vm185_vm0, %v11922_v49 }
 0x64e   :  { %10100 = vmatmul.mubr.msk.f32.gmra.mxu1 %vm185_vm0, %v11924_v3 }
 0x654   :  { %v10880_v42 = vpop.eup %10879 }
 0x655   :  { %v2303_v14 = vmul.f32 %v10880_v42, %v11875_v24  ;;  %v11941_v24 = vsub.s32 4, %v11466_v22 }
 0x656   :  { %v10882_v26 = vpop.eup %10881 }
 0x657   :  { %v2302_v12 = vmul.f32 %v10882_v26, %v11877_v39  ;;  %v2315_v27 = vmul.f32 %v2307_v13, %v2303_v14  ;;  %v2335_v39 = vrot.slane %v11891_v54, %v11941_v24 }
 0x659   :  { %v2314_v43 = vmul.f32 %v2307_v13, %v2302_v12  ;;  %v11934_v31 = vadd.f32 %v2319_v60, %v2315_v27 }
 0x65b   :  { %v11932_v10 = vadd.f32 %v2319_v60, %v2314_v43 }
 0x65d   :  { %10102 = vmatprep.mubr.msk.f32.mxu1 %vm185_vm0, %v11932_v10 }
 0x65e   :  { %10103 = vmatmul.mubr.msk.f32.gmra.mxu1 %vm185_vm0, %v11934_v31 }
 0x6f1   :  { %v10095_v52 = vpop.f32.mrf.mxu1 }
 0x6f2   :  { %v2432_v15 = vadd.f32 %v10095_v52, %v2335_v39 }
 0x6f3   :  { %v2426_v13 = vpop.f32.mrf.mxu1 }
 0x6f4   :  { %v2427_v50 = vadd.f32 %v2426_v13, %v2335_v39  ;;  %v2466_v18 = vmax.f32 %v2432_v15, 0.0 }
 0x6f6   :  { %v2465_v56 = vmax.f32 %v2427_v50, 0.0 }
 0x6f8   :  { %10113 = vmatprep.mubr.msk.f32.mxu0 %vm185_vm0, %v2465_v56 }
 0x6f9   :  { %10114 = vmatmul.mubr.msk.f32.vlgmr.msra.gmra.mxu0 %vm185_vm0, %v2466_v18 }
 0x701   :  { %v10098_v17 = vpop.f32.mrf.mxu1 }
 0x702   :  { %v2442_v41 = vadd.f32 %v10098_v17, %v2335_v39 }
 0x703   :  { %v2436_v58 = vpop.f32.mrf.mxu1 }
 0x704   :  { %v2437_v60 = vadd.f32 %v2436_v58, %v2335_v39  ;;  %v2468_v59 = vmax.f32 %v2442_v41, 0.0 }
 0x706   :  { %v2467_v61 = vmax.f32 %v2437_v60, 0.0 }
 0x708   :  { %10116 = vmatprep.mubr.msk.f32.mxu0 %vm185_vm0, %v2467_v61 }
 0x709   :  { %10117 = vmatmul.mubr.msk.f32.gmra.mxu0 %vm185_vm0, %v2468_v59 }
 0x70e   :  { %v10101_v55 = vpop.f32.mrf.mxu1 }
 0x70f   :  { %v2452_v9 = vadd.f32 %v10101_v55, %v2335_v39 }
 0x710   :  { %v2446_v6 = vpop.f32.mrf.mxu1 }
 0x711   :  { %v2447_v47 = vadd.f32 %v2446_v6, %v2335_v39  ;;  %v2470_v11 = vmax.f32 %v2452_v9, 0.0 }
 0x713   :  { %v2469_v57 = vmax.f32 %v2447_v47, 0.0 }
 0x715   :  { %10119 = vmatprep.mubr.msk.f32.mxu0 %vm185_vm0, %v2469_v57 }
 0x716   :  { %10120 = vmatmul.mubr.msk.f32.gmra.mxu0 %vm185_vm0, %v2470_v11 }
 0x71e   :  { %v10104_v4 = vpop.f32.mrf.mxu1 }
 0x71f   :  { %v2462_v19 = vadd.f32 %v10104_v4, %v2335_v39 }
 0x720   :  { %v2456_v28 = vpop.f32.mrf.mxu1 }
 0x721   :  { %v2457_v29 = vadd.f32 %v2456_v28, %v2335_v39  ;;  %v2472_v30 = vmax.f32 %v2462_v19, 0.0 }
 0x723   :  { %v2471_v0 = vmax.f32 %v2457_v29, 0.0 }
 0x725   :  { %10122 = vmatprep.mubr.msk.f32.mxu0 %vm185_vm0, %v2471_v0 }
 0x726   :  { %10123 = vmatmul.mubr.msk.f32.gmra.mxu0 %vm185_vm0, %v2472_v30 }
 0x7b9   :  { %v10115_v62 = vpop.f32.mrf.mxu0 }
 0x7ba   :  { %v2577_v1 = vadd.f32 %v10115_v62, %v2480_v53 }
 0x7bb   :  { %v2571_v34 = vpop.f32.mrf.mxu0 }
 0x7bc   :  { %v2572_v38 = vadd.f32 %v2571_v34, %v2480_v53  ;;  %v2611_v63 = vadd.f32 %v2577_v1, %v11904_v7 }
 0x7be   :  { %v2621_v25 = vsel %vm185_vm0, %v2611_v63, 0.0  ;;  %v2610_v8 = vadd.f32 %v2572_v38, %v11902_v5 }
 0x7bf   :  { %2622 = vadd.xlane.f32.xlu1 %v2621_v25 }
 0x7c0   :  { %v2618_v46 = vsel %vm185_vm0, %v2610_v8, 0.0 }
 0x7c1   :  { %2619 = vadd.xlane.f32.xlu0 %v2618_v46  ;;  %v2754_v46 = vld [vmem:[#allocation7 + $0x98] sm:$0xff] }
 0x7c2   :  { %10145 = vmatprep.subr.mxu0 %v2754_v46 }
 0x7c3   :  { %10146 = vmatpush3.msra.mxu0 %v2754_v46 }
 0x7c9   :  { %v10118_v44 = vpop.f32.mrf.mxu0 }
 0x7ca   :  { %v2587_v22 = vadd.f32 %v10118_v44, %v2480_v53  ;;  %v2750_v44 = vld [vmem:[#allocation7 + $0x78] sm:$0xff] }
 0x7cb   :  { %v2581_v48 = vpop.f32.mrf.mxu0  ;;  %10125 = vmatprep.subr.mxu1 %v2750_v44 }
 0x7cc   :  { %v2582_v42 = vadd.f32 %v2581_v48, %v2480_v53  ;;  %v2613_v54 = vadd.f32 %v2587_v22, %v11914_v33  ;;  %v2753_v48 = vld [vmem:[#allocation7 + $0x90] sm:$0xff]  ;;  %10126 = vmatpush3.msra.mxu1 %v2750_v44 }
 0x7cd   :  { %10147 = vmatprep.subr.mxu0 %v2753_v48 }
 0x7ce   :  { %v2627_v14 = vsel %vm185_vm0, %v2613_v54, 0.0  ;;  %v2612_v26 = vadd.f32 %v2582_v42, %v11912_v32  ;;  %v2749_v42 = vld [vmem:[#allocation7 + $0x70] sm:$0xff]  ;;  %10148 = vmatpush3.msra.mxu0 %v2753_v48 }
 0x7cf   :  { %2628 = vadd.xlane.f32.xlu1 %v2627_v14  ;;  %v2748_v14 = vld [vmem:[#allocation7 + $0x68] sm:$0xff]  ;;  %10127 = vmatprep.subr.mxu1 %v2749_v42 }
 0x7d0   :  { %v2624_v7 = vsel %vm185_vm0, %v2612_v26, 0.0  ;;  %10128 = vmatpush3.msra.mxu1 %v2749_v42 }
 0x7d1   :  { %2625 = vadd.xlane.f32.xlu0 %v2624_v7  ;;  %v2747_v7 = vld [vmem:[#allocation7 + $0x60] sm:$0xff]  ;;  %10129 = vmatprep.subr.mxu1 %v2748_v14 }
 0x7d2   :  { %10130 = vmatpush3.msra.mxu1 %v2748_v14 }
 0x7d3   :  { %10131 = vmatprep.subr.mxu1 %v2747_v7 }
 0x7d4   :  { %10132 = vmatpush3.msra.mxu1 %v2747_v7 }
 0x7d6   :  { %v10121_v12 = vpop.f32.mrf.mxu0 }
 0x7d7   :  { %v2597_v5 = vadd.f32 %v10121_v12, %v2480_v53 }
 0x7d8   :  { %v2591_v27 = vpop.f32.mrf.mxu0 }
 0x7d9   :  { %v2592_v43 = vadd.f32 %v2591_v27, %v2480_v53  ;;  %v2615_v35 = vadd.f32 %v2597_v5, %v11924_v3 }
 0x7db   :  { %v2633_v2 = vsel %vm185_vm0, %v2615_v35, 0.0  ;;  %v2614_v39 = vadd.f32 %v2592_v43, %v11922_v49 }
 0x7dc   :  { %2634 = vadd.xlane.f32.xlu1 %v2633_v2 }
 0x7dd   :  { %v2630_v33 = vsel %vm185_vm0, %v2614_v39, 0.0 }
 0x7de   :  { %2631 = vadd.xlane.f32.xlu0 %v2630_v33 }
 0x7e6   :  { %v10124_v52 = vpop.f32.mrf.mxu0 }
 0x7e7   :  { %v2607_v32 = vadd.f32 %v10124_v52, %v2480_v53 }
 0x7e8   :  { %v2601_v15 = vpop.f32.mrf.mxu0 }
 0x7e9   :  { %v2602_v13 = vadd.f32 %v2601_v15, %v2480_v53  ;;  %v11971_v50 = vadd.f32 %v2607_v32, %v11934_v31  ;;  %v2758_v15 = vld [vmem:[#allocation7 + $0xb8] sm:$0xff] }
 0x7ea   :  { %10165 = vmatprep.subr.mxu1 %v2758_v15 }
 0x7eb   :  { %v2639_v56 = vsel %vm185_vm0, %v11971_v50, 0.0  ;;  %v11976_v3 = vadd.f32 %v2602_v13, %v11932_v10 }
 0x7ec   :  { %2640 = vadd.xlane.f32.xlu1 %v2639_v56 }
 0x7ed   :  { %v2636_v49 = vsel %vm185_vm0, %v11976_v3, 0.0 }
 0x7ee   :  { %2637 = vadd.xlane.f32.xlu0 %v2636_v49 }
 0x848   :  { %v2623_v18 = vpop.xlane.xlu1 %2622 }
 0x849   :  { %v2643_v17 = vmul.f32 0.03125, %v2623_v18 }
 0x84a   :  { %v2620_v41 = vpop.xlane.xlu0 %2619 }
 0x84b   :  { %v11980_v58 = vsub.f32 %v2611_v63, %v2643_v17  ;;  %v2642_v60 = vmul.f32 0.03125, %v2620_v41  ;;  %v180_v17 = vld [vmem:[%s13441_s7 + $0x8] sm:$0x3] }
 0x84d   :  { %v11982_v61 = vsub.f32 %v2610_v8, %v2642_v60  ;;  %v2659_v31 = vmul.f32 %v11980_v58, %v11980_v58 }
 0x84f   :  { %v2669_v59 = vsel %vm185_vm0, %v2659_v31, 0.0  ;;  %v2658_v10 = vmul.f32 %v11982_v61, %v11982_v61 }
 0x850   :  { %2670 = vadd.xlane.f32.xlu1 %v2669_v59  ;;  %v12027_v59 = vrot.slane %v180_v17, %v11494_v36 }
 0x851   :  { %v2666_v55 = vsel %vm185_vm0, %v2658_v10, 0.0 }
 0x852   :  { %2667 = vadd.xlane.f32.xlu0 %v2666_v55 }
 0x858   :  { %v2629_v9 = vpop.xlane.xlu1 %2628 }
 0x859   :  { %v2645_v6 = vmul.f32 0.03125, %v2629_v9 }
 0x85a   :  { %v2626_v47 = vpop.xlane.xlu0 %2625 }
 0x85b   :  { %v11990_v57 = vsub.f32 %v2613_v54, %v2645_v6  ;;  %v2644_v11 = vmul.f32 0.03125, %v2626_v47  ;;  %v2752_v54 = vld [vmem:[#allocation7 + $0x88] sm:$0xff] }
 0x85c   :  { %10149 = vmatprep.subr.mxu0 %v2752_v54 }
 0x85d   :  { %v11992_v4 = vsub.f32 %v2612_v26, %v2644_v11  ;;  %v2661_v19 = vmul.f32 %v11990_v57, %v11990_v57  ;;  %v2751_v26 = vld [vmem:[#allocation7 + $0x80] sm:$0xff]  ;;  %10150 = vmatpush3.msra.mxu0 %v2752_v54 }
 0x85e   :  { %10151 = vmatprep.subr.mxu0 %v2751_v26 }
 0x85f   :  { %v2675_v28 = vsel %vm185_vm0, %v2661_v19, 0.0  ;;  %v2660_v29 = vmul.f32 %v11992_v4, %v11992_v4  ;;  %10152 = vmatpush3.msra.mxu0 %v2751_v26 }
 0x860   :  { %2676 = vadd.xlane.f32.xlu1 %v2675_v28  ;;  %10185 = vmatprep.subr.mxu0 %v11281_v20 }
 0x861   :  { %v2672_v0 = vsel %vm185_vm0, %v2660_v29, 0.0  ;;  %v12033_v29 = vrot.slane %v180_v17, %v11469_v23 }
 0x862   :  { %2673 = vadd.xlane.f32.xlu0 %v2672_v0 }
 0x865   :  { %v2635_v30 = vpop.xlane.xlu1 %2634 }
 0x866   :  { %v2647_v53 = vmul.f32 0.03125, %v2635_v30 }
 0x867   :  { %v2632_v62 = vpop.xlane.xlu0 %2631 }
 0x868   :  { %v12000_v1 = vsub.f32 %v2615_v35, %v2647_v53  ;;  %v2646_v34 = vmul.f32 0.03125, %v2632_v62  ;;  %v2756_v62 = vld [vmem:[#allocation7 + $0xa8] sm:$0xff] }
 0x86a   :  { %v12002_v38 = vsub.f32 %v2614_v39, %v2646_v34  ;;  %v2663_v63 = vmul.f32 %v12000_v1, %v12000_v1 }
 0x86c   :  { %v2681_v25 = vsel %vm185_vm0, %v2663_v63, 0.0  ;;  %v2662_v8 = vmul.f32 %v12002_v38, %v12002_v38 }
 0x86d   :  { %2682 = vadd.xlane.f32.xlu1 %v2681_v25  ;;  %v2755_v25 = vld [vmem:[#allocation7 + $0xa0] sm:$0xff] }
 0x86e   :  { %v2678_v22 = vsel %vm185_vm0, %v2662_v8, 0.0 }
 0x86f   :  { %2679 = vadd.xlane.f32.xlu0 %v2678_v22 }
 0x875   :  { %v2641_v12 = vpop.xlane.xlu1 %2640 }
 0x876   :  { %v2649_v5 = vmul.f32 0.03125, %v2641_v12 }
 0x877   :  { %v2638_v27 = vpop.xlane.xlu0 %2637 }
 0x878   :  { %v12012_v43 = vsub.f32 %v11971_v50, %v2649_v5  ;;  %v2648_v35 = vmul.f32 0.03125, %v2638_v27 }
 0x87a   :  { %v12015_v2 = vsub.f32 %v11976_v3, %v2648_v35  ;;  %v2665_v39 = vmul.f32 %v12012_v43, %v12012_v43 }
 0x87c   :  { %v2687_v33 = vsel %vm185_vm0, %v2665_v39, 0.0  ;;  %v2664_v52 = vmul.f32 %v12015_v2, %v12015_v2 }
 0x87d   :  { %2688 = vadd.xlane.f32.xlu1 %v2687_v33 }
 0x87e   :  { %v2684_v32 = vsel %vm185_vm0, %v2664_v52, 0.0 }
 0x87f   :  { %2685 = vadd.xlane.f32.xlu0 %v2684_v32 }
 0x8d9   :  { %v2671_v13 = vpop.xlane.xlu1 %2670 }
 0x8da   :  { %v2691_v50 = vmul.f32 0.03125, %v2671_v13 }
 0x8db   :  { %v2668_v56 = vpop.xlane.xlu0 %2667 }
 0x8dc   :  { %v2699_v49 = vadd.f32 1e-05, %v2691_v50  ;;  %v2690_v3 = vmul.f32 0.03125, %v2668_v56 }
 0x8de   :  { %10883 = vrsqrt.f32 %v2699_v49  ;;  %v2698_v18 = vadd.f32 1e-05, %v2690_v3 }
 0x8e0   :  { %10885 = vrsqrt.f32 %v2698_v18 }
 0x8e9   :  { %v2677_v41 = vpop.xlane.xlu1 %2676 }
 0x8ea   :  { %v2693_v60 = vmul.f32 0.03125, %v2677_v41 }
 0x8eb   :  { %v10884_v31 = vpop.eup %10883  ;;  %v2674_v10 = vpop.xlane.xlu0 %2673 }
 0x8ec   :  { %v2715_v55 = vmul.f32 %v10884_v31, %v11980_v58  ;;  %v2701_v9 = vadd.f32 1e-05, %v2693_v60  ;;  %v2692_v6 = vmul.f32 0.03125, %v2674_v10 }
 0x8ed   :  { %v10886_v47 = vpop.eup %10885 }
 0x8ee   :  { %10887 = vrsqrt.f32 %v2701_v9  ;;  %v2700_v11 = vadd.f32 1e-05, %v2692_v6  ;;  %v2714_v19 = vmul.f32 %v10886_v47, %v11982_v61  ;;  %v2727_v28 = vmul.f32 %v12027_v59, %v2715_v55  ;;  %v2757_v61 = vld [vmem:[#allocation7 + $0xb0] sm:$0xff]  ;;  %v12135_v9 = vld [vmem:[#allocation13 + $0x18] sm:$0xff] }
 0x8f0   :  { %10889 = vrsqrt.f32 %v2700_v11  ;;  %v2726_v0 = vmul.f32 %v12027_v59, %v2714_v19  ;;  %v12040_v58 = vadd.f32 %v12033_v29, %v2727_v28  ;;  %v12142_v19 = vld [vmem:[#allocation13 + $0x10] sm:$0xff] }
 0x8f2   :  { %v12037_v30 = vadd.f32 %v12033_v29, %v2726_v0  ;;  %v12150_v0 = vld [vmem:[#allocation13 + $0x8] sm:$0xff] }
 0x8f4   :  { %10133 = vmatprep.mubr.msk.f32.mxu1 %vm185_vm0, %v12037_v30  ;;  %10153 = vmatprep.mubr.msk.f32.mxu0 %vm185_vm0, %v12037_v30 }
 0x8f5   :  { %10134 = vmatmul.mubr.msk.f32.vlgmr.msra.gmra.mxu1 %vm185_vm0, %v12040_v58  ;;  %10154 = vmatmul.mubr.msk.f32.vlgmr.msra.gmra.mxu0 %vm185_vm0, %v12040_v58 }
 0x8f6   :  { %v2683_v53 = vpop.xlane.xlu1 %2682  ;;  %10166 = vmatpush3.msra.mxu1 %v2758_v15 }
 0x8f7   :  { %v2695_v34 = vmul.f32 0.03125, %v2683_v53  ;;  %10167 = vmatprep.subr.mxu1 %v2757_v61 }
 0x8f8   :  { %v2680_v63 = vpop.xlane.xlu0 %2679  ;;  %10168 = vmatpush3.msra.mxu1 %v2757_v61 }
 0x8f9   :  { %v2703_v8 = vadd.f32 1e-05, %v2695_v34  ;;  %v2694_v46 = vmul.f32 0.03125, %v2680_v63  ;;  %10169 = vmatprep.subr.mxu1 %v2756_v62  ;;  %v12162_v63 = vld [vmem:[#allocation13] sm:$0xff] }
 0x8fa   :  { %10170 = vmatpush3.msra.mxu1 %v2756_v62 }
 0x8fb   :  { %v10888_v44 = vpop.eup %10887  ;;  %10891 = vrsqrt.f32 %v2703_v8  ;;  %v2702_v22 = vadd.f32 1e-05, %v2694_v46  ;;  %10171 = vmatprep.subr.mxu1 %v2755_v25 }
 0x8fc   :  { %v2717_v48 = vmul.f32 %v10888_v44, %v11990_v57  ;;  %10172 = vmatpush3.msra.mxu1 %v2755_v25 }
 0x8fd   :  { %v10890_v42 = vpop.eup %10889  ;;  %10893 = vrsqrt.f32 %v2702_v22  ;;  %10196 = vmatprep.subr.mxu1 %v11281_v20 }
 0x8fe   :  { %v2716_v54 = vmul.f32 %v10890_v42, %v11992_v4  ;;  %v2729_v14 = vmul.f32 %v12027_v59, %v2717_v48 }
 0x900   :  { %v2728_v26 = vmul.f32 %v12027_v59, %v2716_v54  ;;  %v12059_v12 = vadd.f32 %v12033_v29, %v2729_v14 }
 0x902   :  { %v12056_v7 = vadd.f32 %v12033_v29, %v2728_v26 }
 0x904   :  { %10136 = vmatprep.mubr.msk.f32.mxu1 %vm185_vm0, %v12056_v7  ;;  %10156 = vmatprep.mubr.msk.f32.mxu0 %vm185_vm0, %v12056_v7 }
 0x905   :  { %10137 = vmatmul.mubr.msk.f32.gmra.mxu1 %vm185_vm0, %v12059_v12  ;;  %10157 = vmatmul.mubr.msk.f32.gmra.mxu0 %vm185_vm0, %v12059_v12 }
 0x906   :  { %v2689_v57 = vpop.xlane.xlu1 %2688 }
 0x907   :  { %v2697_v4 = vmul.f32 0.03125, %v2689_v57 }
 0x908   :  { %v10892_v5 = vpop.eup %10891  ;;  %v2686_v27 = vpop.xlane.xlu0 %2685 }
 0x909   :  { %v2705_v35 = vadd.f32 1e-05, %v2697_v4  ;;  %v2696_v39 = vmul.f32 0.03125, %v2686_v27  ;;  %v2719_v33 = vmul.f32 %v10892_v5, %v12000_v1 }
 0x90a   :  { %v10894_v52 = vpop.eup %10893 }
 0x90b   :  { %10895 = vrsqrt.f32 %v2705_v35  ;;  %v2704_v32 = vadd.f32 1e-05, %v2696_v39  ;;  %v2718_v15 = vmul.f32 %v10894_v52, %v12002_v38  ;;  %v2731_v13 = vmul.f32 %v12027_v59, %v2719_v33 }
 0x90d   :  { %10897 = vrsqrt.f32 %v2704_v32  ;;  %v2730_v50 = vmul.f32 %v12027_v59, %v2718_v15  ;;  %v12077_v49 = vadd.f32 %v12033_v29, %v2731_v13 }
 0x90f   :  { %v12074_v56 = vadd.f32 %v12033_v29, %v2730_v50 }
 0x911   :  { %10139 = vmatprep.mubr.msk.f32.mxu1 %vm185_vm0, %v12074_v56  ;;  %10159 = vmatprep.mubr.msk.f32.mxu0 %vm185_vm0, %v12074_v56 }
 0x912   :  { %10140 = vmatmul.mubr.msk.f32.gmra.mxu1 %vm185_vm0, %v12077_v49  ;;  %10160 = vmatmul.mubr.msk.f32.gmra.mxu0 %vm185_vm0, %v12077_v49 }
 0x918   :  { %v10896_v1 = vpop.eup %10895 }
 0x919   :  { %v2721_v38 = vmul.f32 %v10896_v1, %v12012_v43  ;;  %v12128_v43 = vld [vmem:[%s13441_s7 + $0x10] sm:$0xff] }
 0x91a   :  { %v10898_v3 = vpop.eup %10897  ;;  %v12158_v53 = vrot.slane %v12128_v43, %v11494_v36 }
 0x91b   :  { %v2720_v18 = vmul.f32 %v10898_v3, %v12015_v2  ;;  %v2733_v17 = vmul.f32 %v12027_v59, %v2721_v38  ;;  %v12132_v2 = vrot.slane %v12128_v43, %v11469_v23 }
 0x91d   :  { %v2732_v41 = vmul.f32 %v12027_v59, %v2720_v18  ;;  %v12095_v31 = vadd.f32 %v12033_v29, %v2733_v17 }
 0x91f   :  { %v12092_v60 = vadd.f32 %v12033_v29, %v2732_v41 }
 0x921   :  { %10142 = vmatprep.mubr.msk.f32.mxu1 %vm185_vm0, %v12092_v60  ;;  %10162 = vmatprep.mubr.msk.f32.mxu0 %vm185_vm0, %v12092_v60 }
 0x922   :  { %10143 = vmatmul.mubr.msk.f32.gmra.mxu1 %vm185_vm0, %v12095_v31  ;;  %10163 = vmatmul.mubr.msk.f32.gmra.mxu0 %vm185_vm0, %v12095_v31 }
 0x923   :  { %10173 = vmatprep.mubr.msk.f32.mxu1 %vm185_vm0, %v12037_v30  ;;  %10193 = vmatprep.mubr.msk.f32.mxu0 %vm11282_vm1, %v11281_v20 }
 0x926   :  { %10174 = vmatmul.mubr.msk.f32.vlgmr.msra.gmra.mxu1 %vm185_vm0, %v12040_v58 }
 0x927   :  { %10176 = vmatprep.mubr.msk.f32.mxu1 %vm185_vm0, %v12056_v7 }
 0x92a   :  { %10177 = vmatmul.mubr.msk.f32.gmra.mxu1 %vm185_vm0, %v12059_v12 }
 0x92b   :  { %10179 = vmatprep.mubr.msk.f32.mxu1 %vm185_vm0, %v12074_v56 }
 0x92e   :  { %10180 = vmatmul.mubr.msk.f32.gmra.mxu1 %vm185_vm0, %v12077_v49 }
 0x92f   :  { %10182 = vmatprep.mubr.msk.f32.mxu1 %vm185_vm0, %v12092_v60 }
 0x932   :  { %10183 = vmatmul.mubr.msk.f32.gmra.mxu1 %vm185_vm0, %v12095_v31 }
 0x933   :  { %10204 = vmatprep.mubr.msk.f32.mxu1 %vm11282_vm1, %v11281_v20 }
 0x9b5   :  { %v10155_v59 = vpop.f32.mrf.mxu0  ;;  %v10135_v62 = vpop.f32.mrf.mxu1 }
 0x9b6   :  { %v2971_v10 = vadd.f32 %v10155_v59, %v12132_v2  ;;  %v2862_v44 = vadd.f32 %v10135_v62, %v12158_v53 }
 0x9b7   :  { %v2965_v55 = vpop.f32.mrf.mxu0  ;;  %v2856_v22 = vpop.f32.mrf.mxu1 }
 0x9b8   :  { %v3120_v6 = vmul.f32 %v12135_v9, %v2971_v10  ;;  %v2966_v47 = vadd.f32 %v2965_v55, %v12132_v2  ;;  %v3119_v28 = vmul.f32 %v12142_v19, %v2971_v10  ;;  %v3118_v61 = vmul.f32 %v12150_v0, %v2971_v10 }
 0x9b9   :  { %v3117_v25 = vmul.f32 %v12162_v63, %v2971_v10  ;;  %v2857_v26 = vadd.f32 %v2856_v22, %v12158_v53 }
 0x9ba   :  { %10197 = vmatpush3.xpose.msk.msra.mxu1 %vm185_vm0, %v3120_v6  ;;  %v3116_v11 = vmul.f32 %v12135_v9, %v2966_v47  ;;  %v3115_v29 = vmul.f32 %v12142_v19, %v2966_v47  ;;  %v3114_v34 = vmul.f32 %v12150_v0, %v2966_v47  ;;  %v3113_v48 = vmul.f32 %v12162_v63, %v2966_v47 }
 0x9bb   :  { %10198 = vmatprep.subr.mxu1 %v11281_v20 }
 0x9bc   :  { %10186 = vmatpush3.xpose.msk.msra.mxu0 %vm185_vm0, %v3116_v11 }
 0x9bd   :  { %10187 = vmatprep.subr.mxu0 %v11281_v20 }
 0x9be   :  { %10199 = vmatpush3.xpose.msk.msra.mxu1 %vm185_vm0, %v3119_v28 }
 0x9bf   :  { %10200 = vmatprep.subr.mxu1 %v11281_v20 }
 0x9c0   :  { %10188 = vmatpush3.xpose.msk.msra.mxu0 %vm185_vm0, %v3115_v29  ;;  %v12234_v29 = vrot.slane %v12128_v43, %v11615_v45 }
 0x9c1   :  { %10189 = vmatprep.subr.mxu0 %v11281_v20 }
 0x9c2   :  { %10201 = vmatpush3.xpose.msk.msra.mxu1 %vm185_vm0, %v3118_v61 }
 0x9c3   :  { %10202 = vmatprep.subr.mxu1 %v11281_v20 }
 0x9c4   :  { %10190 = vmatpush3.xpose.msk.msra.mxu0 %vm185_vm0, %v3114_v34 }
 0x9c5   :  { %v10158_v8 = vpop.f32.mrf.mxu0  ;;  %10191 = vmatprep.subr.mxu0 %v11281_v20  ;;  %v10138_v39 = vpop.f32.mrf.mxu1 }
 0x9c6   :  { %v2981_v46 = vadd.f32 %v10158_v8, %v12132_v2  ;;  %10203 = vmatpush3.xpose.msk.msra.mxu1 %vm185_vm0, %v3117_v25  ;;  %v2872_v13 = vadd.f32 %v10138_v39, %v12158_v53 }
 0x9c7   :  { %v2975_v42 = vpop.f32.mrf.mxu0  ;;  %10218 = vmatprep.subr.mxu1 %v11281_v20  ;;  %v2866_v50 = vpop.f32.mrf.mxu1 }
 0x9c8   :  { %v3128_v54 = vmul.f32 %v12135_v9, %v2981_v46  ;;  %v2976_v14 = vadd.f32 %v2975_v42, %v12132_v2  ;;  %10192 = vmatpush3.xpose.msk.msra.mxu0 %vm185_vm0, %v3113_v48  ;;  %v3127_v4 = vmul.f32 %v12142_v19, %v2981_v46  ;;  %v3126_v27 = vmul.f32 %v12150_v0, %v2981_v46 }
 0x9c9   :  { %10205 = vmatmul.mubr.msk.f32.vlgmr.msra.gmra.mxu1 %vm185_vm0, %v2862_v44  ;;  %10207 = vmatprep.subr.mxu0 %v11281_v20  ;;  %v3125_v52 = vmul.f32 %v12162_v63, %v2981_v46  ;;  %v2867_v18 = vadd.f32 %v2866_v50, %v12158_v53 }
 0x9ca   :  { %10219 = vmatpush3.xpose.msk.msra.mxu1 %vm185_vm0, %v3128_v54  ;;  %v3124_v57 = vmul.f32 %v12135_v9, %v2976_v14  ;;  %10226 = vmatprep.mubr.msk.f32.mxu1 %vm11282_vm1, %v11281_v20  ;;  %v3123_v5 = vmul.f32 %v12142_v19, %v2976_v14  ;;  %v3122_v33 = vmul.f32 %v12150_v0, %v2976_v14 }
 0x9cb   :  { %10220 = vmatprep.subr.mxu1 %v11281_v20  ;;  %10194 = vmatmul.mubr.msk.f32.vlgmr.msra.gmra.mxu0 %vm185_vm0, %v2857_v26  ;;  %v3121_v1 = vmul.f32 %v12162_v63, %v2976_v14 }
 0x9cc   :  { %10208 = vmatpush3.xpose.msk.msra.mxu0 %vm185_vm0, %v3124_v57  ;;  %10215 = vmatprep.mubr.msk.f32.mxu0 %vm11282_vm1, %v11281_v20 }
 0x9cd   :  { %10209 = vmatprep.subr.mxu0 %v11281_v20 }
 0x9ce   :  { %10221 = vmatpush3.xpose.msk.msra.mxu1 %vm185_vm0, %v3127_v4 }
 0x9cf   :  { %10222 = vmatprep.subr.mxu1 %v11281_v20 }
 0x9d0   :  { %10210 = vmatpush3.xpose.msk.msra.mxu0 %vm185_vm0, %v3123_v5 }
 0x9d1   :  { %10211 = vmatprep.subr.mxu0 %v11281_v20 }
 0x9d2   :  { %v10161_v35 = vpop.f32.mrf.mxu0  ;;  %10223 = vmatpush3.xpose.msk.msra.mxu1 %vm185_vm0, %v3126_v27  ;;  %v10141_v41 = vpop.f32.mrf.mxu1 }
 0x9d3   :  { %10224 = vmatprep.subr.mxu1 %v11281_v20  ;;  %v2991_v32 = vadd.f32 %v10161_v35, %v12132_v2  ;;  %v2882_v46 = vadd.f32 %v10141_v41, %v12158_v53 }
 0x9d4   :  { %v2985_v15 = vpop.f32.mrf.mxu0  ;;  %10212 = vmatpush3.xpose.msk.msra.mxu0 %vm185_vm0, %v3122_v33  ;;  %v2876_v6 = vpop.f32.mrf.mxu1 }
 0x9d5   :  { %10213 = vmatprep.subr.mxu0 %v11281_v20  ;;  %v2986_v38 = vadd.f32 %v2985_v15, %v12132_v2  ;;  %v3136_v3 = vmul.f32 %v12135_v9, %v2991_v32  ;;  %v3135_v59 = vmul.f32 %v12142_v19, %v2991_v32  ;;  %v3134_v55 = vmul.f32 %v12150_v0, %v2991_v32 }
 0x9d6   :  { %10225 = vmatpush3.xpose.msk.msra.mxu1 %vm185_vm0, %v3125_v52  ;;  %v3133_v61 = vmul.f32 %v12162_v63, %v2991_v32  ;;  %v2877_v14 = vadd.f32 %v2876_v6, %v12158_v53 }
 0x9d7   :  { %10240 = vmatprep.subr.mxu1 %v11281_v20  ;;  %v3132_v17 = vmul.f32 %v12135_v9, %v2986_v38  ;;  %v3131_v10 = vmul.f32 %v12142_v19, %v2986_v38  ;;  %v3130_v28 = vmul.f32 %v12150_v0, %v2986_v38  ;;  %v3129_v44 = vmul.f32 %v12162_v63, %v2986_v38 }
 0x9d8   :  { %10214 = vmatpush3.xpose.msk.msra.mxu0 %vm185_vm0, %v3121_v1 }
 0x9d9   :  { %10227 = vmatmul.mubr.msk.f32.vlgmr.msra.gmra.mxu1 %vm185_vm0, %v2872_v13  ;;  %10229 = vmatprep.subr.mxu0 %v11281_v20 }
 0x9da   :  { %10241 = vmatpush3.xpose.msk.msra.mxu1 %vm185_vm0, %v3136_v3  ;;  %10248 = vmatprep.mubr.msk.f32.mxu1 %vm11282_vm1, %v11281_v20 }
 0x9db   :  { %10242 = vmatprep.subr.mxu1 %v11281_v20  ;;  %10216 = vmatmul.mubr.msk.f32.vlgmr.msra.gmra.mxu0 %vm185_vm0, %v2867_v18 }
 0x9dc   :  { %10230 = vmatpush3.xpose.msk.msra.mxu0 %vm185_vm0, %v3132_v17  ;;  %10237 = vmatprep.mubr.msk.f32.mxu0 %vm11282_vm1, %v11281_v20 }
 0x9dd   :  { %10231 = vmatprep.subr.mxu0 %v11281_v20 }
 0x9de   :  { %10243 = vmatpush3.xpose.msk.msra.mxu1 %vm185_vm0, %v3135_v59 }
 0x9df   :  { %10244 = vmatprep.subr.mxu1 %v11281_v20 }
 0x9e0   :  { %10232 = vmatpush3.xpose.msk.msra.mxu0 %vm185_vm0, %v3131_v10 }
 0x9e1   :  { %10233 = vmatprep.subr.mxu0 %v11281_v20 }
 0x9e2   :  { %v10144_v47 = vpop.f32.mrf.mxu1  ;;  %v10164_v11 = vpop.f32.mrf.mxu0  ;;  %10245 = vmatpush3.xpose.msk.msra.mxu1 %vm185_vm0, %v3134_v55  ;;  %v11065_v55 = vld [vmem:[#allocation14 + $0x18] sm:$0xff] }
 0x9e3   :  { %10246 = vmatprep.subr.mxu1 %v11281_v20  ;;  %v3001_v62 = vadd.f32 %v10164_v11, %v12132_v2  ;;  %v2892_v18 = vadd.f32 %v10144_v47, %v12158_v53  ;;  %v11066_v47 = vld [vmem:[#allocation14 + $0x10] sm:$0xff]  ;;  %v11067_v11 = vld [vmem:[#allocation14 + $0x8] sm:$0xff] }
 0x9e4   :  { %v2886_v34 = vpop.f32.mrf.mxu1  ;;  %v2995_v25 = vpop.f32.mrf.mxu0  ;;  %10234 = vmatpush3.xpose.msk.msra.mxu0 %vm185_vm0, %v3130_v28  ;;  %v11068_v28 = vld [vmem:[#allocation14] sm:$0xff] }
 0x9e5   :  { %10235 = vmatprep.subr.mxu0 %v11281_v20  ;;  %v2996_v22 = vadd.f32 %v2995_v25, %v12132_v2  ;;  %v3144_v42 = vmul.f32 %v12135_v9, %v3001_v62  ;;  %v3143_v4 = vmul.f32 %v12142_v19, %v3001_v62  ;;  %v3142_v52 = vmul.f32 %v12150_v0, %v3001_v62 }
 0x9e6   :  { %v10175_v8 = vpop.f32.mrf.mxu1  ;;  %10247 = vmatpush3.xpose.msk.msra.mxu1 %vm185_vm0, %v3133_v61  ;;  %v3141_v38 = vmul.f32 %v12162_v63, %v3001_v62  ;;  %v2887_v59 = vadd.f32 %v2886_v34, %v12158_v53 }
 0x9e7   :  { %v12245_v48 = vadd.f32 %v10175_v8, %v12234_v29  ;;  %10262 = vmatprep.subr.mxu1 %v11281_v20  ;;  %v3140_v2 = vmul.f32 %v12135_v9, %v2996_v22  ;;  %v3139_v39 = vmul.f32 %v12142_v19, %v2996_v22  ;;  %v3138_v50 = vmul.f32 %v12150_v0, %v2996_v22 }
 0x9e8   :  { %v3074_v54 = vpop.f32.mrf.mxu1  ;;  %10236 = vmatpush3.xpose.msk.msra.mxu0 %vm185_vm0, %v3129_v44  ;;  %v3137_v17 = vmul.f32 %v12162_v63, %v2996_v22 }
 0x9e9   :  { %10249 = vmatmul.mubr.msk.f32.vlgmr.msra.gmra.mxu1 %vm185_vm0, %v2882_v46  ;;  %10251 = vmatprep.subr.mxu0 %v11281_v20  ;;  %v3075_v3 = vadd.f32 %v3074_v54, %v12234_v29 }
 0x9ea   :  { %v10178_v26 = vpop.f32.mrf.mxu1  ;;  %10263 = vmatpush3.xpose.msk.msra.mxu1 %vm185_vm0, %v3144_v42  ;;  %10270 = vmatprep.mubr.msk.f32.mxu1 %vm11282_vm1, %v11281_v20 }
 0x9eb   :  { %v12256_v57 = vadd.f32 %v10178_v26, %v12234_v29  ;;  %10264 = vmatprep.subr.mxu1 %v11281_v20  ;;  %10238 = vmatmul.mubr.msk.f32.vlgmr.msra.gmra.mxu0 %vm185_vm0, %v2877_v14  ;;  %v3148_v41 = vmul.f32 %v12135_v9, %v3075_v3  ;;  %v3147_v10 = vmul.f32 %v12142_v19, %v3075_v3 }
 0x9ec   :  { %v3084_v5 = vpop.f32.mrf.mxu1  ;;  %10252 = vmatpush3.xpose.msk.msra.mxu0 %vm185_vm0, %v3140_v2  ;;  %10259 = vmatprep.mubr.msk.f32.mxu0 %vm11282_vm1, %v11281_v20  ;;  %v3146_v6 = vmul.f32 %v12150_v0, %v3075_v3  ;;  %v3145_v53 = vmul.f32 %v12162_v63, %v3075_v3 }
 0x9ed   :  { %v12264_v27 = vadd.f32 %v3084_v5, %v12234_v29  ;;  %10253 = vmatprep.subr.mxu0 %v11281_v20 }
 0x9ee   :  { %v10181_v35 = vpop.f32.mrf.mxu1  ;;  %10265 = vmatpush3.xpose.msk.msra.mxu1 %vm185_vm0, %v3143_v4 }
 0x9ef   :  { %v12273_v33 = vadd.f32 %v10181_v35, %v12234_v29  ;;  %10266 = vmatprep.subr.mxu1 %v11281_v20 }
 0x9f0   :  { %v3094_v32 = vpop.f32.mrf.mxu1  ;;  %10254 = vmatpush3.xpose.msk.msra.mxu0 %vm185_vm0, %v3139_v39 }
 0x9f1   :  { %v12278_v15 = vadd.f32 %v3094_v32, %v12234_v29  ;;  %10255 = vmatprep.subr.mxu0 %v11281_v20 }
 0x9f2   :  { %v10184_v13 = vpop.f32.mrf.mxu1  ;;  %10267 = vmatpush3.xpose.msk.msra.mxu1 %vm185_vm0, %v3142_v52 }
 0x9f3   :  { %v12285_v1 = vadd.f32 %v10184_v13, %v12234_v29  ;;  %10268 = vmatprep.subr.mxu1 %v11281_v20 }
 0x9f4   :  { %10256 = vmatpush3.xpose.msk.msra.mxu0 %vm185_vm0, %v3138_v50  ;;  %v12311_v61 = vpop.f32.mrf.mxu1 }
 0x9f5   :  { %10257 = vmatprep.subr.mxu0 %v11281_v20 }
 0x9f6   :  { %10269 = vmatpush3.xpose.msk.msra.mxu1 %vm185_vm0, %v3141_v38 }
 0x9f7   :  { %10293 = vmatprep.subr.mxu1 %v11281_v20 }
 0x9f8   :  { %10258 = vmatpush3.xpose.msk.msra.mxu0 %vm185_vm0, %v3137_v17 }
 0x9f9   :  { %10271 = vmatmul.mubr.msk.f32.vlgmr.msra.gmra.mxu1 %vm185_vm0, %v2892_v18  ;;  %10273 = vmatprep.subr.mxu0 %v11065_v55 }
 0x9fa   :  { %10294 = vmatpush3.msra.mxu1 %v3148_v41  ;;  %10301 = vmatprep.mubr.msk.f32.mxu1 %vm11282_vm1, %v11281_v20 }
 0x9fb   :  { %10295 = vmatprep.subr.mxu1 %v11281_v20  ;;  %10260 = vmatmul.mubr.msk.f32.vlgmr.msra.gmra.mxu0 %vm185_vm0, %v2887_v59 }
 0x9fc   :  { %10296 = vmatpush3.msra.mxu1 %v3147_v10  ;;  %10274 = vmatpush3.msra.mxu0 %v11065_v55 }
 0x9fd   :  { %10297 = vmatprep.subr.mxu1 %v11281_v20  ;;  %10275 = vmatprep.subr.mxu0 %v11066_v47 }
 0x9fe   :  { %10298 = vmatpush3.msra.mxu1 %v3146_v6  ;;  %10276 = vmatpush3.msra.mxu0 %v11066_v47 }
 0x9ff   :  { %10299 = vmatprep.subr.mxu1 %v11281_v20  ;;  %10277 = vmatprep.subr.mxu0 %v11067_v11 }
 0xa00   :  { %10300 = vmatpush3.msra.mxu1 %v3145_v53  ;;  %10278 = vmatpush3.msra.mxu0 %v11067_v11 }
 0xa01   :  { %10304 = vmatprep.subr.mxu1 %v11281_v20  ;;  %10279 = vmatprep.subr.mxu0 %v11068_v28 }
 0xa02   :  { %10280 = vmatpush3.msra.mxu0 %v11068_v28 }
 0xa03   :  { %10315 = vmatprep.subr.mxu0 %v11281_v20 }
 0xa89   :  { %v3343_v62 = vpop.f32.mrf.mxu1 }
 0xa8a   :  { %v3860_v34 = vsel %vm185_vm0, %v3343_v62, -inf }
 0xa8b   :  { %3861 = vmax.xlane.f32.xlu1 %v3860_v34  ;;  %v10206_v25 = vpop.f32.mrf.mxu1  ;;  %v3258_v8 = vpop.f32.mrf.mxu0 }
 0xa8c   :  { %v3857_v46 = vsel %vm185_vm0, %v3258_v8, -inf }
 0xa8d   :  { %3858 = vmax.xlane.f32.xlu0 %v3857_v46  ;;  %v10195_v44 = vpop.f32.mrf.mxu0 }
 0xa99   :  { %v3513_v22 = vpop.f32.mrf.mxu1 }
 0xa9a   :  { %v3866_v42 = vsel %vm185_vm0, %v3513_v22, -inf }
 0xa9b   :  { %3867 = vmax.xlane.f32.xlu1 %v3866_v42  ;;  %v10228_v54 = vpop.f32.mrf.mxu1  ;;  %v3428_v14 = vpop.f32.mrf.mxu0 }
 0xa9c   :  { %v3863_v26 = vsel %vm185_vm0, %v3428_v14, -inf  ;;  %v3153_v54 = vmul.f32 %v12162_v63, %v12264_v27 }
 0xa9d   :  { %3864 = vmax.xlane.f32.xlu0 %v3863_v26  ;;  %v10217_v2 = vpop.f32.mrf.mxu0 }
 0xaa9   :  { %v3683_v4 = vpop.f32.mrf.mxu1 }
 0xaaa   :  { %v3872_v5 = vsel %vm185_vm0, %v3683_v4, -inf }
 0xaab   :  { %3873 = vmax.xlane.f32.xlu1 %v3872_v5  ;;  %v10250_v35 = vpop.f32.mrf.mxu1  ;;  %v3598_v39 = vpop.f32.mrf.mxu0 }
 0xaac   :  { %v3869_v52 = vsel %vm185_vm0, %v3598_v39, -inf }
 0xaad   :  { %3870 = vmax.xlane.f32.xlu0 %v3869_v52  ;;  %v10239_v32 = vpop.f32.mrf.mxu0 }
 0xab9   :  { %v3853_v13 = vpop.f32.mrf.mxu1 }
 0xaba   :  { %v3878_v50 = vsel %vm185_vm0, %v3853_v13, -inf }
 0xabb   :  { %3879 = vmax.xlane.f32.xlu1 %v3878_v50  ;;  %v10272_v38 = vpop.f32.mrf.mxu1  ;;  %v3768_v3 = vpop.f32.mrf.mxu0 }
 0xabc   :  { %v3875_v18 = vsel %vm185_vm0, %v3768_v3, -inf }
 0xabd   :  { %3876 = vmax.xlane.f32.xlu0 %v3875_v18  ;;  %v10261_v17 = vpop.f32.mrf.mxu0 }
 0xb14   :  { %v3862_v41 = vpop.xlane.xlu1 %3861 }
 0xb15   :  { %v3882_v59 = vsub.f32 %v3343_v62, %v3862_v41  ;;  %v3156_v62 = vmul.f32 %v12135_v9, %v12264_v27 }
 0xb16   :  { %v3859_v10 = vpop.xlane.xlu0 %3858 }
 0xb17   :  { %v3881_v55 = vsub.f32 %v3258_v8, %v3859_v10  ;;  %v3891_v6 = vmul.f32 1.442695, %v3882_v59  ;;  %v3155_v8 = vmul.f32 %v12142_v19, %v12264_v27 }
 0xb19   :  { %v3889_v53 = vmul.f32 1.442695, %v3881_v55 }
 0xb1b   :  { %10899 = vpow2.f32 %v3889_v53 }
 0xb1c   :  { %10901 = vpow2.f32 %v3891_v6 }
 0xb24   :  { %v3868_v47 = vpop.xlane.xlu1 %3867 }
 0xb25   :  { %v3884_v11 = vsub.f32 %v3513_v22, %v3868_v47  ;;  %v3154_v22 = vmul.f32 %v12150_v0, %v12264_v27 }
 0xb26   :  { %v3865_v28 = vpop.xlane.xlu0 %3864 }
 0xb27   :  { %v3883_v34 = vsub.f32 %v3428_v14, %v3865_v28  ;;  %v3895_v46 = vmul.f32 1.442695, %v3884_v11  ;;  %v3152_v28 = vmul.f32 %v12135_v9, %v12245_v48 }
 0xb28   :  { %v10900_v25 = vpop.eup %10899 }
 0xb29   :  { %v12321_v44 = vpop.eup %10901  ;;  %v3893_v42 = vmul.f32 1.442695, %v3883_v34  ;;  %10281 = vmatprep.mubr.msk.f32.mxu0 %vm185_vm0, %v10900_v25  ;;  %v3151_v34 = vmul.f32 %v12142_v19, %v12245_v48 }
 0xb2a   :  { %10282 = vmatmul.mubr.msk.f32.vlgmr.msra.gmra.mxu0 %vm185_vm0, %v12321_v44 }
 0xb2b   :  { %10903 = vpow2.f32 %v3893_v42  ;;  %10316 = vmatpush3.msra.mxu0 %v3156_v62  ;;  %v3149_v42 = vmul.f32 %v12162_v63, %v12245_v48 }
 0xb2c   :  { %10905 = vpow2.f32 %v3895_v46  ;;  %10317 = vmatprep.subr.mxu0 %v11281_v20 }
 0xb2d   :  { %10318 = vmatpush3.msra.mxu0 %v3155_v8  ;;  %v3160_v8 = vmul.f32 %v12135_v9, %v12256_v57 }
 0xb2e   :  { %10319 = vmatprep.subr.mxu0 %v11281_v20 }
 0xb2f   :  { %10320 = vmatpush3.msra.mxu0 %v3154_v22  ;;  %v3159_v22 = vmul.f32 %v12142_v19, %v12256_v57 }
 0xb30   :  { %10321 = vmatprep.subr.mxu0 %v11281_v20 }
 0xb31   :  { %10322 = vmatpush3.msra.mxu0 %v3153_v54 }
 0xb32   :  { %10337 = vmatprep.subr.mxu0 %v11281_v20 }
 0xb34   :  { %v3874_v14 = vpop.xlane.xlu1 %3873 }
 0xb35   :  { %v3886_v26 = vsub.f32 %v3683_v4, %v3874_v14 }
 0xb36   :  { %v3871_v2 = vpop.xlane.xlu0 %3870 }
 0xb37   :  { %v3885_v5 = vsub.f32 %v3598_v39, %v3871_v2  ;;  %v3899_v52 = vmul.f32 1.442695, %v3886_v26  ;;  %v3157_v2 = vmul.f32 %v12162_v63, %v12256_v57 }
 0xb38   :  { %v12338_v35 = vpop.eup %10903 }
 0xb39   :  { %v10906_v32 = vpop.eup %10905  ;;  %v3897_v50 = vmul.f32 1.442695, %v3885_v5  ;;  %10284 = vmatprep.mubr.msk.f32.mxu0 %vm185_vm0, %v12338_v35 }
 0xb3a   :  { %10285 = vmatmul.mubr.msk.f32.gmra.mxu0 %vm185_vm0, %v10906_v32 }
 0xb3b   :  { %10907 = vpow2.f32 %v3897_v50  ;;  %v3168_v50 = vmul.f32 %v12135_v9, %v12273_v33 }
 0xb3c   :  { %10909 = vpow2.f32 %v3899_v52 }
 0xb44   :  { %v3880_v27 = vpop.xlane.xlu1 %3879 }
 0xb45   :  { %v3888_v38 = vsub.f32 %v3853_v13, %v3880_v27  ;;  %v3166_v27 = vmul.f32 %v12150_v0, %v12273_v33 }
 0xb46   :  { %v3877_v18 = vpop.xlane.xlu0 %3876 }
 0xb47   :  { %v3887_v17 = vsub.f32 %v3768_v3, %v3877_v18  ;;  %v3903_v4 = vmul.f32 1.442695, %v3888_v38  ;;  %v3162_v38 = vmul.f32 %v12150_v0, %v12278_v15  ;;  %v3165_v18 = vmul.f32 %v12162_v63, %v12273_v33 }
 0xb48   :  { %v12343_v41 = vpop.eup %10907 }
 0xb49   :  { %v12345_v39 = vpop.eup %10909  ;;  %v3901_v59 = vmul.f32 1.442695, %v3887_v17  ;;  %10287 = vmatprep.mubr.msk.f32.mxu0 %vm185_vm0, %v12343_v41  ;;  %v3161_v17 = vmul.f32 %v12162_v63, %v12278_v15 }
 0xb4a   :  { %10288 = vmatmul.mubr.msk.f32.gmra.mxu0 %vm185_vm0, %v12345_v39 }
 0xb4b   :  { %10911 = vpow2.f32 %v3901_v59 }
 0xb4c   :  { %10913 = vpow2.f32 %v3903_v4  ;;  %v3105_v4 = vadd.f32 %v12311_v61, %v12234_v29  ;;  %v3174_v61 = vmul.f32 %v12150_v0, %v12285_v1 }
 0xb4e   :  { %v3171_v29 = vmul.f32 %v12142_v19, %v3105_v4 }
 0xb58   :  { %v12351_v10 = vpop.eup %10911 }
 0xb59   :  { %v12353_v55 = vpop.eup %10913  ;;  %10290 = vmatprep.mubr.msk.f32.mxu0 %vm185_vm0, %v12351_v10 }
 0xb5a   :  { %10291 = vmatmul.mubr.msk.f32.gmra.mxu0 %vm185_vm0, %v12353_v55 }
 0xb5b   :  { %10323 = vmatprep.mubr.msk.f32.mxu0 %vm11282_vm1, %v11281_v20 }
 0xbea   :  { %v10283_v13 = vpop.f32.mrf.mxu0 }
 0xbec   :  { %v3995_v3 = vpop.f32.mrf.mxu0 }
 0xbed   :  { %10915 = vrcp.f32 %v3995_v3  ;;  %v3176_v3 = vmul.f32 %v12135_v9, %v12285_v1 }
 0xbee   :  { %10917 = vrcp.f32 %v10283_v13 }
 0xbfa   :  { %v10916_v6 = vpop.eup %10915  ;;  %v10286_v53 = vpop.f32.mrf.mxu0 }
 0xbfb   :  { %10919 = vrcp.f32 %v10286_v53  ;;  %v4035_v47 = vmul.f32 %v10916_v6, %v10900_v25  ;;  %v10918_v46 = vpop.eup %10917  ;;  %v3150_v25 = vmul.f32 %v12150_v0, %v12245_v48 }
 0xbfc   :  { %v4005_v11 = vpop.f32.mrf.mxu0  ;;  %v4037_v62 = vmul.f32 %v10918_v46, %v12321_v44  ;;  %v3158_v44 = vmul.f32 %v12150_v0, %v12256_v57  ;;  %v3167_v57 = vmul.f32 %v12142_v19, %v12273_v33 }
 0xbfd   :  { %10921 = vrcp.f32 %v4005_v11  ;;  %10302 = vmatmul.mubr.msk.f32.vlgmr.msra.gmra.mxu1 %vm185_vm0, %v4035_v47  ;;  %v3172_v47 = vmul.f32 %v12135_v9, %v3105_v4  ;;  %v3175_v11 = vmul.f32 %v12142_v19, %v12285_v1 }
 0xbfe   :  { %10305 = vmatpush3.msra.mxu1 %v3152_v28  ;;  %10312 = vmatprep.mubr.msk.f32.mxu1 %vm11282_vm1, %v11281_v20 }
 0xbff   :  { %10306 = vmatprep.subr.mxu1 %v11281_v20 }
 0xc00   :  { %10307 = vmatpush3.msra.mxu1 %v3151_v34  ;;  %v9128_v34 = vld [vmem:[%s13438_s4 + $0x30] sm:$0xff] }
 0xc01   :  { %10308 = vmatprep.subr.mxu1 %v11281_v20 }
 0xc02   :  { %10309 = vmatpush3.msra.mxu1 %v3150_v25 }
 0xc03   :  { %10310 = vmatprep.subr.mxu1 %v11281_v20 }
 0xc04   :  { %10311 = vmatpush3.msra.mxu1 %v3149_v42 }
 0xc05   :  { %10313 = vmatmul.mubr.msk.f32.vlgmr.msra.gmra.mxu1 %vm185_vm0, %v4037_v62  ;;  %10326 = vmatprep.subr.mxu1 %v11281_v20 }
 0xc06   :  { %10327 = vmatpush3.msra.mxu1 %v3160_v8  ;;  %10334 = vmatprep.mubr.msk.f32.mxu1 %vm11282_vm1, %v11281_v20 }
 0xc07   :  { %10328 = vmatprep.subr.mxu1 %v11281_v20 }
 0xc08   :  { %v10920_v48 = vpop.eup %10919  ;;  %10329 = vmatpush3.msra.mxu1 %v3159_v22 }
 0xc09   :  { %10330 = vmatprep.subr.mxu1 %v11281_v20  ;;  %v4041_v54 = vmul.f32 %v10920_v48, %v10906_v32  ;;  %v3164_v32 = vmul.f32 %v12135_v9, %v12278_v15  ;;  %v3170_v9 = vmul.f32 %v12150_v0, %v3105_v4 }
 0xc0a   :  { %v10922_v14 = vpop.eup %10921  ;;  %10331 = vmatpush3.msra.mxu1 %v3158_v44  ;;  %v10289_v26 = vpop.f32.mrf.mxu0 }
 0xc0b   :  { %v4039_v5 = vmul.f32 %v10922_v14, %v12338_v35  ;;  %10923 = vrcp.f32 %v10289_v26  ;;  %10332 = vmatprep.subr.mxu1 %v11281_v20  ;;  %v3163_v35 = vmul.f32 %v12142_v19, %v12278_v15  ;;  %v3169_v19 = vmul.f32 %v12162_v63, %v3105_v4 }
 0xc0c   :  { %10333 = vmatpush3.msra.mxu1 %v3157_v2  ;;  %v4015_v52 = vpop.f32.mrf.mxu0 }
 0xc0d   :  { %10925 = vrcp.f32 %v4015_v52  ;;  %10335 = vmatmul.mubr.msk.f32.vlgmr.msra.gmra.mxu1 %vm185_vm0, %v4041_v54  ;;  %10348 = vmatprep.subr.mxu1 %v11281_v20 }
 0xc0e   :  { %10324 = vmatmul.mubr.msk.f32.vlgmr.msra.gmra.mxu0 %vm185_vm0, %v4039_v5  ;;  %10349 = vmatpush3.msra.mxu1 %v3168_v50 }
 0xc0f   :  { %10338 = vmatpush3.msra.mxu0 %v3164_v32  ;;  %10350 = vmatprep.subr.mxu1 %v11281_v20 }
 0xc10   :  { %10339 = vmatprep.subr.mxu0 %v11281_v20  ;;  %10351 = vmatpush3.msra.mxu1 %v3167_v57  ;;  %v4642_v57 = vrot.slane %v12128_v43, %v11826_v16 }
 0xc11   :  { %10340 = vmatpush3.msra.mxu0 %v3163_v35  ;;  %10352 = vmatprep.subr.mxu1 %v11281_v20 }
 0xc12   :  { %10341 = vmatprep.subr.mxu0 %v11281_v20  ;;  %10353 = vmatpush3.msra.mxu1 %v3166_v27 }
 0xc13   :  { %10342 = vmatpush3.msra.mxu0 %v3162_v38  ;;  %10354 = vmatprep.subr.mxu1 %v11281_v20 }
 0xc14   :  { %10343 = vmatprep.subr.mxu0 %v11281_v20  ;;  %10355 = vmatpush3.msra.mxu1 %v3165_v18 }
 0xc15   :  { %10344 = vmatpush3.msra.mxu0 %v3161_v17  ;;  %10356 = vmatprep.mubr.msk.f32.mxu1 %vm11282_vm1, %v11281_v20 }
 0xc16   :  { %10370 = vmatprep.subr.mxu1 %v11281_v20  ;;  %10345 = vmatprep.mubr.msk.f32.mxu0 %vm11282_vm1, %v11281_v20 }
 0xc17   :  { %10359 = vmatprep.subr.mxu0 %v11281_v20 }
 0xc18   :  { %v10924_v33 = vpop.eup %10923 }
 0xc19   :  { %v4045_v15 = vmul.f32 %v10924_v33, %v12345_v39 }
 0xc1a   :  { %v10926_v59 = vpop.eup %10925  ;;  %v10292_v13 = vpop.f32.mrf.mxu0 }
 0xc1b   :  { %10927 = vrcp.f32 %v10292_v13  ;;  %10357 = vmatmul.mubr.msk.f32.vlgmr.msra.gmra.mxu1 %vm185_vm0, %v4045_v15  ;;  %v4043_v6 = vmul.f32 %v10926_v59, %v12343_v41  ;;  %v3173_v41 = vmul.f32 %v12162_v63, %v12285_v1  ;;  %v9129_v63 = vld [vmem:[%s13438_s4 + $0x38] sm:$0xff] }
 0xc1c   :  { %10371 = vmatpush3.msra.mxu1 %v3176_v3  ;;  %v4025_v53 = vpop.f32.mrf.mxu0  ;;  %10378 = vmatprep.mubr.msk.f32.mxu1 %vm11282_vm1, %v11281_v20 }
 0xc1d   :  { %10929 = vrcp.f32 %v4025_v53  ;;  %10372 = vmatprep.subr.mxu1 %v11281_v20  ;;  %10346 = vmatmul.mubr.msk.f32.vlgmr.msra.gmra.mxu0 %vm185_vm0, %v4043_v6 }
 0xc1e   :  { %10360 = vmatpush3.msra.mxu0 %v3172_v47  ;;  %10373 = vmatpush3.msra.mxu1 %v3175_v11 }
 0xc1f   :  { %10361 = vmatprep.subr.mxu0 %v11281_v20  ;;  %10374 = vmatprep.subr.mxu1 %v11281_v20 }
 0xc20   :  { %10362 = vmatpush3.msra.mxu0 %v3171_v29  ;;  %10375 = vmatpush3.msra.mxu1 %v3174_v61 }
 0xc21   :  { %10363 = vmatprep.subr.mxu0 %v11281_v20  ;;  %10376 = vmatprep.subr.mxu1 %v11281_v20 }
 0xc22   :  { %10364 = vmatpush3.msra.mxu0 %v3170_v9  ;;  %10377 = vmatpush3.msra.mxu1 %v3173_v41 }
 0xc23   :  { %10365 = vmatprep.subr.mxu0 %v11281_v20  ;;  %10367 = vmatprep.mubr.msk.f32.mxu0 %vm11282_vm1, %v11281_v20 }
 0xc24   :  { %10366 = vmatpush3.msra.mxu0 %v3169_v19 }
 0xc25   :  { %10381 = vmatprep.subr.mxu0 %v9129_v63 }
 0xc28   :  { %v10928_v39 = vpop.eup %10927 }
 0xc29   :  { %v4049_v0 = vmul.f32 %v10928_v39, %v12353_v55  ;;  %v9127_v55 = vld [vmem:[%s13438_s4 + $0x28] sm:$0xff] }
 0xc2a   :  { %v10930_v28 = vpop.eup %10929 }
 0xc2b   :  { %10379 = vmatmul.mubr.msk.f32.vlgmr.msra.gmra.mxu1 %vm185_vm0, %v4049_v0  ;;  %v4047_v1 = vmul.f32 %v10930_v28, %v12351_v10  ;;  %v9126_v10 = vld [vmem:[%s13438_s4 + $0x20] sm:$0xff] }
 0xc2d   :  { %10368 = vmatmul.mubr.msk.f32.vlgmr.msra.gmra.mxu0 %vm185_vm0, %v4047_v1 }
 0xc2e   :  { %10382 = vmatpush3.msra.mxu0 %v9129_v63 }
 0xc2f   :  { %10383 = vmatprep.subr.mxu0 %v9128_v34 }
 0xc30   :  { %10384 = vmatpush3.msra.mxu0 %v9128_v34 }
 0xc31   :  { %10385 = vmatprep.subr.mxu0 %v9127_v55 }
 0xc32   :  { %10386 = vmatpush3.msra.mxu0 %v9127_v55 }
 0xc33   :  { %10387 = vmatprep.subr.mxu0 %v9126_v10 }
 0xc34   :  { %10388 = vmatpush3.msra.mxu0 %v9126_v10 }
 0xcbd   :  { %v4119_v46 = vpop.f32.mrf.mxu1 }
 0xcbe   :  { %10389 = vmatprep.mubr.msk.f32.mxu0 %vm185_vm0, %v4119_v46 }
 0xcbf   :  { %v10303_v25 = vpop.f32.mrf.mxu1 }
 0xcc5   :  { %v4192_v42 = vpop.f32.mrf.mxu1 }
 0xcc6   :  { %10390 = vmatmul.mubr.msk.f32.vlgmr.msra.gmra.mxu0 %vm185_vm0, %v4192_v42 }
 0xcc7   :  { %v10314_v62 = vpop.f32.mrf.mxu1 }
 0xccd   :  { %v4338_v8 = vpop.f32.mrf.mxu1 }
 0xcce   :  { %v4265_v22 = vpop.f32.mrf.mxu0 }
 0xccf   :  { %v10336_v48 = vpop.f32.mrf.mxu1  ;;  %10392 = vmatprep.mubr.msk.f32.mxu0 %vm185_vm0, %v4265_v22 }
 0xcd0   :  { %v10325_v44 = vpop.f32.mrf.mxu0  ;;  %10393 = vmatmul.mubr.msk.f32.gmra.mxu0 %vm185_vm0, %v4338_v8 }
 0xcdb   :  { %v4484_v54 = vpop.f32.mrf.mxu1 }
 0xcdd   :  { %v4411_v14 = vpop.f32.mrf.mxu0  ;;  %v10358_v26 = vpop.f32.mrf.mxu1 }
 0xcde   :  { %10395 = vmatprep.mubr.msk.f32.mxu0 %vm185_vm0, %v4411_v14 }
 0xcdf   :  { %v10347_v2 = vpop.f32.mrf.mxu0  ;;  %10396 = vmatmul.mubr.msk.f32.gmra.mxu0 %vm185_vm0, %v4484_v54 }
 0xceb   :  { %v4630_v5 = vpop.f32.mrf.mxu1 }
 0xced   :  { %v4557_v52 = vpop.f32.mrf.mxu0  ;;  %v10380_v50 = vpop.f32.mrf.mxu1 }
 0xcee   :  { %10398 = vmatprep.mubr.msk.f32.mxu0 %vm185_vm0, %v4557_v52 }
 0xcef   :  { %v10369_v32 = vpop.f32.mrf.mxu0  ;;  %10399 = vmatmul.mubr.msk.f32.gmra.mxu0 %vm185_vm0, %v4630_v5 }
 0xd86   :  { %v10391_v35 = vpop.f32.mrf.mxu0 }
 0xd87   :  { %v4739_v27 = vadd.f32 %v10391_v35, %v4642_v57 }
 0xd88   :  { %v4733_v38 = vpop.f32.mrf.mxu0 }
 0xd89   :  { %v4734_v18 = vadd.f32 %v4733_v38, %v4642_v57  ;;  %v4773_v17 = vadd.f32 %v4739_v27, %v12040_v58 }
 0xd8b   :  { %v4783_v33 = vsel %vm185_vm0, %v4773_v17, 0.0  ;;  %v4772_v4 = vadd.f32 %v4734_v18, %v12037_v30 }
 0xd8c   :  { %4784 = vadd.xlane.f32.xlu1 %v4783_v33 }
 0xd8d   :  { %v4780_v15 = vsel %vm185_vm0, %v4772_v4, 0.0 }
 0xd8e   :  { %4781 = vadd.xlane.f32.xlu0 %v4780_v15 }
 0xd90   :  { %v10394_v59 = vpop.f32.mrf.mxu0 }
 0xd91   :  { %v4749_v13 = vadd.f32 %v10394_v59, %v4642_v57  ;;  %v4912_v59 = vld [vmem:[#allocation8 + $0x38] sm:$0xff] }
 0xd92   :  { %v4743_v3 = vpop.f32.mrf.mxu0  ;;  %10401 = vmatprep.subr.mxu1 %v4912_v59 }
 0xd93   :  { %v4744_v6 = vadd.f32 %v4743_v3, %v4642_v57  ;;  %v4775_v43 = vadd.f32 %v4749_v13, %v12059_v12  ;;  %v4911_v13 = vld [vmem:[#allocation8 + $0x30] sm:$0xff]  ;;  %10402 = vmatpush3.msra.mxu1 %v4912_v59  ;;  %v4910_v3 = vld [vmem:[#allocation8 + $0x28] sm:$0xff] }
 0xd94   :  { %10403 = vmatprep.subr.mxu1 %v4911_v13 }
 0xd95   :  { %v4789_v53 = vsel %vm185_vm0, %v4775_v43, 0.0  ;;  %v4774_v47 = vadd.f32 %v4744_v6, %v12056_v7  ;;  %10404 = vmatpush3.msra.mxu1 %v4911_v13  ;;  %v4909_v6 = vld [vmem:[#allocation8 + $0x20] sm:$0xff] }
 0xd96   :  { %4790 = vadd.xlane.f32.xlu1 %v4789_v53  ;;  %10405 = vmatprep.subr.mxu1 %v4910_v3 }
 0xd97   :  { %v4786_v58 = vsel %vm185_vm0, %v4774_v47, 0.0  ;;  %10406 = vmatpush3.msra.mxu1 %v4910_v3 }
 0xd98   :  { %4787 = vadd.xlane.f32.xlu0 %v4786_v58  ;;  %10407 = vmatprep.subr.mxu1 %v4909_v6 }
 0xd99   :  { %10408 = vmatpush3.msra.mxu1 %v4909_v6 }
 0xd9f   :  { %v10397_v11 = vpop.f32.mrf.mxu0 }
 0xda0   :  { %v4759_v30 = vadd.f32 %v10397_v11, %v4642_v57 }
 0xda1   :  { %v4753_v29 = vpop.f32.mrf.mxu0 }
 0xda2   :  { %v4754_v61 = vadd.f32 %v4753_v29, %v4642_v57  ;;  %v4777_v9 = vadd.f32 %v4759_v30, %v12077_v49 }
 0xda4   :  { %v4795_v41 = vsel %vm185_vm0, %v4777_v9, 0.0  ;;  %v4776_v19 = vadd.f32 %v4754_v61, %v12074_v56 }
 0xda5   :  { %4796 = vadd.xlane.f32.xlu1 %v4795_v41 }
 0xda6   :  { %v4792_v12 = vsel %vm185_vm0, %v4776_v19, 0.0 }
 0xda7   :  { %4793 = vadd.xlane.f32.xlu0 %v4792_v12  ;;  %v5057_v12 = vld [vmem:[#allocation10 + $0x30] sm:$0xff] }
 0xdaf   :  { %v10400_v39 = vpop.f32.mrf.mxu0 }
 0xdb0   :  { %v4769_v7 = vadd.f32 %v10400_v39, %v4642_v57 }
 0xdb1   :  { %v4763_v0 = vpop.f32.mrf.mxu0 }
 0xdb2   :  { %v4764_v28 = vadd.f32 %v4763_v0, %v4642_v57  ;;  %v4779_v1 = vadd.f32 %v4769_v7, %v12095_v31 }
 0xdb4   :  { %v4801_v63 = vsel %vm185_vm0, %v4779_v1, 0.0  ;;  %v4778_v34 = vadd.f32 %v4764_v28, %v12092_v60 }
 0xdb5   :  { %4802 = vadd.xlane.f32.xlu1 %v4801_v63 }
 0xdb6   :  { %v4798_v49 = vsel %vm185_vm0, %v4778_v34, 0.0 }
 0xdb7   :  { %4799 = vadd.xlane.f32.xlu0 %v4798_v49 }
 0xe15   :  { %v4785_v55 = vpop.xlane.xlu1 %4784 }
 0xe16   :  { %v4805_v56 = vmul.f32 0.03125, %v4785_v55 }
 0xe17   :  { %v4782_v10 = vpop.xlane.xlu0 %4781 }
 0xe18   :  { %v12493_v46 = vsub.f32 %v4773_v17, %v4805_v56  ;;  %v4804_v25 = vmul.f32 0.03125, %v4782_v10 }
 0xe1a   :  { %v12495_v42 = vsub.f32 %v4772_v4, %v4804_v25  ;;  %v4821_v62 = vmul.f32 %v12493_v46, %v12493_v46 }
 0xe1c   :  { %v4831_v31 = vsel %vm185_vm0, %v4821_v62, 0.0  ;;  %v4820_v60 = vmul.f32 %v12495_v42, %v12495_v42 }
 0xe1d   :  { %4832 = vadd.xlane.f32.xlu1 %v4831_v31  ;;  %v12536_v31 = vld [vmem:[%s13441_s7 + $0x10] sm:$0xff] }
 0xe1e   :  { %v4828_v8 = vsel %vm185_vm0, %v4820_v60, 0.0  ;;  %v4887_v60 = vrot.slane %v12536_v31, %v11886_v51 }
 0xe1f   :  { %v4791_v22 = vpop.xlane.xlu1 %4790  ;;  %4829 = vadd.xlane.f32.xlu0 %v4828_v8 }
 0xe20   :  { %v4807_v48 = vmul.f32 0.03125, %v4791_v22 }
 0xe21   :  { %v4788_v44 = vpop.xlane.xlu0 %4787 }
 0xe22   :  { %v12503_v54 = vsub.f32 %v4775_v43, %v4807_v48  ;;  %v4806_v14 = vmul.f32 0.03125, %v4788_v44  ;;  %v4899_v44 = vrot.slane %v12536_v31, %v11896_v40 }
 0xe24   :  { %v12505_v26 = vsub.f32 %v4774_v47, %v4806_v14  ;;  %v4823_v2 = vmul.f32 %v12503_v54, %v12503_v54 }
 0xe26   :  { %v4837_v5 = vsel %vm185_vm0, %v4823_v2, 0.0  ;;  %v4822_v52 = vmul.f32 %v12505_v26, %v12505_v26 }
 0xe27   :  { %4838 = vadd.xlane.f32.xlu1 %v4837_v5 }
 0xe28   :  { %v4834_v50 = vsel %vm185_vm0, %v4822_v52, 0.0 }
 0xe29   :  { %4835 = vadd.xlane.f32.xlu0 %v4834_v50 }
 0xe2e   :  { %v4797_v32 = vpop.xlane.xlu1 %4796 }
 0xe2f   :  { %v4809_v57 = vmul.f32 0.03125, %v4797_v32 }
 0xe30   :  { %v4794_v35 = vpop.xlane.xlu0 %4793 }
 0xe31   :  { %v12513_v27 = vsub.f32 %v4777_v9, %v4809_v57  ;;  %v4808_v38 = vmul.f32 0.03125, %v4794_v35 }
 0xe33   :  { %v12515_v18 = vsub.f32 %v4776_v19, %v4808_v38  ;;  %v4825_v17 = vmul.f32 %v12513_v27, %v12513_v27  ;;  %v5058_v19 = vld [vmem:[#allocation10 + $0x38] sm:$0xff] }
 0xe34   :  { %10421 = vmatprep.subr.mxu0 %v5058_v19 }
 0xe35   :  { %v4843_v33 = vsel %vm185_vm0, %v4825_v17, 0.0  ;;  %v4824_v4 = vmul.f32 %v12515_v18, %v12515_v18  ;;  %10422 = vmatpush3.msra.mxu0 %v5058_v19 }
 0xe36   :  { %4844 = vadd.xlane.f32.xlu1 %v4843_v33  ;;  %10423 = vmatprep.subr.mxu0 %v5057_v12 }
 0xe37   :  { %v4840_v15 = vsel %vm185_vm0, %v4824_v4, 0.0  ;;  %10424 = vmatpush3.msra.mxu0 %v5057_v12 }
 0xe38   :  { %4841 = vadd.xlane.f32.xlu0 %v4840_v15 }
 0xe3e   :  { %v4803_v43 = vpop.xlane.xlu1 %4802 }
 0xe3f   :  { %v4811_v53 = vmul.f32 0.03125, %v4803_v43 }
 0xe40   :  { %v4800_v47 = vpop.xlane.xlu0 %4799 }
 0xe41   :  { %v12523_v58 = vsub.f32 %v4779_v1, %v4811_v53  ;;  %v4810_v11 = vmul.f32 0.03125, %v4800_v47 }
 0xe43   :  { %v12525_v30 = vsub.f32 %v4778_v34, %v4810_v11  ;;  %v4827_v29 = vmul.f32 %v12523_v58, %v12523_v58 }
 0xe45   :  { %v4849_v61 = vsel %vm185_vm0, %v4827_v29, 0.0  ;;  %v4826_v9 = vmul.f32 %v12525_v30, %v12525_v30 }
 0xe46   :  { %4850 = vadd.xlane.f32.xlu1 %v4849_v61 }
 0xe47   :  { %v4846_v41 = vsel %vm185_vm0, %v4826_v9, 0.0 }
 0xe48   :  { %4847 = vadd.xlane.f32.xlu0 %v4846_v41 }
 0xea6   :  { %v4833_v39 = vpop.xlane.xlu1 %4832 }
 0xea7   :  { %v4853_v7 = vmul.f32 0.03125, %v4833_v39 }
 0xea8   :  { %v4830_v0 = vpop.xlane.xlu0 %4829 }
 0xea9   :  { %v4861_v28 = vadd.f32 1e-05, %v4853_v7  ;;  %v4852_v1 = vmul.f32 0.03125, %v4830_v0 }
 0xeab   :  { %10931 = vrsqrt.f32 %v4861_v28  ;;  %v4860_v63 = vadd.f32 1e-05, %v4852_v1 }
 0xead   :  { %10933 = vrsqrt.f32 %v4860_v63 }
 0xeb0   :  { %v4839_v34 = vpop.xlane.xlu1 %4838 }
 0xeb1   :  { %v4855_v49 = vmul.f32 0.03125, %v4839_v34 }
 0xeb2   :  { %v4836_v55 = vpop.xlane.xlu0 %4835 }
 0xeb3   :  { %v4863_v56 = vadd.f32 1e-05, %v4855_v49  ;;  %v4854_v10 = vmul.f32 0.03125, %v4836_v55  ;;  %v5056_v49 = vld [vmem:[#allocation10 + $0x28] sm:$0xff]  ;;  %v5055_v55 = vld [vmem:[#allocation10 + $0x20] sm:$0xff] }
 0xeb4   :  { %10425 = vmatprep.subr.mxu0 %v5056_v49 }
 0xeb5   :  { %10935 = vrsqrt.f32 %v4863_v56  ;;  %v4862_v25 = vadd.f32 1e-05, %v4854_v10  ;;  %10426 = vmatpush3.msra.mxu0 %v5056_v49 }
 0xeb6   :  { %10427 = vmatprep.subr.mxu0 %v5055_v55 }
 0xeb7   :  { %10937 = vrsqrt.f32 %v4862_v25  ;;  %10428 = vmatpush3.msra.mxu0 %v5055_v55 }
 0xeb8   :  { %v10932_v62 = vpop.eup %10931 }
 0xeb9   :  { %v4877_v8 = vmul.f32 %v10932_v62, %v12493_v46 }
 0xeba   :  { %v10934_v22 = vpop.eup %10933 }
 0xebb   :  { %v4876_v48 = vmul.f32 %v10934_v22, %v12495_v42  ;;  %v4889_v14 = vmul.f32 %v4887_v60, %v4877_v8 }
 0xebd   :  { %v4888_v2 = vmul.f32 %v4887_v60, %v4876_v48  ;;  %v12546_v32 = vadd.f32 %v4899_v44, %v4889_v14 }
 0xebf   :  { %v4845_v5 = vpop.xlane.xlu1 %4844  ;;  %v12544_v52 = vadd.f32 %v4899_v44, %v4888_v2 }
 0xec0   :  { %v4857_v50 = vmul.f32 0.03125, %v4845_v5 }
 0xec1   :  { %10409 = vmatprep.mubr.msk.f32.mxu1 %vm185_vm0, %v12544_v52  ;;  %v4842_v57 = vpop.xlane.xlu0 %4841 }
 0xec2   :  { %v10936_v35 = vpop.eup %10935  ;;  %v4865_v46 = vadd.f32 1e-05, %v4857_v50  ;;  %10410 = vmatmul.mubr.msk.f32.vlgmr.msra.gmra.mxu1 %vm185_vm0, %v12546_v32  ;;  %v4856_v42 = vmul.f32 0.03125, %v4842_v57 }
 0xec3   :  { %v4879_v38 = vmul.f32 %v10936_v35, %v12503_v54 }
 0xec4   :  { %v10938_v17 = vpop.eup %10937  ;;  %10939 = vrsqrt.f32 %v4865_v46  ;;  %v4864_v33 = vadd.f32 1e-05, %v4856_v42 }
 0xec5   :  { %v4878_v4 = vmul.f32 %v10938_v17, %v12505_v26  ;;  %v4891_v15 = vmul.f32 %v4887_v60, %v4879_v38 }
 0xec6   :  { %10941 = vrsqrt.f32 %v4864_v33 }
 0xec7   :  { %v4890_v59 = vmul.f32 %v4887_v60, %v4878_v4  ;;  %v12556_v3 = vadd.f32 %v4899_v44, %v4891_v15 }
 0xec9   :  { %v12554_v13 = vadd.f32 %v4899_v44, %v4890_v59 }
 0xecb   :  { %10412 = vmatprep.mubr.msk.f32.mxu1 %vm185_vm0, %v12554_v13 }
 0xecc   :  { %10413 = vmatmul.mubr.msk.f32.gmra.mxu1 %vm185_vm0, %v12556_v3 }
 0xecf   :  { %v4851_v6 = vpop.xlane.xlu1 %4850 }
 0xed0   :  { %v4859_v54 = vmul.f32 0.03125, %v4851_v6  ;;  %v5062_v6 = vrot.slane %v12536_v31, %v11954_v37 }
 0xed1   :  { %v10940_v43 = vpop.eup %10939  ;;  %v4848_v53 = vpop.xlane.xlu0 %4847 }
 0xed2   :  { %v4867_v47 = vadd.f32 1e-05, %v4859_v54  ;;  %v4858_v11 = vmul.f32 0.03125, %v4848_v53  ;;  %v4881_v26 = vmul.f32 %v10940_v43, %v12513_v27 }
 0xed3   :  { %v10942_v29 = vpop.eup %10941 }
 0xed4   :  { %10943 = vrsqrt.f32 %v4867_v47  ;;  %v4866_v61 = vadd.f32 1e-05, %v4858_v11  ;;  %v4880_v9 = vmul.f32 %v10942_v29, %v12515_v18  ;;  %v4893_v41 = vmul.f32 %v4887_v60, %v4881_v26 }
 0xed6   :  { %10945 = vrsqrt.f32 %v4866_v61  ;;  %v4892_v19 = vmul.f32 %v4887_v60, %v4880_v9  ;;  %v12566_v39 = vadd.f32 %v4899_v44, %v4893_v41 }
 0xed8   :  { %v12564_v12 = vadd.f32 %v4899_v44, %v4892_v19 }
 0xeda   :  { %10415 = vmatprep.mubr.msk.f32.mxu1 %vm185_vm0, %v12564_v12 }
 0xedb   :  { %10416 = vmatmul.mubr.msk.f32.gmra.mxu1 %vm185_vm0, %v12566_v39 }
 0xee1   :  { %v10944_v7 = vpop.eup %10943 }
 0xee2   :  { %v4883_v27 = vmul.f32 %v10944_v7, %v12523_v58  ;;  %v4916_v58 = vrot.slane %v12536_v31, %v11941_v24 }
 0xee3   :  { %v10946_v0 = vpop.eup %10945 }
 0xee4   :  { %v4882_v28 = vmul.f32 %v10946_v0, %v12525_v30  ;;  %v4895_v18 = vmul.f32 %v4887_v60, %v4883_v27 }
 0xee6   :  { %v4894_v1 = vmul.f32 %v4887_v60, %v4882_v28  ;;  %v12576_v34 = vadd.f32 %v4899_v44, %v4895_v18 }
 0xee8   :  { %v12574_v63 = vadd.f32 %v4899_v44, %v4894_v1 }
 0xeea   :  { %10418 = vmatprep.mubr.msk.f32.mxu1 %vm185_vm0, %v12574_v63 }
 0xeeb   :  { %10419 = vmatmul.mubr.msk.f32.gmra.mxu1 %vm185_vm0, %v12576_v34 }
 0xf82   :  { %v10411_v30 = vpop.f32.mrf.mxu1 }
 0xf83   :  { %v5013_v56 = vadd.f32 %v10411_v30, %v4916_v58 }
 0xf84   :  { %v5007_v10 = vpop.f32.mrf.mxu1 }
 0xf85   :  { %v5008_v25 = vadd.f32 %v5007_v10, %v4916_v58  ;;  %v5047_v60 = vmax.f32 %v5013_v56, 0.0 }
 0xf87   :  { %v5046_v62 = vmax.f32 %v5008_v25, 0.0 }
 0xf89   :  { %10429 = vmatprep.mubr.msk.f32.mxu0 %vm185_vm0, %v5046_v62 }
 0xf8a   :  { %10430 = vmatmul.mubr.msk.f32.vlgmr.msra.gmra.mxu0 %vm185_vm0, %v5047_v60 }
 0xf8c   :  { %v10414_v8 = vpop.f32.mrf.mxu1 }
 0xf8d   :  { %v5023_v22 = vadd.f32 %v10414_v8, %v4916_v58 }
 0xf8e   :  { %v5017_v48 = vpop.f32.mrf.mxu1 }
 0xf8f   :  { %v5018_v44 = vadd.f32 %v5017_v48, %v4916_v58  ;;  %v5049_v2 = vmax.f32 %v5023_v22, 0.0 }
 0xf91   :  { %v5048_v14 = vmax.f32 %v5018_v44, 0.0 }
 0xf93   :  { %10432 = vmatprep.mubr.msk.f32.mxu0 %vm185_vm0, %v5048_v14 }
 0xf94   :  { %10433 = vmatmul.mubr.msk.f32.gmra.mxu0 %vm185_vm0, %v5049_v2 }
 0xf9b   :  { %v10417_v5 = vpop.f32.mrf.mxu1 }
 0xf9c   :  { %v5033_v50 = vadd.f32 %v10417_v5, %v4916_v58 }
 0xf9d   :  { %v5027_v57 = vpop.f32.mrf.mxu1 }
 0xf9e   :  { %v5028_v35 = vadd.f32 %v5027_v57, %v4916_v58  ;;  %v5051_v42 = vmax.f32 %v5033_v50, 0.0 }
 0xfa0   :  { %v5050_v46 = vmax.f32 %v5028_v35, 0.0 }
 0xfa2   :  { %10435 = vmatprep.mubr.msk.f32.mxu0 %vm185_vm0, %v5050_v46 }
 0xfa3   :  { %10436 = vmatmul.mubr.msk.f32.gmra.mxu0 %vm185_vm0, %v5051_v42 }
 0xfab   :  { %v10420_v38 = vpop.f32.mrf.mxu1 }
 0xfac   :  { %v5043_v17 = vadd.f32 %v10420_v38, %v4916_v58 }
 0xfad   :  { %v5037_v33 = vpop.f32.mrf.mxu1 }
 0xfae   :  { %v5038_v4 = vadd.f32 %v5037_v33, %v4916_v58  ;;  %v5053_v59 = vmax.f32 %v5043_v17, 0.0 }
 0xfb0   :  { %v5052_v15 = vmax.f32 %v5038_v4, 0.0 }
 0xfb2   :  { %10438 = vmatprep.mubr.msk.f32.mxu0 %vm185_vm0, %v5052_v15 }
 0xfb3   :  { %10439 = vmatmul.mubr.msk.f32.gmra.mxu0 %vm185_vm0, %v5053_v59 }
0x104a   :  { %v10431_v54 = vpop.f32.mrf.mxu0 }
0x104b   :  { %v5159_v43 = vadd.f32 %v10431_v54, %v5062_v6 }
0x104c   :  { %v5153_v53 = vpop.f32.mrf.mxu0 }
0x104d   :  { %v5154_v47 = vadd.f32 %v5153_v53, %v5062_v6  ;;  %v5193_v11 = vadd.f32 %v5159_v43, %v12546_v32 }
0x104f   :  { %v5203_v26 = vsel %vm185_vm0, %v5193_v11, 0.0  ;;  %v5192_v29 = vadd.f32 %v5154_v47, %v12544_v52 }
0x1050   :  { %5204 = vadd.xlane.f32.xlu1 %v5203_v26 }
0x1051   :  { %v5200_v61 = vsel %vm185_vm0, %v5192_v29, 0.0 }
0x1052   :  { %5201 = vadd.xlane.f32.xlu0 %v5200_v61 }
0x1054   :  { %v10434_v9 = vpop.f32.mrf.mxu0 }
0x1055   :  { %v5169_v41 = vadd.f32 %v10434_v9, %v5062_v6  ;;  %v5336_v9 = vld [vmem:[#allocation7 + $0xf8] sm:$0xff] }
0x1056   :  { %v5163_v19 = vpop.f32.mrf.mxu0  ;;  %10461 = vmatprep.subr.mxu0 %v5336_v9 }
0x1057   :  { %v5164_v7 = vadd.f32 %v5163_v19, %v5062_v6  ;;  %v5195_v31 = vadd.f32 %v5169_v41, %v12556_v3  ;;  %v5332_v41 = vld [vmem:[#allocation7 + $0xd8] sm:$0xff]  ;;  %v5335_v19 = vld [vmem:[#allocation7 + $0xf0] sm:$0xff]  ;;  %10462 = vmatpush3.msra.mxu0 %v5336_v9  ;;  %v5338_v9 = vld [vmem:[#allocation7 + $0x108] sm:$0xff] }
0x1058   :  { %10441 = vmatprep.subr.mxu1 %v5332_v41  ;;  %10463 = vmatprep.subr.mxu0 %v5335_v19 }
0x1059   :  { %v5209_v27 = vsel %vm185_vm0, %v5195_v31, 0.0  ;;  %v5194_v0 = vadd.f32 %v5164_v7, %v12554_v13  ;;  %v5331_v7 = vld [vmem:[#allocation7 + $0xd0] sm:$0xff]  ;;  %10442 = vmatpush3.msra.mxu1 %v5332_v41  ;;  %10464 = vmatpush3.msra.mxu0 %v5335_v19 }
0x105a   :  { %5210 = vadd.xlane.f32.xlu1 %v5209_v27  ;;  %v5330_v27 = vld [vmem:[#allocation7 + $0xc8] sm:$0xff]  ;;  %10443 = vmatprep.subr.mxu1 %v5331_v7 }
0x105b   :  { %v5206_v32 = vsel %vm185_vm0, %v5194_v0, 0.0  ;;  %10444 = vmatpush3.msra.mxu1 %v5331_v7 }
0x105c   :  { %5207 = vadd.xlane.f32.xlu0 %v5206_v32  ;;  %v5333_v32 = vld [vmem:[#allocation7 + $0xe0] sm:$0xff]  ;;  %10445 = vmatprep.subr.mxu1 %v5330_v27 }
0x105d   :  { %10446 = vmatpush3.msra.mxu1 %v5330_v27 }
0x1063   :  { %v10437_v28 = vpop.f32.mrf.mxu0 }
0x1064   :  { %v5179_v52 = vadd.f32 %v10437_v28, %v5062_v6  ;;  %v5329_v28 = vld [vmem:[#allocation7 + $0xc0] sm:$0xff] }
0x1065   :  { %v5173_v18 = vpop.f32.mrf.mxu0  ;;  %10447 = vmatprep.subr.mxu1 %v5329_v28 }
0x1066   :  { %v5174_v1 = vadd.f32 %v5173_v18, %v5062_v6  ;;  %v5197_v49 = vadd.f32 %v5179_v52, %v12566_v39  ;;  %10448 = vmatpush3.msra.mxu1 %v5329_v28 }
0x1068   :  { %v5215_v55 = vsel %vm185_vm0, %v5197_v49, 0.0  ;;  %v5196_v58 = vadd.f32 %v5174_v1, %v12564_v12 }
0x1069   :  { %5216 = vadd.xlane.f32.xlu1 %v5215_v55 }
0x106a   :  { %v5212_v3 = vsel %vm185_vm0, %v5196_v58, 0.0 }
0x106b   :  { %5213 = vadd.xlane.f32.xlu0 %v5212_v3 }
0x1073   :  { %v10440_v30 = vpop.f32.mrf.mxu0 }
0x1074   :  { %v5189_v13 = vadd.f32 %v10440_v30, %v5062_v6 }
0x1075   :  { %v5183_v56 = vpop.f32.mrf.mxu0 }
0x1076   :  { %v5184_v10 = vadd.f32 %v5183_v56, %v5062_v6  ;;  %v12607_v25 = vadd.f32 %v5189_v13, %v12576_v34  ;;  %v5340_v56 = vld [vmem:[#allocation7 + $0x118] sm:$0xff] }
0x1077   :  { %10481 = vmatprep.subr.mxu1 %v5340_v56 }
0x1078   :  { %v5221_v62 = vsel %vm185_vm0, %v12607_v25, 0.0  ;;  %v12612_v39 = vadd.f32 %v5184_v10, %v12574_v63 }
0x1079   :  { %5222 = vadd.xlane.f32.xlu1 %v5221_v62 }
0x107a   :  { %v5218_v12 = vsel %vm185_vm0, %v12612_v39, 0.0 }
0x107b   :  { %5219 = vadd.xlane.f32.xlu0 %v5218_v12 }
0x10d9   :  { %v5205_v60 = vpop.xlane.xlu1 %5204 }
0x10da   :  { %v5225_v8 = vmul.f32 0.03125, %v5205_v60 }
0x10db   :  { %v5202_v22 = vpop.xlane.xlu0 %5201 }
0x10dc   :  { %v12616_v48 = vsub.f32 %v5193_v11, %v5225_v8  ;;  %v5224_v44 = vmul.f32 0.03125, %v5202_v22 }
0x10de   :  { %v12618_v14 = vsub.f32 %v5192_v29, %v5224_v44  ;;  %v5241_v34 = vmul.f32 %v12616_v48, %v12616_v48 }
0x10e0   :  { %v5251_v2 = vsel %vm185_vm0, %v5241_v34, 0.0  ;;  %v5240_v63 = vmul.f32 %v12618_v14, %v12618_v14 }
0x10e1   :  { %5252 = vadd.xlane.f32.xlu1 %v5251_v2 }
0x10e2   :  { %v5248_v5 = vsel %vm185_vm0, %v5240_v63, 0.0  ;;  %v9045_v63 = vld [vmem:[%s13441_s7 + $0x18] sm:$0x3] }
0x10e3   :  { %v5211_v50 = vpop.xlane.xlu1 %5210  ;;  %5249 = vadd.xlane.f32.xlu0 %v5248_v5 }
0x10e4   :  { %v5227_v57 = vmul.f32 0.03125, %v5211_v50 }
0x10e5   :  { %v5208_v35 = vpop.xlane.xlu0 %5207 }
0x10e6   :  { %v12626_v46 = vsub.f32 %v5195_v31, %v5227_v57  ;;  %v5226_v42 = vmul.f32 0.03125, %v5208_v35  ;;  %v5334_v31 = vld [vmem:[#allocation7 + $0xe8] sm:$0xff]  ;;  %v12663_v57 = vrot.slane %v9045_v63, %v11494_v36 }
0x10e7   :  { %10465 = vmatprep.subr.mxu0 %v5334_v31 }
0x10e8   :  { %v12628_v38 = vsub.f32 %v5194_v0, %v5226_v42  ;;  %v5243_v17 = vmul.f32 %v12626_v46, %v12626_v46  ;;  %10466 = vmatpush3.msra.mxu0 %v5334_v31  ;;  %v5337_v31 = vld [vmem:[#allocation7 + $0x100] sm:$0xff] }
0x10e9   :  { %10467 = vmatprep.subr.mxu0 %v5333_v32 }
0x10ea   :  { %v5257_v33 = vsel %vm185_vm0, %v5243_v17, 0.0  ;;  %v5242_v4 = vmul.f32 %v12628_v38, %v12628_v38  ;;  %10468 = vmatpush3.msra.mxu0 %v5333_v32 }
0x10eb   :  { %5258 = vadd.xlane.f32.xlu1 %v5257_v33  ;;  %10501 = vmatprep.subr.mxu0 %v11281_v20 }
0x10ec   :  { %v5254_v15 = vsel %vm185_vm0, %v5242_v4, 0.0  ;;  %v12669_v4 = vrot.slane %v9045_v63, %v11469_v23 }
0x10ed   :  { %5255 = vadd.xlane.f32.xlu0 %v5254_v15 }
0x10f2   :  { %v5217_v59 = vpop.xlane.xlu1 %5216 }
0x10f3   :  { %v5229_v6 = vmul.f32 0.03125, %v5217_v59 }
0x10f4   :  { %v5214_v54 = vpop.xlane.xlu0 %5213 }
0x10f5   :  { %v12636_v43 = vsub.f32 %v5197_v49, %v5229_v6  ;;  %v5228_v53 = vmul.f32 0.03125, %v5214_v54 }
0x10f7   :  { %v12638_v47 = vsub.f32 %v5196_v58, %v5228_v53  ;;  %v5245_v11 = vmul.f32 %v12636_v43, %v12636_v43 }
0x10f9   :  { %v5263_v26 = vsel %vm185_vm0, %v5245_v11, 0.0  ;;  %v5244_v29 = vmul.f32 %v12638_v47, %v12638_v47 }
0x10fa   :  { %5264 = vadd.xlane.f32.xlu1 %v5263_v26 }
0x10fb   :  { %v5260_v61 = vsel %vm185_vm0, %v5244_v29, 0.0 }
0x10fc   :  { %5261 = vadd.xlane.f32.xlu0 %v5260_v61 }
0x1102   :  { %v5223_v0 = vpop.xlane.xlu1 %5222 }
0x1103   :  { %v5231_v52 = vmul.f32 0.03125, %v5223_v0 }
0x1104   :  { %v5220_v18 = vpop.xlane.xlu0 %5219 }
0x1105   :  { %v12647_v1 = vsub.f32 %v12607_v25, %v5231_v52  ;;  %v5230_v49 = vmul.f32 0.03125, %v5220_v18 }
0x1107   :  { %v12650_v55 = vsub.f32 %v12612_v39, %v5230_v49  ;;  %v5247_v58 = vmul.f32 %v12647_v1, %v12647_v1 }
0x1109   :  { %v5269_v3 = vsel %vm185_vm0, %v5247_v58, 0.0  ;;  %v5246_v30 = vmul.f32 %v12650_v55, %v12650_v55 }
0x110a   :  { %5270 = vadd.xlane.f32.xlu1 %v5269_v3 }
0x110b   :  { %v5266_v13 = vsel %vm185_vm0, %v5246_v30, 0.0 }
0x110c   :  { %5267 = vadd.xlane.f32.xlu0 %v5266_v13 }
0x116a   :  { %v5253_v10 = vpop.xlane.xlu1 %5252 }
0x116b   :  { %v5273_v25 = vmul.f32 0.03125, %v5253_v10 }
0x116c   :  { %v5250_v62 = vpop.xlane.xlu0 %5249 }
0x116d   :  { %v5281_v39 = vadd.f32 1e-05, %v5273_v25  ;;  %v5272_v12 = vmul.f32 0.03125, %v5250_v62 }
0x116f   :  { %10947 = vrsqrt.f32 %v5281_v39  ;;  %v5280_v60 = vadd.f32 1e-05, %v5272_v12 }
0x1171   :  { %10949 = vrsqrt.f32 %v5280_v60 }
0x1174   :  { %v5259_v8 = vpop.xlane.xlu1 %5258 }
0x1175   :  { %v5275_v22 = vmul.f32 0.03125, %v5259_v8 }
0x1176   :  { %v5256_v44 = vpop.xlane.xlu0 %5255 }
0x1177   :  { %v5283_v34 = vadd.f32 1e-05, %v5275_v22  ;;  %v5274_v2 = vmul.f32 0.03125, %v5256_v44 }
0x1179   :  { %10951 = vrsqrt.f32 %v5283_v34  ;;  %v5282_v5 = vadd.f32 1e-05, %v5274_v2 }
0x117b   :  { %10953 = vrsqrt.f32 %v5282_v5 }
0x117c   :  { %v10948_v50 = vpop.eup %10947 }
0x117d   :  { %v5297_v35 = vmul.f32 %v10948_v50, %v12616_v48  ;;  %v12771_v50 = vld [vmem:[#allocation13 + $0x18] sm:$0xff] }
0x117e   :  { %v10950_v42 = vpop.eup %10949 }
0x117f   :  { %v5296_v17 = vmul.f32 %v10950_v42, %v12618_v14  ;;  %v5309_v33 = vmul.f32 %v12663_v57, %v5297_v35  ;;  %v5339_v14 = vld [vmem:[#allocation7 + $0x110] sm:$0xff] }
0x1181   :  { %v5308_v15 = vmul.f32 %v12663_v57, %v5296_v17  ;;  %v12676_v53 = vadd.f32 %v12669_v4, %v5309_v33  ;;  %v12778_v17 = vld [vmem:[#allocation13 + $0x10] sm:$0xff] }
0x1183   :  { %v5265_v59 = vpop.xlane.xlu1 %5264  ;;  %v12673_v6 = vadd.f32 %v12669_v4, %v5308_v15  ;;  %v12786_v15 = vld [vmem:[#allocation13 + $0x8] sm:$0xff] }
0x1184   :  { %v5277_v54 = vmul.f32 0.03125, %v5265_v59 }
0x1185   :  { %10449 = vmatprep.mubr.msk.f32.mxu1 %vm185_vm0, %v12673_v6  ;;  %10469 = vmatprep.mubr.msk.f32.mxu0 %vm185_vm0, %v12673_v6  ;;  %v5262_v48 = vpop.xlane.xlu0 %5261 }
0x1186   :  { %v10952_v11 = vpop.eup %10951  ;;  %v5285_v26 = vadd.f32 1e-05, %v5277_v54  ;;  %10450 = vmatmul.mubr.msk.f32.vlgmr.msra.gmra.mxu1 %vm185_vm0, %v12676_v53  ;;  %10470 = vmatmul.mubr.msk.f32.vlgmr.msra.gmra.mxu0 %vm185_vm0, %v12676_v53  ;;  %v5276_v29 = vmul.f32 0.03125, %v5262_v48 }
0x1187   :  { %v5299_v61 = vmul.f32 %v10952_v11, %v12626_v46  ;;  %10482 = vmatpush3.msra.mxu1 %v5340_v56 }
0x1188   :  { %v10954_v41 = vpop.eup %10953  ;;  %10955 = vrsqrt.f32 %v5285_v26  ;;  %v5284_v19 = vadd.f32 1e-05, %v5276_v29  ;;  %10483 = vmatprep.subr.mxu1 %v5339_v14  ;;  %v12798_v26 = vld [vmem:[#allocation13] sm:$0xff] }
0x1189   :  { %v5298_v7 = vmul.f32 %v10954_v41, %v12628_v38  ;;  %10484 = vmatpush3.msra.mxu1 %v5339_v14  ;;  %v5311_v27 = vmul.f32 %v12663_v57, %v5299_v61 }
0x118a   :  { %10957 = vrsqrt.f32 %v5284_v19  ;;  %10485 = vmatprep.subr.mxu1 %v5338_v9 }
0x118b   :  { %v5310_v0 = vmul.f32 %v12663_v57, %v5298_v7  ;;  %10486 = vmatpush3.msra.mxu1 %v5338_v9  ;;  %v12694_v32 = vadd.f32 %v12669_v4, %v5311_v27 }
0x118c   :  { %10487 = vmatprep.subr.mxu1 %v5337_v31 }
0x118d   :  { %v12691_v46 = vadd.f32 %v12669_v4, %v5310_v0  ;;  %10488 = vmatpush3.msra.mxu1 %v5337_v31 }
0x118e   :  { %10512 = vmatprep.subr.mxu1 %v11281_v20 }
0x118f   :  { %10452 = vmatprep.mubr.msk.f32.mxu1 %vm185_vm0, %v12691_v46  ;;  %10472 = vmatprep.mubr.msk.f32.mxu0 %vm185_vm0, %v12691_v46 }
0x1190   :  { %10453 = vmatmul.mubr.msk.f32.gmra.mxu1 %vm185_vm0, %v12694_v32  ;;  %10473 = vmatmul.mubr.msk.f32.gmra.mxu0 %vm185_vm0, %v12694_v32 }
0x1193   :  { %v5271_v38 = vpop.xlane.xlu1 %5270 }
0x1194   :  { %v5279_v28 = vmul.f32 0.03125, %v5271_v38 }
0x1195   :  { %v10956_v52 = vpop.eup %10955  ;;  %v5268_v18 = vpop.xlane.xlu0 %5267 }
0x1196   :  { %v5287_v49 = vadd.f32 1e-05, %v5279_v28  ;;  %v5278_v58 = vmul.f32 0.03125, %v5268_v18  ;;  %v5301_v3 = vmul.f32 %v10956_v52, %v12636_v43 }
0x1197   :  { %v10958_v30 = vpop.eup %10957 }
0x1198   :  { %10959 = vrsqrt.f32 %v5287_v49  ;;  %v5286_v13 = vadd.f32 1e-05, %v5278_v58  ;;  %v5300_v56 = vmul.f32 %v10958_v30, %v12638_v47  ;;  %v5313_v10 = vmul.f32 %v12663_v57, %v5301_v3 }
0x119a   :  { %10961 = vrsqrt.f32 %v5286_v13  ;;  %v5312_v25 = vmul.f32 %v12663_v57, %v5300_v56  ;;  %v12713_v39 = vadd.f32 %v12669_v4, %v5313_v10 }
0x119c   :  { %v12710_v62 = vadd.f32 %v12669_v4, %v5312_v25 }
0x119e   :  { %10455 = vmatprep.mubr.msk.f32.mxu1 %vm185_vm0, %v12710_v62  ;;  %10475 = vmatprep.mubr.msk.f32.mxu0 %vm185_vm0, %v12710_v62 }
0x119f   :  { %10456 = vmatmul.mubr.msk.f32.gmra.mxu1 %vm185_vm0, %v12713_v39  ;;  %10476 = vmatmul.mubr.msk.f32.gmra.mxu0 %vm185_vm0, %v12713_v39 }
0x11a5   :  { %v10960_v43 = vpop.eup %10959 }
0x11a6   :  { %v5303_v47 = vmul.f32 %v10960_v43, %v12647_v1  ;;  %v12764_v1 = vld [vmem:[%s13441_s7 + $0x20] sm:$0xff] }
0x11a7   :  { %v10962_v12 = vpop.eup %10961  ;;  %v12793_v48 = vrot.slane %v12764_v1, %v11494_v36 }
0x11a8   :  { %v5302_v60 = vmul.f32 %v10962_v12, %v12650_v55  ;;  %v5315_v8 = vmul.f32 %v12663_v57, %v5303_v47  ;;  %v12768_v55 = vrot.slane %v12764_v1, %v11469_v23 }
0x11aa   :  { %v5314_v22 = vmul.f32 %v12663_v57, %v5302_v60  ;;  %v12731_v34 = vadd.f32 %v12669_v4, %v5315_v8 }
0x11ac   :  { %v12728_v44 = vadd.f32 %v12669_v4, %v5314_v22 }
0x11ae   :  { %10458 = vmatprep.mubr.msk.f32.mxu1 %vm185_vm0, %v12728_v44  ;;  %10478 = vmatprep.mubr.msk.f32.mxu0 %vm185_vm0, %v12728_v44 }
0x11af   :  { %10459 = vmatmul.mubr.msk.f32.gmra.mxu1 %vm185_vm0, %v12731_v34  ;;  %10479 = vmatmul.mubr.msk.f32.gmra.mxu0 %vm185_vm0, %v12731_v34 }
0x11b0   :  { %10489 = vmatprep.mubr.msk.f32.mxu1 %vm185_vm0, %v12673_v6  ;;  %10509 = vmatprep.mubr.msk.f32.mxu0 %vm11282_vm1, %v11281_v20 }
0x11b3   :  { %10490 = vmatmul.mubr.msk.f32.vlgmr.msra.gmra.mxu1 %vm185_vm0, %v12676_v53 }
0x11b4   :  { %10492 = vmatprep.mubr.msk.f32.mxu1 %vm185_vm0, %v12691_v46 }
0x11b7   :  { %10493 = vmatmul.mubr.msk.f32.gmra.mxu1 %vm185_vm0, %v12694_v32 }
0x11b8   :  { %10495 = vmatprep.mubr.msk.f32.mxu1 %vm185_vm0, %v12710_v62 }
0x11bb   :  { %10496 = vmatmul.mubr.msk.f32.gmra.mxu1 %vm185_vm0, %v12713_v39 }
0x11bc   :  { %10498 = vmatprep.mubr.msk.f32.mxu1 %vm185_vm0, %v12728_v44 }
0x11bf   :  { %10499 = vmatmul.mubr.msk.f32.gmra.mxu1 %vm185_vm0, %v12731_v34 }
0x11c0   :  { %10520 = vmatprep.mubr.msk.f32.mxu1 %vm11282_vm1, %v11281_v20 }
0x1246   :  { %v10471_v2 = vpop.f32.mrf.mxu0  ;;  %v10451_v14 = vpop.f32.mrf.mxu1 }
0x1247   :  { %v5553_v63 = vadd.f32 %v10471_v2, %v12768_v55  ;;  %v5444_v41 = vadd.f32 %v10451_v14, %v12793_v48 }
0x1248   :  { %v5547_v5 = vpop.f32.mrf.mxu0  ;;  %v5438_v19 = vpop.f32.mrf.mxu1 }
0x1249   :  { %v5702_v57 = vmul.f32 %v12771_v50, %v5553_v63  ;;  %v5548_v35 = vadd.f32 %v5547_v5, %v12768_v55  ;;  %v5701_v33 = vmul.f32 %v12778_v17, %v5553_v63  ;;  %v5700_v59 = vmul.f32 %v12786_v15, %v5553_v63 }
0x124a   :  { %v5699_v29 = vmul.f32 %v12798_v26, %v5553_v63  ;;  %v5439_v0 = vadd.f32 %v5438_v19, %v12793_v48 }
0x124b   :  { %10513 = vmatpush3.xpose.msk.msra.mxu1 %vm185_vm0, %v5702_v57  ;;  %v5698_v42 = vmul.f32 %v12771_v50, %v5548_v35  ;;  %v5697_v4 = vmul.f32 %v12778_v17, %v5548_v35  ;;  %v5696_v11 = vmul.f32 %v12786_v15, %v5548_v35  ;;  %v5695_v7 = vmul.f32 %v12798_v26, %v5548_v35 }
0x124c   :  { %10514 = vmatprep.subr.mxu1 %v11281_v20  ;;  %v12866_v35 = vrot.slane %v12764_v1, %v11615_v45 }
0x124d   :  { %10502 = vmatpush3.xpose.msk.msra.mxu0 %vm185_vm0, %v5698_v42 }
0x124e   :  { %10503 = vmatprep.subr.mxu0 %v11281_v20 }
0x124f   :  { %10515 = vmatpush3.xpose.msk.msra.mxu1 %vm185_vm0, %v5701_v33 }
0x1250   :  { %10516 = vmatprep.subr.mxu1 %v11281_v20  ;;  %v10474_v54 = vpop.f32.mrf.mxu0  ;;  %v10454_v58 = vpop.f32.mrf.mxu1 }
0x1251   :  { %10504 = vmatpush3.xpose.msk.msra.mxu0 %vm185_vm0, %v5697_v4  ;;  %v5563_v61 = vadd.f32 %v10474_v54, %v12768_v55  ;;  %v5454_v25 = vadd.f32 %v10454_v58, %v12793_v48 }
0x1252   :  { %10505 = vmatprep.subr.mxu0 %v11281_v20  ;;  %v5557_v9 = vpop.f32.mrf.mxu0  ;;  %v5448_v10 = vpop.f32.mrf.mxu1 }
0x1253   :  { %10517 = vmatpush3.xpose.msk.msra.mxu1 %vm185_vm0, %v5700_v59  ;;  %v5558_v31 = vadd.f32 %v5557_v9, %v12768_v55  ;;  %v5710_v27 = vmul.f32 %v12771_v50, %v5563_v61  ;;  %v5709_v28 = vmul.f32 %v12778_v17, %v5563_v61  ;;  %v5708_v18 = vmul.f32 %v12786_v15, %v5563_v61 }
0x1254   :  { %10518 = vmatprep.subr.mxu1 %v11281_v20  ;;  %v5707_v30 = vmul.f32 %v12798_v26, %v5563_v61  ;;  %v5449_v8 = vadd.f32 %v5448_v10, %v12793_v48 }
0x1255   :  { %10506 = vmatpush3.xpose.msk.msra.mxu0 %vm185_vm0, %v5696_v11  ;;  %v5706_v38 = vmul.f32 %v12771_v50, %v5558_v31  ;;  %v5705_v52 = vmul.f32 %v12778_v17, %v5558_v31  ;;  %v5704_v3 = vmul.f32 %v12786_v15, %v5558_v31  ;;  %v5703_v43 = vmul.f32 %v12798_v26, %v5558_v31 }
0x1256   :  { %10507 = vmatprep.subr.mxu0 %v11281_v20 }
0x1257   :  { %10519 = vmatpush3.xpose.msk.msra.mxu1 %vm185_vm0, %v5699_v29 }
0x1258   :  { %10534 = vmatprep.subr.mxu1 %v11281_v20 }
0x1259   :  { %10508 = vmatpush3.xpose.msk.msra.mxu0 %vm185_vm0, %v5695_v7 }
0x125a   :  { %10521 = vmatmul.mubr.msk.f32.vlgmr.msra.gmra.mxu1 %vm185_vm0, %v5444_v41  ;;  %10523 = vmatprep.subr.mxu0 %v11281_v20 }
0x125b   :  { %10535 = vmatpush3.xpose.msk.msra.mxu1 %vm185_vm0, %v5710_v27  ;;  %10542 = vmatprep.mubr.msk.f32.mxu1 %vm11282_vm1, %v11281_v20 }
0x125c   :  { %10536 = vmatprep.subr.mxu1 %v11281_v20  ;;  %10510 = vmatmul.mubr.msk.f32.vlgmr.msra.gmra.mxu0 %vm185_vm0, %v5439_v0 }
0x125d   :  { %10524 = vmatpush3.xpose.msk.msra.mxu0 %vm185_vm0, %v5706_v38  ;;  %10531 = vmatprep.mubr.msk.f32.mxu0 %vm11282_vm1, %v11281_v20 }
0x125e   :  { %10525 = vmatprep.subr.mxu0 %v11281_v20 }
0x125f   :  { %10537 = vmatpush3.xpose.msk.msra.mxu1 %vm185_vm0, %v5709_v28  ;;  %v10477_v49 = vpop.f32.mrf.mxu0  ;;  %v10457_v12 = vpop.f32.mrf.mxu1 }
0x1260   :  { %10538 = vmatprep.subr.mxu1 %v11281_v20  ;;  %v5573_v13 = vadd.f32 %v10477_v49, %v12768_v55  ;;  %v5464_v41 = vadd.f32 %v10457_v12, %v12793_v48 }
0x1261   :  { %10526 = vmatpush3.xpose.msk.msra.mxu0 %vm185_vm0, %v5705_v52  ;;  %v5567_v56 = vpop.f32.mrf.mxu0  ;;  %v5458_v63 = vpop.f32.mrf.mxu1 }
0x1262   :  { %10527 = vmatprep.subr.mxu0 %v11281_v20  ;;  %v5568_v47 = vadd.f32 %v5567_v56, %v12768_v55  ;;  %v5718_v60 = vmul.f32 %v12771_v50, %v5573_v13  ;;  %v5717_v2 = vmul.f32 %v12778_v17, %v5573_v13  ;;  %v5716_v42 = vmul.f32 %v12786_v15, %v5573_v13 }
0x1263   :  { %10539 = vmatpush3.xpose.msk.msra.mxu1 %vm185_vm0, %v5708_v18  ;;  %v5715_v45 = vmul.f32 %v12798_v26, %v5573_v13  ;;  %v5459_v28 = vadd.f32 %v5458_v63, %v12793_v48  ;;  %v11074_v63 = vld [vmem:[#allocation14 + $0x18] sm:$0xff] }
0x1264   :  { %10540 = vmatprep.subr.mxu1 %v11281_v20  ;;  %v5714_v22 = vmul.f32 %v12771_v50, %v5568_v47  ;;  %v5713_v57 = vmul.f32 %v12778_v17, %v5568_v47  ;;  %v5712_v54 = vmul.f32 %v12786_v15, %v5568_v47  ;;  %v5711_v19 = vmul.f32 %v12798_v26, %v5568_v47 }
0x1265   :  { %10528 = vmatpush3.xpose.msk.msra.mxu0 %vm185_vm0, %v5704_v3 }
0x1266   :  { %10529 = vmatprep.subr.mxu0 %v11281_v20 }
0x1267   :  { %10541 = vmatpush3.xpose.msk.msra.mxu1 %vm185_vm0, %v5707_v30 }
0x1268   :  { %10556 = vmatprep.subr.mxu1 %v11281_v20 }
0x1269   :  { %10530 = vmatpush3.xpose.msk.msra.mxu0 %vm185_vm0, %v5703_v43 }
0x126a   :  { %10543 = vmatmul.mubr.msk.f32.vlgmr.msra.gmra.mxu1 %vm185_vm0, %v5454_v25  ;;  %10545 = vmatprep.subr.mxu0 %v11281_v20 }
0x126b   :  { %10557 = vmatpush3.xpose.msk.msra.mxu1 %vm185_vm0, %v5718_v60  ;;  %10564 = vmatprep.mubr.msk.f32.mxu1 %vm11282_vm1, %v11281_v20 }
0x126c   :  { %10558 = vmatprep.subr.mxu1 %v11281_v20  ;;  %10532 = vmatmul.mubr.msk.f32.vlgmr.msra.gmra.mxu0 %vm185_vm0, %v5449_v8 }
0x126d   :  { %10546 = vmatpush3.xpose.msk.msra.mxu0 %vm185_vm0, %v5714_v22  ;;  %10553 = vmatprep.mubr.msk.f32.mxu0 %vm11282_vm1, %v11281_v20 }
0x126e   :  { %10547 = vmatprep.subr.mxu0 %v11281_v20 }
0x126f   :  { %10559 = vmatpush3.xpose.msk.msra.mxu1 %vm185_vm0, %v5717_v2  ;;  %v12859_v5 = vpop.f32.mrf.mxu1  ;;  %v10480_v33 = vpop.f32.mrf.mxu0 }
0x1270   :  { %10560 = vmatprep.subr.mxu1 %v11281_v20  ;;  %v5583_v11 = vadd.f32 %v10480_v33, %v12768_v55  ;;  %v5474_v12 = vadd.f32 %v12859_v5, %v12793_v48  ;;  %v11077_v33 = vld [vmem:[#allocation14] sm:$0xff] }
0x1271   :  { %v12869_v4 = vpop.f32.mrf.mxu1  ;;  %10548 = vmatpush3.xpose.msk.msra.mxu0 %vm185_vm0, %v5713_v57  ;;  %v5577_v29 = vpop.f32.mrf.mxu0  ;;  %v11075_v57 = vld [vmem:[#allocation14 + $0x10] sm:$0xff] }
0x1272   :  { %10549 = vmatprep.subr.mxu0 %v11281_v20  ;;  %v5578_v7 = vadd.f32 %v5577_v29, %v12768_v55  ;;  %v5726_v27 = vmul.f32 %v12771_v50, %v5583_v11  ;;  %v5725_v49 = vmul.f32 %v12778_v17, %v5583_v11  ;;  %v5724_v10 = vmul.f32 %v12786_v15, %v5583_v11 }
0x1273   :  { %10561 = vmatpush3.xpose.msk.msra.mxu1 %vm185_vm0, %v5716_v42  ;;  %v10491_v59 = vpop.f32.mrf.mxu1  ;;  %v5723_v43 = vmul.f32 %v12798_v26, %v5583_v11  ;;  %v5469_v22 = vadd.f32 %v12869_v4, %v12793_v48  ;;  %v11076_v42 = vld [vmem:[#allocation14 + $0x8] sm:$0xff] }
0x1274   :  { %v12876_v14 = vadd.f32 %v10491_v59, %v12866_v35  ;;  %10562 = vmatprep.subr.mxu1 %v11281_v20  ;;  %v5722_v52 = vmul.f32 %v12771_v50, %v5578_v7  ;;  %v5721_v13 = vmul.f32 %v12778_v17, %v5578_v7  ;;  %v5720_v25 = vmul.f32 %v12786_v15, %v5578_v7 }
0x1275   :  { %v5656_v61 = vpop.f32.mrf.mxu1  ;;  %10550 = vmatpush3.xpose.msk.msra.mxu0 %vm185_vm0, %v5712_v54  ;;  %v5719_v60 = vmul.f32 %v12798_v26, %v5578_v7 }
0x1276   :  { %10551 = vmatprep.subr.mxu0 %v11281_v20  ;;  %v5657_v47 = vadd.f32 %v5656_v61, %v12866_v35 }
0x1277   :  { %10563 = vmatpush3.xpose.msk.msra.mxu1 %vm185_vm0, %v5715_v45  ;;  %v10494_v9 = vpop.f32.mrf.mxu1 }
0x1278   :  { %v12888_v31 = vadd.f32 %v10494_v9, %v12866_v35  ;;  %10578 = vmatprep.subr.mxu1 %v11281_v20  ;;  %v5730_v8 = vmul.f32 %v12771_v50, %v5657_v47  ;;  %v5729_v2 = vmul.f32 %v12778_v17, %v5657_v47  ;;  %v5728_v5 = vmul.f32 %v12786_v15, %v5657_v47 }
0x1279   :  { %v5666_v0 = vpop.f32.mrf.mxu1  ;;  %10552 = vmatpush3.xpose.msk.msra.mxu0 %vm185_vm0, %v5711_v19  ;;  %v5727_v48 = vmul.f32 %v12798_v26, %v5657_v47 }
0x127a   :  { %v12894_v38 = vadd.f32 %v5666_v0, %v12866_v35  ;;  %10565 = vmatmul.mubr.msk.f32.vlgmr.msra.gmra.mxu1 %vm185_vm0, %v5464_v41  ;;  %10567 = vmatprep.subr.mxu0 %v11281_v20 }
0x127b   :  { %10579 = vmatpush3.xpose.msk.msra.mxu1 %vm185_vm0, %v5726_v27  ;;  %v10497_v55 = vpop.f32.mrf.mxu1  ;;  %10586 = vmatprep.mubr.msk.f32.mxu1 %vm11282_vm1, %v11281_v20 }
0x127c   :  { %v12902_v18 = vadd.f32 %v10497_v55, %v12866_v35  ;;  %10580 = vmatprep.subr.mxu1 %v11281_v20  ;;  %10554 = vmatmul.mubr.msk.f32.vlgmr.msra.gmra.mxu0 %vm185_vm0, %v5459_v28 }
0x127d   :  { %v5676_v58 = vpop.f32.mrf.mxu1  ;;  %10568 = vmatpush3.xpose.msk.msra.mxu0 %vm185_vm0, %v5722_v52  ;;  %10575 = vmatprep.mubr.msk.f32.mxu0 %vm11282_vm1, %v11281_v20 }
0x127e   :  { %v12911_v3 = vadd.f32 %v5676_v58, %v12866_v35  ;;  %10569 = vmatprep.subr.mxu0 %v11281_v20 }
0x127f   :  { %10581 = vmatpush3.xpose.msk.msra.mxu1 %vm185_vm0, %v5725_v49  ;;  %v10500_v30 = vpop.f32.mrf.mxu1 }
0x1280   :  { %v12919_v56 = vadd.f32 %v10500_v30, %v12866_v35  ;;  %10582 = vmatprep.subr.mxu1 %v11281_v20 }
0x1281   :  { %10570 = vmatpush3.xpose.msk.msra.mxu0 %vm185_vm0, %v5721_v13  ;;  %v12953_v4 = vpop.f32.mrf.mxu1 }
0x1282   :  { %10571 = vmatprep.subr.mxu0 %v11281_v20 }
0x1283   :  { %10583 = vmatpush3.xpose.msk.msra.mxu1 %vm185_vm0, %v5724_v10 }
0x1284   :  { %10584 = vmatprep.subr.mxu1 %v11281_v20 }
0x1285   :  { %10572 = vmatpush3.xpose.msk.msra.mxu0 %vm185_vm0, %v5720_v25 }
0x1286   :  { %10573 = vmatprep.subr.mxu0 %v11281_v20 }
0x1287   :  { %10585 = vmatpush3.xpose.msk.msra.mxu1 %vm185_vm0, %v5723_v43 }
0x1288   :  { %10609 = vmatprep.subr.mxu1 %v11281_v20 }
0x1289   :  { %10574 = vmatpush3.xpose.msk.msra.mxu0 %vm185_vm0, %v5719_v60 }
0x128a   :  { %10587 = vmatmul.mubr.msk.f32.vlgmr.msra.gmra.mxu1 %vm185_vm0, %v5474_v12  ;;  %10589 = vmatprep.subr.mxu0 %v11074_v63 }
0x128b   :  { %10610 = vmatpush3.msra.mxu1 %v5730_v8  ;;  %10617 = vmatprep.mubr.msk.f32.mxu1 %vm11282_vm1, %v11281_v20 }
0x128c   :  { %10611 = vmatprep.subr.mxu1 %v11281_v20  ;;  %10576 = vmatmul.mubr.msk.f32.vlgmr.msra.gmra.mxu0 %vm185_vm0, %v5469_v22 }
0x128d   :  { %10612 = vmatpush3.msra.mxu1 %v5729_v2  ;;  %10590 = vmatpush3.msra.mxu0 %v11074_v63 }
0x128e   :  { %10613 = vmatprep.subr.mxu1 %v11281_v20  ;;  %10591 = vmatprep.subr.mxu0 %v11075_v57 }
0x128f   :  { %10614 = vmatpush3.msra.mxu1 %v5728_v5  ;;  %10592 = vmatpush3.msra.mxu0 %v11075_v57 }
0x1290   :  { %10615 = vmatprep.subr.mxu1 %v11281_v20  ;;  %10593 = vmatprep.subr.mxu0 %v11076_v42 }
0x1291   :  { %10616 = vmatpush3.msra.mxu1 %v5727_v48  ;;  %10594 = vmatpush3.msra.mxu0 %v11076_v42 }
0x1292   :  { %10620 = vmatprep.subr.mxu1 %v11281_v20  ;;  %10595 = vmatprep.subr.mxu0 %v11077_v33 }
0x1293   :  { %10596 = vmatpush3.msra.mxu0 %v11077_v33 }
0x1294   :  { %10631 = vmatprep.subr.mxu0 %v11281_v20 }
0x131a   :  { %v5925_v59 = vpop.f32.mrf.mxu1 }
0x131b   :  { %v6442_v54 = vsel %vm185_vm0, %v5925_v59, -inf }
0x131c   :  { %6443 = vmax.xlane.f32.xlu1 %v6442_v54  ;;  %v10522_v45 = vpop.f32.mrf.mxu1  ;;  %v5840_v11 = vpop.f32.mrf.mxu0 }
0x131d   :  { %v6439_v29 = vsel %vm185_vm0, %v5840_v11, -inf }
0x131e   :  { %6440 = vmax.xlane.f32.xlu0 %v6439_v29  ;;  %v10511_v61 = vpop.f32.mrf.mxu0 }
0x132a   :  { %v6095_v9 = vpop.f32.mrf.mxu1 }
0x132b   :  { %v6448_v41 = vsel %vm185_vm0, %v6095_v9, -inf }
0x132c   :  { %6449 = vmax.xlane.f32.xlu1 %v6448_v41  ;;  %v10544_v19 = vpop.f32.mrf.mxu1  ;;  %v6010_v7 = vpop.f32.mrf.mxu0  ;;  %v5735_v41 = vmul.f32 %v12798_v26, %v12894_v38 }
0x132d   :  { %v6445_v27 = vsel %vm185_vm0, %v6010_v7, -inf }
0x132e   :  { %6446 = vmax.xlane.f32.xlu0 %v6445_v27  ;;  %v10533_v0 = vpop.f32.mrf.mxu0 }
0x133a   :  { %v6265_v28 = vpop.f32.mrf.mxu1 }
0x133b   :  { %v6454_v55 = vsel %vm185_vm0, %v6265_v28, -inf }
0x133c   :  { %6455 = vmax.xlane.f32.xlu1 %v6454_v55  ;;  %v10566_v52 = vpop.f32.mrf.mxu1  ;;  %v6180_v49 = vpop.f32.mrf.mxu0 }
0x133d   :  { %v6451_v58 = vsel %vm185_vm0, %v6180_v49, -inf }
0x133e   :  { %6452 = vmax.xlane.f32.xlu0 %v6451_v58  ;;  %v10555_v30 = vpop.f32.mrf.mxu0 }
0x134a   :  { %v6435_v13 = vpop.f32.mrf.mxu1 }
0x134b   :  { %v6460_v10 = vsel %vm185_vm0, %v6435_v13, -inf }
0x134c   :  { %6461 = vmax.xlane.f32.xlu1 %v6460_v10  ;;  %v10588_v25 = vpop.f32.mrf.mxu1  ;;  %v6350_v43 = vpop.f32.mrf.mxu0 }
0x134d   :  { %v6457_v47 = vsel %vm185_vm0, %v6350_v43, -inf }
0x134e   :  { %6458 = vmax.xlane.f32.xlu0 %v6457_v47  ;;  %v10577_v12 = vpop.f32.mrf.mxu0 }
0x13a5   :  { %v6444_v60 = vpop.xlane.xlu1 %6443 }
0x13a6   :  { %v6464_v8 = vsub.f32 %v5925_v59, %v6444_v60  ;;  %v5738_v59 = vmul.f32 %v12771_v50, %v12894_v38 }
0x13a7   :  { %v6441_v22 = vpop.xlane.xlu0 %6440 }
0x13a8   :  { %v6463_v2 = vsub.f32 %v5840_v11, %v6441_v22  ;;  %v6473_v63 = vmul.f32 1.442695, %v6464_v8  ;;  %v5737_v11 = vmul.f32 %v12778_v17, %v12894_v38 }
0x13aa   :  { %v6471_v5 = vmul.f32 1.442695, %v6463_v2 }
0x13ac   :  { %10963 = vpow2.f32 %v6471_v5 }
0x13ad   :  { %10965 = vpow2.f32 %v6473_v63 }
0x13b5   :  { %v6450_v48 = vpop.xlane.xlu1 %6449 }
0x13b6   :  { %v6466_v57 = vsub.f32 %v6095_v9, %v6450_v48  ;;  %v5736_v9 = vmul.f32 %v12786_v15, %v12894_v38 }
0x13b7   :  { %v6447_v42 = vpop.xlane.xlu0 %6446 }
0x13b8   :  { %v6465_v33 = vsub.f32 %v6010_v7, %v6447_v42  ;;  %v6477_v45 = vmul.f32 1.442695, %v6466_v57  ;;  %v5734_v57 = vmul.f32 %v12771_v50, %v12876_v14  ;;  %v5733_v42 = vmul.f32 %v12778_v17, %v12876_v14 }
0x13b9   :  { %v10964_v54 = vpop.eup %10963 }
0x13ba   :  { %v12963_v29 = vpop.eup %10965  ;;  %v6475_v61 = vmul.f32 1.442695, %v6465_v33  ;;  %10597 = vmatprep.mubr.msk.f32.mxu0 %vm185_vm0, %v10964_v54 }
0x13bb   :  { %10598 = vmatmul.mubr.msk.f32.vlgmr.msra.gmra.mxu0 %vm185_vm0, %v12963_v29 }
0x13bc   :  { %10967 = vpow2.f32 %v6475_v61  ;;  %10632 = vmatpush3.msra.mxu0 %v5738_v59  ;;  %v5742_v59 = vmul.f32 %v12771_v50, %v12888_v31 }
0x13bd   :  { %10969 = vpow2.f32 %v6477_v45  ;;  %10633 = vmatprep.subr.mxu0 %v11281_v20  ;;  %v5731_v45 = vmul.f32 %v12798_v26, %v12876_v14 }
0x13be   :  { %10634 = vmatpush3.msra.mxu0 %v5737_v11  ;;  %v5741_v11 = vmul.f32 %v12778_v17, %v12888_v31 }
0x13bf   :  { %10635 = vmatprep.subr.mxu0 %v11281_v20 }
0x13c0   :  { %10636 = vmatpush3.msra.mxu0 %v5736_v9 }
0x13c1   :  { %10637 = vmatprep.subr.mxu0 %v11281_v20 }
0x13c2   :  { %10638 = vmatpush3.msra.mxu0 %v5735_v41 }
0x13c3   :  { %10653 = vmatprep.subr.mxu0 %v11281_v20 }
0x13c5   :  { %v6456_v19 = vpop.xlane.xlu1 %6455 }
0x13c6   :  { %v6468_v7 = vsub.f32 %v6265_v28, %v6456_v19 }
0x13c7   :  { %v6453_v27 = vpop.xlane.xlu0 %6452 }
0x13c8   :  { %v6467_v0 = vsub.f32 %v6180_v49, %v6453_v27  ;;  %v6481_v52 = vmul.f32 1.442695, %v6468_v7  ;;  %v5739_v7 = vmul.f32 %v12798_v26, %v12888_v31 }
0x13c9   :  { %v12980_v55 = vpop.eup %10967 }
0x13ca   :  { %v10970_v58 = vpop.eup %10969  ;;  %v6479_v30 = vmul.f32 1.442695, %v6467_v0  ;;  %10600 = vmatprep.mubr.msk.f32.mxu0 %vm185_vm0, %v12980_v55 }
0x13cb   :  { %10601 = vmatmul.mubr.msk.f32.gmra.mxu0 %vm185_vm0, %v10970_v58 }
0x13cc   :  { %10971 = vpow2.f32 %v6479_v30  ;;  %v5748_v30 = vmul.f32 %v12786_v15, %v12902_v18 }
0x13cd   :  { %10973 = vpow2.f32 %v6481_v52  ;;  %v5750_v52 = vmul.f32 %v12771_v50, %v12902_v18 }
0x13d5   :  { %v6462_v38 = vpop.xlane.xlu1 %6461 }
0x13d6   :  { %v6470_v10 = vsub.f32 %v6435_v13, %v6462_v38  ;;  %v5744_v38 = vmul.f32 %v12786_v15, %v12911_v3 }
0x13d7   :  { %v6459_v25 = vpop.xlane.xlu0 %6458 }
0x13d8   :  { %v6469_v47 = vsub.f32 %v6350_v43, %v6459_v25  ;;  %v6485_v28 = vmul.f32 1.442695, %v6470_v10  ;;  %v5747_v10 = vmul.f32 %v12798_v26, %v12902_v18  ;;  %v5743_v25 = vmul.f32 %v12798_v26, %v12911_v3 }
0x13d9   :  { %v12985_v12 = vpop.eup %10971 }
0x13da   :  { %v12987_v49 = vpop.eup %10973  ;;  %v6483_v60 = vmul.f32 1.442695, %v6469_v47  ;;  %10603 = vmatprep.mubr.msk.f32.mxu0 %vm185_vm0, %v12985_v12  ;;  %v5687_v47 = vadd.f32 %v12953_v4, %v12866_v35  ;;  %v5756_v4 = vmul.f32 %v12786_v15, %v12919_v56 }
0x13db   :  { %10604 = vmatmul.mubr.msk.f32.gmra.mxu0 %vm185_vm0, %v12987_v49 }
0x13dc   :  { %10975 = vpow2.f32 %v6483_v60  ;;  %v5753_v35 = vmul.f32 %v12778_v17, %v5687_v47 }
0x13dd   :  { %10977 = vpow2.f32 %v6485_v28 }
0x13e9   :  { %v12993_v8 = vpop.eup %10975 }
0x13ea   :  { %v12995_v22 = vpop.eup %10977  ;;  %10606 = vmatprep.mubr.msk.f32.mxu0 %vm185_vm0, %v12993_v8 }
0x13eb   :  { %10607 = vmatmul.mubr.msk.f32.gmra.mxu0 %vm185_vm0, %v12995_v22 }
0x13ec   :  { %10639 = vmatprep.mubr.msk.f32.mxu0 %vm11282_vm1, %v11281_v20 }
0x147b   :  { %v10599_v13 = vpop.f32.mrf.mxu0 }
0x147d   :  { %v6577_v43 = vpop.f32.mrf.mxu0 }
0x147e   :  { %10979 = vrcp.f32 %v6577_v43 }
0x147f   :  { %10981 = vrcp.f32 %v10599_v13  ;;  %v5758_v13 = vmul.f32 %v12771_v50, %v12919_v56 }
0x148b   :  { %v10980_v2 = vpop.eup %10979  ;;  %v10602_v63 = vpop.f32.mrf.mxu0 }
0x148c   :  { %10983 = vrcp.f32 %v10602_v63  ;;  %v6617_v5 = vmul.f32 %v10980_v2, %v10964_v54  ;;  %v10982_v33 = vpop.eup %10981  ;;  %v5732_v54 = vmul.f32 %v12786_v15, %v12876_v14  ;;  %v5754_v63 = vmul.f32 %v12771_v50, %v5687_v47 }
0x148d   :  { %v6587_v48 = vpop.f32.mrf.mxu0  ;;  %v6619_v61 = vmul.f32 %v10982_v33, %v12963_v29  ;;  %v5740_v29 = vmul.f32 %v12786_v15, %v12888_v31  ;;  %v5749_v31 = vmul.f32 %v12778_v17, %v12902_v18 }
0x148e   :  { %10985 = vrcp.f32 %v6587_v48  ;;  %10618 = vmatmul.mubr.msk.f32.vlgmr.msra.gmra.mxu1 %vm185_vm0, %v6617_v5  ;;  %v5757_v5 = vmul.f32 %v12778_v17, %v12919_v56 }
0x148f   :  { %10621 = vmatpush3.msra.mxu1 %v5734_v57  ;;  %10628 = vmatprep.mubr.msk.f32.mxu1 %vm11282_vm1, %v11281_v20  ;;  %v9238_v57 = vld [vmem:[%s13438_s4 + $0x50] sm:$0xff] }
0x1490   :  { %10622 = vmatprep.subr.mxu1 %v11281_v20 }
0x1491   :  { %10623 = vmatpush3.msra.mxu1 %v5733_v42 }
0x1492   :  { %10624 = vmatprep.subr.mxu1 %v11281_v20 }
0x1493   :  { %10625 = vmatpush3.msra.mxu1 %v5732_v54 }
0x1494   :  { %10626 = vmatprep.subr.mxu1 %v11281_v20 }
0x1495   :  { %10627 = vmatpush3.msra.mxu1 %v5731_v45 }
0x1496   :  { %10629 = vmatmul.mubr.msk.f32.vlgmr.msra.gmra.mxu1 %vm185_vm0, %v6619_v61  ;;  %10642 = vmatprep.subr.mxu1 %v11281_v20 }
0x1497   :  { %10643 = vmatpush3.msra.mxu1 %v5742_v59  ;;  %10650 = vmatprep.mubr.msk.f32.mxu1 %vm11282_vm1, %v11281_v20 }
0x1498   :  { %10644 = vmatprep.subr.mxu1 %v11281_v20 }
0x1499   :  { %v10984_v14 = vpop.eup %10983  ;;  %10645 = vmatpush3.msra.mxu1 %v5741_v11 }
0x149a   :  { %10646 = vmatprep.subr.mxu1 %v11281_v20  ;;  %v6623_v9 = vmul.f32 %v10984_v14, %v10970_v58  ;;  %v5746_v58 = vmul.f32 %v12771_v50, %v12911_v3  ;;  %v5752_v50 = vmul.f32 %v12786_v15, %v5687_v47 }
0x149b   :  { %v10986_v41 = vpop.eup %10985  ;;  %10647 = vmatpush3.msra.mxu1 %v5740_v29  ;;  %v10605_v19 = vpop.f32.mrf.mxu0 }
0x149c   :  { %v6621_v27 = vmul.f32 %v10986_v41, %v12980_v55  ;;  %10987 = vrcp.f32 %v10605_v19  ;;  %10648 = vmatprep.subr.mxu1 %v11281_v20  ;;  %v5745_v55 = vmul.f32 %v12778_v17, %v12911_v3  ;;  %v5751_v17 = vmul.f32 %v12798_v26, %v5687_v47 }
0x149d   :  { %10649 = vmatpush3.msra.mxu1 %v5739_v7  ;;  %v6597_v0 = vpop.f32.mrf.mxu0 }
0x149e   :  { %10989 = vrcp.f32 %v6597_v0  ;;  %10651 = vmatmul.mubr.msk.f32.vlgmr.msra.gmra.mxu1 %vm185_vm0, %v6623_v9  ;;  %10664 = vmatprep.subr.mxu1 %v11281_v20 }
0x149f   :  { %10640 = vmatmul.mubr.msk.f32.vlgmr.msra.gmra.mxu0 %vm185_vm0, %v6621_v27  ;;  %10665 = vmatpush3.msra.mxu1 %v5750_v52 }
0x14a0   :  { %10654 = vmatpush3.msra.mxu0 %v5746_v58  ;;  %10666 = vmatprep.subr.mxu1 %v11281_v20  ;;  %v7224_v58 = vrot.slane %v12764_v1, %v11826_v16 }
0x14a1   :  { %10655 = vmatprep.subr.mxu0 %v11281_v20  ;;  %10667 = vmatpush3.msra.mxu1 %v5749_v31 }
0x14a2   :  { %10656 = vmatpush3.msra.mxu0 %v5745_v55  ;;  %10668 = vmatprep.subr.mxu1 %v11281_v20 }
0x14a3   :  { %10657 = vmatprep.subr.mxu0 %v11281_v20  ;;  %10669 = vmatpush3.msra.mxu1 %v5748_v30 }
0x14a4   :  { %10658 = vmatpush3.msra.mxu0 %v5744_v38  ;;  %10670 = vmatprep.subr.mxu1 %v11281_v20 }
0x14a5   :  { %10659 = vmatprep.subr.mxu0 %v11281_v20  ;;  %10671 = vmatpush3.msra.mxu1 %v5747_v10 }
0x14a6   :  { %10660 = vmatpush3.msra.mxu0 %v5743_v25  ;;  %10672 = vmatprep.mubr.msk.f32.mxu1 %vm11282_vm1, %v11281_v20 }
0x14a7   :  { %10686 = vmatprep.subr.mxu1 %v11281_v20  ;;  %10661 = vmatprep.mubr.msk.f32.mxu0 %vm11282_vm1, %v11281_v20 }
0x14a8   :  { %10675 = vmatprep.subr.mxu0 %v11281_v20 }
0x14a9   :  { %v10988_v18 = vpop.eup %10987 }
0x14aa   :  { %v6627_v3 = vmul.f32 %v10988_v18, %v12987_v49 }
0x14ab   :  { %v10990_v28 = vpop.eup %10989  ;;  %v10608_v60 = vpop.f32.mrf.mxu0 }
0x14ac   :  { %v6625_v43 = vmul.f32 %v10990_v28, %v12985_v12  ;;  %10991 = vrcp.f32 %v10608_v60  ;;  %10673 = vmatmul.mubr.msk.f32.vlgmr.msra.gmra.mxu1 %vm185_vm0, %v6627_v3  ;;  %v5755_v12 = vmul.f32 %v12798_v26, %v12919_v56  ;;  %v9239_v26 = vld [vmem:[%s13438_s4 + $0x58] sm:$0xff] }
0x14ad   :  { %10687 = vmatpush3.msra.mxu1 %v5758_v13  ;;  %v6607_v2 = vpop.f32.mrf.mxu0  ;;  %10694 = vmatprep.mubr.msk.f32.mxu1 %vm11282_vm1, %v11281_v20 }
0x14ae   :  { %10993 = vrcp.f32 %v6607_v2  ;;  %10688 = vmatprep.subr.mxu1 %v11281_v20  ;;  %10662 = vmatmul.mubr.msk.f32.vlgmr.msra.gmra.mxu0 %vm185_vm0, %v6625_v43 }
0x14af   :  { %10676 = vmatpush3.msra.mxu0 %v5754_v63  ;;  %10689 = vmatpush3.msra.mxu1 %v5757_v5 }
0x14b0   :  { %10677 = vmatprep.subr.mxu0 %v11281_v20  ;;  %10690 = vmatprep.subr.mxu1 %v11281_v20 }
0x14b1   :  { %10678 = vmatpush3.msra.mxu0 %v5753_v35  ;;  %10691 = vmatpush3.msra.mxu1 %v5756_v4 }
0x14b2   :  { %10679 = vmatprep.subr.mxu0 %v11281_v20  ;;  %10692 = vmatprep.subr.mxu1 %v11281_v20 }
0x14b3   :  { %10680 = vmatpush3.msra.mxu0 %v5752_v50  ;;  %10693 = vmatpush3.msra.mxu1 %v5755_v12 }
0x14b4   :  { %10681 = vmatprep.subr.mxu0 %v11281_v20  ;;  %10683 = vmatprep.mubr.msk.f32.mxu0 %vm11282_vm1, %v11281_v20 }
0x14b5   :  { %10682 = vmatpush3.msra.mxu0 %v5751_v17 }
0x14b6   :  { %10697 = vmatprep.subr.mxu0 %v9239_v26 }
0x14b9   :  { %v10992_v49 = vpop.eup %10991 }
0x14ba   :  { %v6631_v15 = vmul.f32 %v10992_v49, %v12995_v22  ;;  %v9237_v22 = vld [vmem:[%s13438_s4 + $0x48] sm:$0xff] }
0x14bb   :  { %v10994_v48 = vpop.eup %10993 }
0x14bc   :  { %v6629_v56 = vmul.f32 %v10994_v48, %v12993_v8  ;;  %10695 = vmatmul.mubr.msk.f32.vlgmr.msra.gmra.mxu1 %vm185_vm0, %v6631_v15  ;;  %v9236_v8 = vld [vmem:[%s13438_s4 + $0x40] sm:$0xff] }
0x14be   :  { %10684 = vmatmul.mubr.msk.f32.vlgmr.msra.gmra.mxu0 %vm185_vm0, %v6629_v56 }
0x14bf   :  { %10698 = vmatpush3.msra.mxu0 %v9239_v26 }
0x14c0   :  { %10699 = vmatprep.subr.mxu0 %v9238_v57 }
0x14c1   :  { %10700 = vmatpush3.msra.mxu0 %v9238_v57 }
0x14c2   :  { %10701 = vmatprep.subr.mxu0 %v9237_v22 }
0x14c3   :  { %10702 = vmatpush3.msra.mxu0 %v9237_v22 }
0x14c4   :  { %10703 = vmatprep.subr.mxu0 %v9236_v8 }
0x14c5   :  { %10704 = vmatpush3.msra.mxu0 %v9236_v8 }
0x154e   :  { %v6701_v42 = vpop.f32.mrf.mxu1 }
0x154f   :  { %10705 = vmatprep.mubr.msk.f32.mxu0 %vm185_vm0, %v6701_v42 }
0x1550   :  { %v10619_v33 = vpop.f32.mrf.mxu1 }
0x1556   :  { %v6774_v54 = vpop.f32.mrf.mxu1 }
0x1557   :  { %10706 = vmatmul.mubr.msk.f32.vlgmr.msra.gmra.mxu0 %vm185_vm0, %v6774_v54 }
0x1558   :  { %v10630_v45 = vpop.f32.mrf.mxu1 }
0x155e   :  { %v6920_v61 = vpop.f32.mrf.mxu1 }
0x155f   :  { %v6847_v59 = vpop.f32.mrf.mxu0 }
0x1560   :  { %v10652_v11 = vpop.f32.mrf.mxu1  ;;  %10708 = vmatprep.mubr.msk.f32.mxu0 %vm185_vm0, %v6847_v59 }
0x1561   :  { %v10641_v14 = vpop.f32.mrf.mxu0  ;;  %10709 = vmatmul.mubr.msk.f32.gmra.mxu0 %vm185_vm0, %v6920_v61 }
0x156c   :  { %v7066_v29 = vpop.f32.mrf.mxu1 }
0x156e   :  { %v6993_v9 = vpop.f32.mrf.mxu0  ;;  %v10674_v41 = vpop.f32.mrf.mxu1 }
0x156f   :  { %10711 = vmatprep.mubr.msk.f32.mxu0 %vm185_vm0, %v6993_v9 }
0x1570   :  { %v10663_v19 = vpop.f32.mrf.mxu0  ;;  %10712 = vmatmul.mubr.msk.f32.gmra.mxu0 %vm185_vm0, %v7066_v29 }
0x157c   :  { %v7212_v7 = vpop.f32.mrf.mxu1 }
0x157e   :  { %v7139_v27 = vpop.f32.mrf.mxu0  ;;  %v10696_v0 = vpop.f32.mrf.mxu1 }
0x157f   :  { %10714 = vmatprep.mubr.msk.f32.mxu0 %vm185_vm0, %v7139_v27 }
0x1580   :  { %v10685_v52 = vpop.f32.mrf.mxu0  ;;  %10715 = vmatmul.mubr.msk.f32.gmra.mxu0 %vm185_vm0, %v7212_v7 }
0x1617   :  { %v10707_v31 = vpop.f32.mrf.mxu0 }
0x1618   :  { %v7321_v55 = vadd.f32 %v10707_v31, %v7224_v58 }
0x1619   :  { %v7315_v30 = vpop.f32.mrf.mxu0 }
0x161a   :  { %v7316_v38 = vadd.f32 %v7315_v30, %v7224_v58  ;;  %v7355_v10 = vadd.f32 %v7321_v55, %v12676_v53 }
0x161c   :  { %v7365_v25 = vsel %vm185_vm0, %v7355_v10, 0.0  ;;  %v7354_v18 = vadd.f32 %v7316_v38, %v12673_v6 }
0x161d   :  { %7366 = vadd.xlane.f32.xlu1 %v7365_v25 }
0x161e   :  { %v7362_v47 = vsel %vm185_vm0, %v7354_v18, 0.0 }
0x161f   :  { %7363 = vadd.xlane.f32.xlu0 %v7362_v47  ;;  %v7493_v47 = vld [vmem:[#allocation8 + $0x50] sm:$0xff] }
0x1621   :  { %v10710_v3 = vpop.f32.mrf.mxu0 }
0x1622   :  { %v7331_v28 = vadd.f32 %v10710_v3, %v7224_v58 }
0x1623   :  { %v7325_v60 = vpop.f32.mrf.mxu0 }
0x1624   :  { %v7326_v13 = vadd.f32 %v7325_v60, %v7224_v58  ;;  %v7357_v16 = vadd.f32 %v7331_v28, %v12694_v32  ;;  %v7492_v28 = vld [vmem:[#allocation8 + $0x48] sm:$0xff] }
0x1626   :  { %v7371_v1 = vsel %vm185_vm0, %v7357_v16, 0.0  ;;  %v7356_v43 = vadd.f32 %v7326_v13, %v12691_v46 }
0x1627   :  { %7372 = vadd.xlane.f32.xlu1 %v7371_v1 }
0x1628   :  { %v7368_v53 = vsel %vm185_vm0, %v7356_v43, 0.0 }
0x1629   :  { %7369 = vadd.xlane.f32.xlu0 %v7368_v53 }
0x1630   :  { %v10713_v2 = vpop.f32.mrf.mxu0 }
0x1631   :  { %v7341_v6 = vadd.f32 %v10713_v2, %v7224_v58 }
0x1632   :  { %v7335_v63 = vpop.f32.mrf.mxu0 }
0x1633   :  { %v7336_v5 = vadd.f32 %v7335_v63, %v7224_v58  ;;  %v7359_v35 = vadd.f32 %v7341_v6, %v12713_v39 }
0x1635   :  { %v7377_v4 = vsel %vm185_vm0, %v7359_v35, 0.0  ;;  %v7358_v50 = vadd.f32 %v7336_v5, %v12710_v62 }
0x1636   :  { %7378 = vadd.xlane.f32.xlu1 %v7377_v4 }
0x1637   :  { %v7374_v32 = vsel %vm185_vm0, %v7358_v50, 0.0 }
0x1638   :  { %7375 = vadd.xlane.f32.xlu0 %v7374_v32 }
0x1640   :  { %v10716_v12 = vpop.f32.mrf.mxu0 }
0x1641   :  { %v7351_v46 = vadd.f32 %v10716_v12, %v7224_v58 }
0x1642   :  { %v7345_v17 = vpop.f32.mrf.mxu0 }
0x1643   :  { %v7346_v49 = vadd.f32 %v7345_v17, %v7224_v58  ;;  %v7361_v15 = vadd.f32 %v7351_v46, %v12731_v34 }
0x1645   :  { %v7383_v48 = vsel %vm185_vm0, %v7361_v15, 0.0  ;;  %v7360_v56 = vadd.f32 %v7346_v49, %v12728_v44 }
0x1646   :  { %7384 = vadd.xlane.f32.xlu1 %v7383_v48 }
0x1647   :  { %v7380_v39 = vsel %vm185_vm0, %v7360_v56, 0.0 }
0x1648   :  { %7381 = vadd.xlane.f32.xlu0 %v7380_v39 }
0x16a6   :  { %v7367_v26 = vpop.xlane.xlu1 %7366 }
0x16a7   :  { %v7387_v62 = vmul.f32 0.03125, %v7367_v26 }
0x16a8   :  { %v7364_v57 = vpop.xlane.xlu0 %7363 }
0x16a9   :  { %v13135_v22 = vsub.f32 %v7355_v10, %v7387_v62  ;;  %v7386_v8 = vmul.f32 0.03125, %v7364_v57  ;;  %v13178_v62 = vld [vmem:[%s13441_s7 + $0x20] sm:$0xff] }
0x16aa   :  { %v7469_v57 = vrot.slane %v13178_v62, %v11886_v51 }
0x16ab   :  { %v13137_v42 = vsub.f32 %v7354_v18, %v7386_v8  ;;  %v7403_v33 = vmul.f32 %v13135_v22, %v13135_v22  ;;  %v7494_v18 = vld [vmem:[#allocation8 + $0x58] sm:$0xff] }
0x16ac   :  { %10717 = vmatprep.subr.mxu1 %v7494_v18 }
0x16ad   :  { %v7413_v34 = vsel %vm185_vm0, %v7403_v33, 0.0  ;;  %v7402_v44 = vmul.f32 %v13137_v42, %v13137_v42  ;;  %10718 = vmatpush3.msra.mxu1 %v7494_v18 }
0x16ae   :  { %7414 = vadd.xlane.f32.xlu1 %v7413_v34  ;;  %10719 = vmatprep.subr.mxu1 %v7493_v47 }
0x16af   :  { %v7410_v54 = vsel %vm185_vm0, %v7402_v44, 0.0  ;;  %10720 = vmatpush3.msra.mxu1 %v7493_v47 }
0x16b0   :  { %v7373_v45 = vpop.xlane.xlu1 %7372  ;;  %7411 = vadd.xlane.f32.xlu0 %v7410_v54  ;;  %10721 = vmatprep.subr.mxu1 %v7492_v28  ;;  %v7481_v54 = vrot.slane %v13178_v62, %v11896_v40 }
0x16b1   :  { %v7389_v61 = vmul.f32 0.03125, %v7373_v45  ;;  %10722 = vmatpush3.msra.mxu1 %v7492_v28 }
0x16b2   :  { %v7370_v59 = vpop.xlane.xlu0 %7369 }
0x16b3   :  { %v13145_v11 = vsub.f32 %v7357_v16, %v7389_v61  ;;  %v7388_v14 = vmul.f32 0.03125, %v7370_v59  ;;  %v7491_v16 = vld [vmem:[#allocation8 + $0x40] sm:$0xff] }
0x16b4   :  { %10723 = vmatprep.subr.mxu1 %v7491_v16 }
0x16b5   :  { %v13147_v29 = vsub.f32 %v7356_v43, %v7388_v14  ;;  %v7405_v9 = vmul.f32 %v13145_v11, %v13145_v11  ;;  %10724 = vmatpush3.msra.mxu1 %v7491_v16 }
0x16b7   :  { %v7419_v41 = vsel %vm185_vm0, %v7405_v9, 0.0  ;;  %v7404_v19 = vmul.f32 %v13147_v29, %v13147_v29 }
0x16b8   :  { %7420 = vadd.xlane.f32.xlu1 %v7419_v41 }
0x16b9   :  { %v7416_v7 = vsel %vm185_vm0, %v7404_v19, 0.0 }
0x16ba   :  { %7417 = vadd.xlane.f32.xlu0 %v7416_v7 }
0x16bf   :  { %v7379_v27 = vpop.xlane.xlu1 %7378 }
0x16c0   :  { %v7391_v0 = vmul.f32 0.03125, %v7379_v27 }
0x16c1   :  { %v7376_v52 = vpop.xlane.xlu0 %7375 }
0x16c2   :  { %v13155_v58 = vsub.f32 %v7359_v35, %v7391_v0  ;;  %v7390_v31 = vmul.f32 0.03125, %v7376_v52 }
0x16c4   :  { %v13157_v55 = vsub.f32 %v7358_v50, %v7390_v31  ;;  %v7407_v30 = vmul.f32 %v13155_v58, %v13155_v58 }
0x16c6   :  { %v7425_v38 = vsel %vm185_vm0, %v7407_v30, 0.0  ;;  %v7406_v10 = vmul.f32 %v13157_v55, %v13157_v55 }
0x16c7   :  { %7426 = vadd.xlane.f32.xlu1 %v7425_v38 }
0x16c8   :  { %v7422_v25 = vsel %vm185_vm0, %v7406_v10, 0.0 }
0x16c9   :  { %7423 = vadd.xlane.f32.xlu0 %v7422_v25 }
0x16cf   :  { %v7385_v3 = vpop.xlane.xlu1 %7384 }
0x16d0   :  { %v7393_v60 = vmul.f32 0.03125, %v7385_v3 }
0x16d1   :  { %v7382_v13 = vpop.xlane.xlu0 %7381 }
0x16d2   :  { %v13165_v1 = vsub.f32 %v7361_v15, %v7393_v60  ;;  %v7392_v43 = vmul.f32 0.03125, %v7382_v13 }
0x16d4   :  { %v13167_v53 = vsub.f32 %v7360_v56, %v7392_v43  ;;  %v7409_v2 = vmul.f32 %v13165_v1, %v13165_v1 }
0x16d6   :  { %v7431_v6 = vsel %vm185_vm0, %v7409_v2, 0.0  ;;  %v7408_v63 = vmul.f32 %v13167_v53, %v13167_v53 }
0x16d7   :  { %7432 = vadd.xlane.f32.xlu1 %v7431_v6 }
0x16d8   :  { %v7428_v5 = vsel %vm185_vm0, %v7408_v63, 0.0 }
0x16d9   :  { %7429 = vadd.xlane.f32.xlu0 %v7428_v5 }
0x1737   :  { %v7415_v35 = vpop.xlane.xlu1 %7414 }
0x1738   :  { %v7435_v4 = vmul.f32 0.03125, %v7415_v35 }
0x1739   :  { %v7412_v50 = vpop.xlane.xlu0 %7411 }
0x173a   :  { %v7443_v32 = vadd.f32 1e-05, %v7435_v4  ;;  %v7434_v12 = vmul.f32 0.03125, %v7412_v50 }
0x173c   :  { %10995 = vrsqrt.f32 %v7443_v32  ;;  %v7442_v46 = vadd.f32 1e-05, %v7434_v12  ;;  %v7640_v32 = vld [vmem:[#allocation10 + $0x58] sm:$0xff]  ;;  %v7639_v12 = vld [vmem:[#allocation10 + $0x50] sm:$0xff] }
0x173d   :  { %10737 = vmatprep.subr.mxu0 %v7640_v32 }
0x173e   :  { %10997 = vrsqrt.f32 %v7442_v46  ;;  %10738 = vmatpush3.msra.mxu0 %v7640_v32  ;;  %v7498_v46 = vrot.slane %v13178_v62, %v11941_v24 }
0x173f   :  { %10739 = vmatprep.subr.mxu0 %v7639_v12 }
0x1740   :  { %10740 = vmatpush3.msra.mxu0 %v7639_v12 }
0x1741   :  { %v7421_v17 = vpop.xlane.xlu1 %7420 }
0x1742   :  { %v7437_v49 = vmul.f32 0.03125, %v7421_v17 }
0x1743   :  { %v7418_v15 = vpop.xlane.xlu0 %7417 }
0x1744   :  { %v7445_v48 = vadd.f32 1e-05, %v7437_v49  ;;  %v7436_v56 = vmul.f32 0.03125, %v7418_v15 }
0x1746   :  { %10999 = vrsqrt.f32 %v7445_v48  ;;  %v7444_v39 = vadd.f32 1e-05, %v7436_v56 }
0x1748   :  { %11001 = vrsqrt.f32 %v7444_v39 }
0x1749   :  { %v10996_v26 = vpop.eup %10995 }
0x174a   :  { %v7459_v8 = vmul.f32 %v10996_v26, %v13135_v22 }
0x174b   :  { %v10998_v33 = vpop.eup %10997 }
0x174c   :  { %v7458_v34 = vmul.f32 %v10998_v33, %v13137_v42  ;;  %v7471_v44 = vmul.f32 %v7469_v57, %v7459_v8 }
0x174e   :  { %v7470_v45 = vmul.f32 %v7469_v57, %v7458_v34  ;;  %v13188_v9 = vadd.f32 %v7481_v54, %v7471_v44 }
0x1750   :  { %v7427_v61 = vpop.xlane.xlu1 %7426  ;;  %v13186_v59 = vadd.f32 %v7481_v54, %v7470_v45 }
0x1751   :  { %v7439_v14 = vmul.f32 0.03125, %v7427_v61 }
0x1752   :  { %10725 = vmatprep.mubr.msk.f32.mxu1 %vm185_vm0, %v13186_v59  ;;  %v7424_v51 = vpop.xlane.xlu0 %7423 }
0x1753   :  { %v11000_v41 = vpop.eup %10999  ;;  %v7447_v22 = vadd.f32 1e-05, %v7439_v14  ;;  %10726 = vmatmul.mubr.msk.f32.vlgmr.msra.gmra.mxu1 %vm185_vm0, %v13188_v9  ;;  %v7438_v42 = vmul.f32 0.03125, %v7424_v51 }
0x1754   :  { %v7461_v19 = vmul.f32 %v11000_v41, %v13145_v11 }
0x1755   :  { %v11002_v40 = vpop.eup %11001  ;;  %11003 = vrsqrt.f32 %v7447_v22  ;;  %v7446_v7 = vadd.f32 1e-05, %v7438_v42 }
0x1756   :  { %v7460_v27 = vmul.f32 %v11002_v40, %v13147_v29  ;;  %v7473_v0 = vmul.f32 %v7469_v57, %v7461_v19 }
0x1757   :  { %11005 = vrsqrt.f32 %v7446_v7 }
0x1758   :  { %v7472_v52 = vmul.f32 %v7469_v57, %v7460_v27  ;;  %v13198_v30 = vadd.f32 %v7481_v54, %v7473_v0  ;;  %v7644_v27 = vrot.slane %v13178_v62, %v11954_v37 }
0x175a   :  { %v13196_v31 = vadd.f32 %v7481_v54, %v7472_v52 }
0x175c   :  { %10728 = vmatprep.mubr.msk.f32.mxu1 %vm185_vm0, %v13196_v31 }
0x175d   :  { %10729 = vmatmul.mubr.msk.f32.gmra.mxu1 %vm185_vm0, %v13198_v30 }
0x1760   :  { %v7433_v38 = vpop.xlane.xlu1 %7432 }
0x1761   :  { %v7441_v11 = vmul.f32 0.03125, %v7433_v38 }
0x1762   :  { %v11004_v10 = vpop.eup %11003  ;;  %v7430_v25 = vpop.xlane.xlu0 %7429 }
0x1763   :  { %v7463_v18 = vmul.f32 %v11004_v10, %v13155_v58  ;;  %v7449_v29 = vadd.f32 1e-05, %v7441_v11  ;;  %v7440_v47 = vmul.f32 0.03125, %v7430_v25 }
0x1764   :  { %v11006_v3 = vpop.eup %11005 }
0x1765   :  { %11007 = vrsqrt.f32 %v7449_v29  ;;  %v7448_v28 = vadd.f32 1e-05, %v7440_v47  ;;  %v7462_v60 = vmul.f32 %v11006_v3, %v13157_v55  ;;  %v7475_v13 = vmul.f32 %v7469_v57, %v7463_v18 }
0x1767   :  { %11009 = vrsqrt.f32 %v7448_v28  ;;  %v7474_v16 = vmul.f32 %v7469_v57, %v7462_v60  ;;  %v13208_v2 = vadd.f32 %v7481_v54, %v7475_v13 }
0x1769   :  { %v13206_v43 = vadd.f32 %v7481_v54, %v7474_v16 }
0x176b   :  { %10731 = vmatprep.mubr.msk.f32.mxu1 %vm185_vm0, %v13206_v43 }
0x176c   :  { %10732 = vmatmul.mubr.msk.f32.gmra.mxu1 %vm185_vm0, %v13208_v2 }
0x1772   :  { %v11008_v58 = vpop.eup %11007 }
0x1773   :  { %v7465_v6 = vmul.f32 %v11008_v58, %v13165_v1  ;;  %v7638_v1 = vld [vmem:[#allocation10 + $0x48] sm:$0xff] }
0x1774   :  { %v11010_v63 = vpop.eup %11009  ;;  %10741 = vmatprep.subr.mxu0 %v7638_v1 }
0x1775   :  { %v7464_v5 = vmul.f32 %v11010_v63, %v13167_v53  ;;  %v7477_v55 = vmul.f32 %v7469_v57, %v7465_v6  ;;  %v7637_v53 = vld [vmem:[#allocation10 + $0x40] sm:$0xff]  ;;  %10742 = vmatpush3.msra.mxu0 %v7638_v1 }
0x1776   :  { %10743 = vmatprep.subr.mxu0 %v7637_v53 }
0x1777   :  { %v7476_v35 = vmul.f32 %v7469_v57, %v7464_v5  ;;  %v13218_v50 = vadd.f32 %v7481_v54, %v7477_v55  ;;  %10744 = vmatpush3.msra.mxu0 %v7637_v53 }
0x1778   :  { %10777 = vmatprep.subr.mxu0 %v11281_v20 }
0x1779   :  { %v13216_v4 = vadd.f32 %v7481_v54, %v7476_v35 }
0x177b   :  { %10734 = vmatprep.mubr.msk.f32.mxu1 %vm185_vm0, %v13216_v4 }
0x177c   :  { %10735 = vmatmul.mubr.msk.f32.gmra.mxu1 %vm185_vm0, %v13218_v50 }
0x1813   :  { %v10727_v17 = vpop.f32.mrf.mxu1 }
0x1814   :  { %v7595_v49 = vadd.f32 %v10727_v17, %v7498_v46 }
0x1815   :  { %v7589_v15 = vpop.f32.mrf.mxu1 }
0x1816   :  { %v7590_v48 = vadd.f32 %v7589_v15, %v7498_v46  ;;  %v7629_v39 = vmax.f32 %v7595_v49, 0.0 }
0x1818   :  { %v7628_v56 = vmax.f32 %v7590_v48, 0.0 }
0x181a   :  { %10745 = vmatprep.mubr.msk.f32.mxu0 %vm185_vm0, %v7628_v56 }
0x181b   :  { %10746 = vmatmul.mubr.msk.f32.vlgmr.msra.gmra.mxu0 %vm185_vm0, %v7629_v39 }
0x181d   :  { %v10730_v26 = vpop.f32.mrf.mxu1 }
0x181e   :  { %v7605_v57 = vadd.f32 %v10730_v26, %v7498_v46 }
0x181f   :  { %v7599_v8 = vpop.f32.mrf.mxu1 }
0x1820   :  { %v7600_v33 = vadd.f32 %v7599_v8, %v7498_v46  ;;  %v7631_v44 = vmax.f32 %v7605_v57, 0.0 }
0x1822   :  { %v7630_v34 = vmax.f32 %v7600_v33, 0.0 }
0x1824   :  { %10748 = vmatprep.mubr.msk.f32.mxu0 %vm185_vm0, %v7630_v34 }
0x1825   :  { %10749 = vmatmul.mubr.msk.f32.gmra.mxu0 %vm185_vm0, %v7631_v44 }
0x182c   :  { %v10733_v24 = vpop.f32.mrf.mxu1 }
0x182d   :  { %v7615_v54 = vadd.f32 %v10733_v24, %v7498_v46 }
0x182e   :  { %v7609_v45 = vpop.f32.mrf.mxu1 }
0x182f   :  { %v7610_v61 = vadd.f32 %v7609_v45, %v7498_v46  ;;  %v7633_v51 = vmax.f32 %v7615_v54, 0.0 }
0x1831   :  { %v7632_v14 = vmax.f32 %v7610_v61, 0.0 }
0x1833   :  { %10751 = vmatprep.mubr.msk.f32.mxu0 %vm185_vm0, %v7632_v14 }
0x1834   :  { %10752 = vmatmul.mubr.msk.f32.gmra.mxu0 %vm185_vm0, %v7633_v51 }
0x183c   :  { %v10736_v41 = vpop.f32.mrf.mxu1 }
0x183d   :  { %v7625_v22 = vadd.f32 %v10736_v41, %v7498_v46 }
0x183e   :  { %v7619_v42 = vpop.f32.mrf.mxu1 }
0x183f   :  { %v7620_v19 = vadd.f32 %v7619_v42, %v7498_v46  ;;  %v7635_v7 = vmax.f32 %v7625_v22, 0.0 }
0x1841   :  { %v7634_v40 = vmax.f32 %v7620_v19, 0.0 }
0x1843   :  { %10754 = vmatprep.mubr.msk.f32.mxu0 %vm185_vm0, %v7634_v40 }
0x1844   :  { %10755 = vmatmul.mubr.msk.f32.gmra.mxu0 %vm185_vm0, %v7635_v7 }
0x1845   :  { %10779 = vmatprep.mubr.msk.f32.mxu0 %vm11282_vm1, %v11281_v20 }
0x18db   :  { %v10747_v0 = vpop.f32.mrf.mxu0 }
0x18dc   :  { %v7741_v52 = vadd.f32 %v10747_v0, %v7644_v27 }
0x18dd   :  { %v7735_v38 = vpop.f32.mrf.mxu0 }
0x18de   :  { %v7775_v11 = vadd.f32 %v7741_v52, %v13188_v9  ;;  %v7736_v10 = vadd.f32 %v7735_v38, %v7644_v27  ;;  %v7913_v38 = vld [vmem:[#allocation11 + $0x18] sm:$0xff] }
0x18df   :  { %10757 = vmatprep.subr.mxu1 %v7913_v38 }
0x18e0   :  { %v7774_v25 = vadd.f32 %v7736_v10, %v13186_v59  ;;  %v7785_v18 = vsel %vm185_vm0, %v7775_v11, 0.0  ;;  %10758 = vmatpush3.msra.mxu1 %v7913_v38 }
0x18e1   :  { %7786 = vadd.xlane.f32.xlu1 %v7785_v18 }
0x18e2   :  { %v7782_v29 = vsel %vm185_vm0, %v7774_v25, 0.0 }
0x18e3   :  { %7783 = vadd.xlane.f32.xlu0 %v7782_v29 }
0x18e5   :  { %v10750_v47 = vpop.f32.mrf.mxu0 }
0x18e6   :  { %v7751_v3 = vadd.f32 %v10750_v47, %v7644_v27  ;;  %v7910_v47 = vld [vmem:[#allocation11] sm:$0xff] }
0x18e7   :  { %v7745_v28 = vpop.f32.mrf.mxu0 }
0x18e8   :  { %v7777_v60 = vadd.f32 %v7751_v3, %v13198_v30  ;;  %v7746_v37 = vadd.f32 %v7745_v28, %v7644_v27 }
0x18ea   :  { %v7776_v62 = vadd.f32 %v7746_v37, %v13196_v31  ;;  %v7791_v13 = vsel %vm185_vm0, %v7777_v60, 0.0 }
0x18eb   :  { %7792 = vadd.xlane.f32.xlu1 %v7791_v13 }
0x18ec   :  { %v7788_v9 = vsel %vm185_vm0, %v7776_v62, 0.0 }
0x18ed   :  { %7789 = vadd.xlane.f32.xlu0 %v7788_v9 }
0x18f4   :  { %v10753_v59 = vpop.f32.mrf.mxu0 }
0x18f5   :  { %v7761_v16 = vadd.f32 %v10753_v59, %v7644_v27 }
0x18f6   :  { %v7755_v58 = vpop.f32.mrf.mxu0 }
0x18f7   :  { %v7779_v6 = vadd.f32 %v7761_v16, %v13208_v2  ;;  %v7756_v63 = vadd.f32 %v7755_v58, %v7644_v27 }
0x18f9   :  { %v7778_v5 = vadd.f32 %v7756_v63, %v13206_v43  ;;  %v7797_v55 = vsel %vm185_vm0, %v7779_v6, 0.0 }
0x18fa   :  { %7798 = vadd.xlane.f32.xlu1 %v7797_v55 }
0x18fb   :  { %v7794_v30 = vsel %vm185_vm0, %v7778_v5, 0.0 }
0x18fc   :  { %7795 = vadd.xlane.f32.xlu0 %v7794_v30 }
0x1904   :  { %v10756_v31 = vpop.f32.mrf.mxu0 }
0x1905   :  { %v7771_v35 = vadd.f32 %v10756_v31, %v7644_v27 }
0x1906   :  { %v7765_v32 = vpop.f32.mrf.mxu0 }
0x1907   :  { %v7781_v12 = vadd.f32 %v7771_v35, %v13218_v50  ;;  %v7766_v1 = vadd.f32 %v7765_v32, %v7644_v27 }
0x1909   :  { %v7780_v53 = vadd.f32 %v7766_v1, %v13216_v4  ;;  %v7803_v46 = vsel %vm185_vm0, %v7781_v12, 0.0 }
0x190a   :  { %7804 = vadd.xlane.f32.xlu1 %v7803_v46 }
0x190b   :  { %v7800_v2 = vsel %vm185_vm0, %v7780_v53, 0.0 }
0x190c   :  { %7801 = vadd.xlane.f32.xlu0 %v7800_v2 }
0x196a   :  { %v7787_v43 = vpop.xlane.xlu1 %7786 }
0x196b   :  { %v7807_v17 = vmul.f32 0.03125, %v7787_v43 }
0x196c   :  { %v7784_v49 = vpop.xlane.xlu0 %7783 }
0x196d   :  { %v13255_v15 = vsub.f32 %v7775_v11, %v7807_v17  ;;  %v7806_v48 = vmul.f32 0.03125, %v7784_v49  ;;  %v7912_v11 = vld [vmem:[#allocation11 + $0x10] sm:$0xff] }
0x196e   :  { %10759 = vmatprep.subr.mxu1 %v7912_v11 }
0x196f   :  { %v13257_v56 = vsub.f32 %v7774_v25, %v7806_v48  ;;  %v7823_v50 = vmul.f32 %v13255_v15, %v13255_v15  ;;  %10760 = vmatpush3.msra.mxu1 %v7912_v11  ;;  %v7911_v25 = vld [vmem:[#allocation11 + $0x8] sm:$0xff] }
0x1970   :  { %10761 = vmatprep.subr.mxu1 %v7911_v25 }
0x1971   :  { %v7833_v39 = vsel %vm185_vm0, %v7823_v50, 0.0  ;;  %v7822_v4 = vmul.f32 %v13257_v56, %v13257_v56  ;;  %10762 = vmatpush3.msra.mxu1 %v7911_v25 }
0x1972   :  { %7834 = vadd.xlane.f32.xlu1 %v7833_v39  ;;  %10763 = vmatprep.subr.mxu1 %v7910_v47 }
0x1973   :  { %v7830_v26 = vsel %vm185_vm0, %v7822_v4, 0.0  ;;  %10764 = vmatpush3.msra.mxu1 %v7910_v47 }
0x1974   :  { %v7793_v57 = vpop.xlane.xlu1 %7792  ;;  %7831 = vadd.xlane.f32.xlu0 %v7830_v26  ;;  %10782 = vmatprep.subr.mxu1 %v11281_v20 }
0x1975   :  { %v7809_v8 = vmul.f32 0.03125, %v7793_v57 }
0x1976   :  { %v7790_v33 = vpop.xlane.xlu0 %7789 }
0x1977   :  { %v13265_v34 = vsub.f32 %v7777_v60, %v7809_v8  ;;  %v7808_v44 = vmul.f32 0.03125, %v7790_v33 }
0x1979   :  { %v13267_v24 = vsub.f32 %v7776_v62, %v7808_v44  ;;  %v7825_v54 = vmul.f32 %v13265_v34, %v13265_v34 }
0x197b   :  { %v7839_v45 = vsel %vm185_vm0, %v7825_v54, 0.0  ;;  %v7824_v61 = vmul.f32 %v13267_v24, %v13267_v24 }
0x197c   :  { %7840 = vadd.xlane.f32.xlu1 %v7839_v45 }
0x197d   :  { %v7836_v14 = vsel %vm185_vm0, %v7824_v61, 0.0 }
0x197e   :  { %7837 = vadd.xlane.f32.xlu0 %v7836_v14 }
0x1983   :  { %v7799_v51 = vpop.xlane.xlu1 %7798 }
0x1984   :  { %v7811_v41 = vmul.f32 0.03125, %v7799_v51 }
0x1985   :  { %v7796_v22 = vpop.xlane.xlu0 %7795 }
0x1986   :  { %v13275_v42 = vsub.f32 %v7779_v6, %v7811_v41  ;;  %v7810_v19 = vmul.f32 0.03125, %v7796_v22 }
0x1988   :  { %v13277_v40 = vsub.f32 %v7778_v5, %v7810_v19  ;;  %v7827_v7 = vmul.f32 %v13275_v42, %v13275_v42 }
0x198a   :  { %v7845_v27 = vsel %vm185_vm0, %v7827_v7, 0.0  ;;  %v7826_v0 = vmul.f32 %v13277_v40, %v13277_v40 }
0x198b   :  { %7846 = vadd.xlane.f32.xlu1 %v7845_v27 }
0x198c   :  { %v7842_v52 = vsel %vm185_vm0, %v7826_v0, 0.0 }
0x198d   :  { %7843 = vadd.xlane.f32.xlu0 %v7842_v52 }
0x1993   :  { %v7805_v10 = vpop.xlane.xlu1 %7804 }
0x1994   :  { %v7813_v18 = vmul.f32 0.03125, %v7805_v10 }
0x1995   :  { %v7802_v29 = vpop.xlane.xlu0 %7801 }
0x1996   :  { %v13285_v3 = vsub.f32 %v7781_v12, %v7813_v18  ;;  %v7812_v28 = vmul.f32 0.03125, %v7802_v29  ;;  %v9155_v12 = vld [vmem:[%s13441_s7 + $0x28] sm:$0x3] }
0x1997   :  { %v7889_v46 = vrot.slane %v9155_v12, %v11494_v36  ;;  %v7901_v49 = vrot.slane %v9155_v12, %v11469_v23 }
0x1998   :  { %v13287_v60 = vsub.f32 %v7780_v53, %v7812_v28  ;;  %v7829_v37 = vmul.f32 %v13285_v3, %v13285_v3 }
0x199a   :  { %v7851_v62 = vsel %vm185_vm0, %v7829_v37, 0.0  ;;  %v7828_v13 = vmul.f32 %v13287_v60, %v13287_v60 }
0x199b   :  { %7852 = vadd.xlane.f32.xlu1 %v7851_v62 }
0x199c   :  { %v7848_v9 = vsel %vm185_vm0, %v7828_v13, 0.0 }
0x199d   :  { %7849 = vadd.xlane.f32.xlu0 %v7848_v9 }
0x19fb   :  { %v7835_v59 = vpop.xlane.xlu1 %7834 }
0x19fc   :  { %v7855_v16 = vmul.f32 0.03125, %v7835_v59 }
0x19fd   :  { %v7832_v58 = vpop.xlane.xlu0 %7831 }
0x19fe   :  { %v7863_v6 = vadd.f32 1e-05, %v7855_v16  ;;  %v7854_v63 = vmul.f32 0.03125, %v7832_v58  ;;  %v8115_v16 = vld [vmem:[#allocation5] sm:$0xff] }
0x19ff   :  { %10778 = vmatpush3.xpose.msk.msra.mxu0 %vm185_vm0, %v8115_v16  ;;  %v8733_v58 = vld [vmem:[%s13436_s2] sm:$0x1] }
0x1a00   :  { %11011 = vrsqrt.f32 %v7863_v6  ;;  %v7862_v5 = vadd.f32 1e-05, %v7854_v63  ;;  %10787 = vmatprep.subr.mxu0 %v11281_v20  ;;  %v8735_v6 = vld [vmem:[%s13436_s2 + $0x2] sm:$0x1]  ;;  %v8736_v63 = vld [vmem:[%s13436_s2 + $0x3] sm:$0x1] }
0x1a02   :  { %11013 = vrsqrt.f32 %v7862_v5  ;;  %v8737_v5 = vld [vmem:[%s13436_s2 + $0x4] sm:$0x1] }
0x1a05   :  { %v7841_v55 = vpop.xlane.xlu1 %7840 }
0x1a06   :  { %v7857_v30 = vmul.f32 0.03125, %v7841_v55  ;;  %v8738_v55 = vld [vmem:[%s13436_s2 + $0x5] sm:$0x1] }
0x1a07   :  { %v7838_v31 = vpop.xlane.xlu0 %7837 }
0x1a08   :  { %v7865_v35 = vadd.f32 1e-05, %v7857_v30  ;;  %v7856_v32 = vmul.f32 0.03125, %v7838_v31  ;;  %v8739_v30 = vld [vmem:[%s13436_s2 + $0x6] sm:$0x1] }
0x1a09   :  { %v8740_v31 = vld [vmem:[%s13436_s2 + $0x7] sm:$0x1] }
0x1a0a   :  { %11015 = vrsqrt.f32 %v7865_v35  ;;  %v7864_v1 = vadd.f32 1e-05, %v7856_v32  ;;  %v13350_v35 = vld [vmem:[%s13443_s9] ss:$0 sm:$0xff] }
0x1a0c   :  { %11017 = vrsqrt.f32 %v7864_v1 }
0x1a0d   :  { %v11012_v53 = vpop.eup %11011 }
0x1a0e   :  { %v7879_v2 = vmul.f32 %v11012_v53, %v13255_v15 }
0x1a0f   :  { %v11014_v43 = vpop.eup %11013 }
0x1a10   :  { %v7878_v17 = vmul.f32 %v11014_v43, %v13257_v56  ;;  %v7891_v48 = vmul.f32 %v7889_v46, %v7879_v2 }
0x1a12   :  { %v7890_v50 = vmul.f32 %v7889_v46, %v7878_v17  ;;  %v7903_v26 = vadd.f32 %v7901_v49, %v7891_v48 }
0x1a14   :  { %v7847_v39 = vpop.xlane.xlu1 %7846  ;;  %v7902_v4 = vadd.f32 %v7901_v49, %v7890_v50 }
0x1a15   :  { %v7859_v57 = vmul.f32 0.03125, %v7847_v39 }
0x1a16   :  { %10765 = vmatprep.mubr.msk.f32.mxu1 %vm185_vm0, %v7902_v4  ;;  %v7844_v8 = vpop.xlane.xlu0 %7843 }
0x1a17   :  { %v11016_v33 = vpop.eup %11015  ;;  %v7867_v44 = vadd.f32 1e-05, %v7859_v57  ;;  %10766 = vmatmul.mubr.msk.f32.vlgmr.msra.gmra.mxu1 %vm185_vm0, %v7903_v26  ;;  %v7858_v54 = vmul.f32 0.03125, %v7844_v8 }
0x1a18   :  { %v7881_v15 = vmul.f32 %v11016_v33, %v13265_v34 }
0x1a19   :  { %v11018_v45 = vpop.eup %11017  ;;  %11019 = vrsqrt.f32 %v7867_v44  ;;  %v7866_v56 = vadd.f32 1e-05, %v7858_v54 }
0x1a1a   :  { %v7880_v23 = vmul.f32 %v11018_v45, %v13267_v24  ;;  %v7893_v61 = vmul.f32 %v7889_v46, %v7881_v15 }
0x1a1b   :  { %11021 = vrsqrt.f32 %v7866_v56 }
0x1a1c   :  { %v7892_v14 = vmul.f32 %v7889_v46, %v7880_v23  ;;  %v7905_v41 = vadd.f32 %v7901_v49, %v7893_v61 }
0x1a1e   :  { %v7904_v51 = vadd.f32 %v7901_v49, %v7892_v14 }
0x1a20   :  { %10768 = vmatprep.mubr.msk.f32.mxu1 %vm185_vm0, %v7904_v51 }
0x1a21   :  { %10769 = vmatmul.mubr.msk.f32.gmra.mxu1 %vm185_vm0, %v7905_v41 }
0x1a24   :  { %v7853_v22 = vpop.xlane.xlu1 %7852 }
0x1a25   :  { %v7861_v19 = vmul.f32 0.03125, %v7853_v22 }
0x1a26   :  { %v11020_v7 = vpop.eup %11019  ;;  %v7850_v27 = vpop.xlane.xlu0 %7849 }
0x1a27   :  { %v7883_v34 = vmul.f32 %v11020_v7, %v13275_v42  ;;  %v7869_v0 = vadd.f32 1e-05, %v7861_v19  ;;  %v7860_v52 = vmul.f32 0.03125, %v7850_v27  ;;  %v8118_v19 = vld [vmem:[#allocation5 + $0x18] sm:$0xff] }
0x1a28   :  { %v11022_v38 = vpop.eup %11021 }
0x1a29   :  { %11023 = vrsqrt.f32 %v7869_v0  ;;  %v7868_v24 = vadd.f32 1e-05, %v7860_v52  ;;  %v7882_v11 = vmul.f32 %v11022_v38, %v13277_v40  ;;  %v7895_v10 = vmul.f32 %v7889_v46, %v7883_v34  ;;  %v8116_v40 = vld [vmem:[#allocation5 + $0x8] sm:$0xff]  ;;  %v8117_v0 = vld [vmem:[#allocation5 + $0x10] sm:$0xff] }
0x1a2a   :  { %10783 = vmatpush3.xpose.msk.msra.mxu1 %vm185_vm0, %v8116_v40 }
0x1a2b   :  { %11025 = vrsqrt.f32 %v7868_v24  ;;  %v7894_v25 = vmul.f32 %v7889_v46, %v7882_v11  ;;  %v7907_v29 = vadd.f32 %v7901_v49, %v7895_v10  ;;  %10792 = vmatprep.subr.mxu1 %v11281_v20 }
0x1a2d   :  { %v7906_v18 = vadd.f32 %v7901_v49, %v7894_v25 }
0x1a2f   :  { %10771 = vmatprep.mubr.msk.f32.mxu1 %vm185_vm0, %v7906_v18 }
0x1a30   :  { %10772 = vmatmul.mubr.msk.f32.gmra.mxu1 %vm185_vm0, %v7907_v29 }
0x1a36   :  { %v11024_v47 = vpop.eup %11023 }
0x1a37   :  { %v7885_v28 = vmul.f32 %v11024_v47, %v13285_v3  ;;  %v8734_v3 = vld [vmem:[%s13436_s2 + $0x1] sm:$0x1]  ;;  %s11284_s2 = smov [#allocation16]  }
0x1a38   :  { %v11026_v42 = vpop.eup %11025  ;;  %s8924_s9 = sshll.u32 %s11284_s2, 4  ;;  %s8925_s9 = int_to_ptr.vmem [resolvable:$true] %s8924_s9 }
0x1a39   :  { %v7884_v37 = vmul.f32 %v11026_v42, %v13287_v60  ;;  %v7897_v62 = vmul.f32 %v7889_v46, %v7885_v28  ;;  %v11283_v60 = vmov 0   ;;  %v8120_v42 = vld [vmem:[#allocation5 + $0x28] sm:$0xff]  ;;  %s11239_s23 = scalar_lea.vmem %s8925_s9, 128  ;;  %p11244_p13 = scmp.lt.s32.totalorder %s8925_s9, %s8925_s9 }
0x1a3a   :  { %10834 = vset.pattern.permute.xlu1 %v11283_v60  ;;  %10833 = vset.pattern.permute.xlu0 %v11283_v60  ;;  %p11240_p12 = scmp.ne.s32.totalorder %s8925_s9, %s11239_s23  ;;  %p11245_p0 = scmp.lt.s32.totalorder %s11239_s23, %s11239_s23 }
0x1a3b   :  { %v7896_v13 = vmul.f32 %v7889_v46, %v7884_v37  ;;  %v7909_v59 = vadd.f32 %v7901_v49, %v7897_v62  ;;  %8749 = vperm.xlu1 %10834, %v8734_v3   ;;  %8742 = vperm.xlu0 %10833, %v8733_v58  }
0x1a3c   :  { %p11246_p1 = por %p11245_p0, %p11244_p13 }
0x1a3d   :  { %v7908_v9 = vadd.f32 %v7901_v49, %v7896_v13 }
0x1a3e   :  { %p11247_p2 = pnand %p11246_p1, %p11240_p12 }
0x1a3f   :  { %10774 = vmatprep.mubr.msk.f32.mxu1 %vm185_vm0, %v7908_v9  ;;  %8756 = vperm.xlu1 %10834, %v8735_v6  }
0x1a40   :  { %10775 = vmatmul.mubr.msk.f32.gmra.mxu1 %vm185_vm0, %v7909_v59  ;;  %v8119_v59 = vld [vmem:[#allocation5 + $0x20] sm:$0xff] }
0x1a41   :  { %10784 = vmatprep.mubr.msk.f32.mxu1 %vm11282_vm1, %v11281_v20 }
0x1a43   :  { %8763 = vperm.xlu1 %10834, %v8736_v63  }
0x1a47   :  { %8770 = vperm.xlu1 %10834, %v8737_v5  }
0x1a4b   :  { %8777 = vperm.xlu1 %10834, %v8738_v55  }
0x1a4f   :  { %8784 = vperm.xlu1 %10834, %v8739_v30  }
0x1a53   :  { %8791 = vperm.xlu1 %10834, %v8740_v31  }
0x1ad7   :  { %v10767_v32 = vpop.f32.mrf.mxu1 }
0x1ad8   :  { %v8017_v12 = vadd.f32 %v10767_v32, %v13350_v35 }
0x1ad9   :  { %v8011_v1 = vpop.f32.mrf.mxu1 }
0x1ada   :  { %v8057_v53 = vsel %vm185_vm0, %v8017_v12, 0.0  ;;  %v8012_v46 = vadd.f32 %v13350_v35, %v8011_v1 }
0x1adb   :  { %v8058_v2 = vrot.slane %v8057_v53, 4 }
0x1adc   :  { %v8050_v43 = vsel %vm185_vm0, %v8012_v46, 0.0  ;;  %v8122_v46 = vld [vmem:[#allocation5 + $0x38] sm:$0xff] }
0x1add   :  { %v8059_v17 = vadd.f32 %v8058_v2, %v8057_v53  ;;  %v8051_v49 = vrot.slane %v8050_v43, 4 }
0x1adf   :  { %v8060_v48 = vrot.slane %v8059_v17, 2  ;;  %v8052_v50 = vadd.f32 %v8051_v49, %v8050_v43  ;;  %v8121_v49 = vld [vmem:[#allocation5 + $0x30] sm:$0xff] }
0x1ae1   :  { %v8061_v39 = vadd.f32 %v8060_v48, %v8059_v17  ;;  %v8053_v4 = vrot.slane %v8052_v50, 2  ;;  %v10770_v26 = vpop.f32.mrf.mxu1 }
0x1ae2   :  { %v8027_v57 = vadd.f32 %v10770_v26, %v13350_v35 }
0x1ae3   :  { %v8062_v8 = vrot.slane %v8061_v39, 1  ;;  %v8054_v33 = vadd.f32 %v8053_v4, %v8052_v50  ;;  %v8021_v44 = vpop.f32.mrf.mxu1 }
0x1ae4   :  { %v8071_v54 = vsel %vm185_vm0, %v8027_v57, 0.0  ;;  %v8022_v15 = vadd.f32 %v13350_v35, %v8021_v44 }
0x1ae5   :  { %v8063_v45 = vadd.f32 %v8062_v8, %v8061_v39  ;;  %v8055_v56 = vrot.slane %v8054_v33, 1  ;;  %v8072_v23 = vrot.slane %v8071_v54, 4 }
0x1ae6   :  { %v8064_v61 = vsel %vm185_vm0, %v8022_v15, 0.0 }
0x1ae7   :  { %v8108_v14 = vmul.f32 0.125, %v8063_v45  ;;  %v8056_v51 = vadd.f32 %v8055_v56, %v8054_v33  ;;  %v8073_v41 = vadd.f32 %v8072_v23, %v8071_v54  ;;  %v8065_v22 = vrot.slane %v8064_v61, 4 }
0x1ae9   :  { %v8107_v7 = vmul.f32 0.125, %v8056_v51  ;;  %v8074_v27 = vrot.slane %v8073_v41, 2  ;;  %v8066_v34 = vadd.f32 %v8065_v22, %v8064_v61  ;;  %10785 = vmatmul.mubr.msk.f32.vlgmr.msra.gmra.mxu1 %vm185_vm0, %v8108_v14  ;;  %v8750_v51 = vpop.permute.xlu1 %8749  ;;  %v8732_v22 = vand.u32 127, %v181_v21 }
0x1aea   :  { %10793 = vmatpush3.xpose.msk.msra.mxu1 %vm185_vm0, %v8118_v19  ;;  %10794 = vmatprep.mubr.msk.f32.mxu1 %vm11282_vm1, %v11281_v20 }
0x1aeb   :  { %v8075_v52 = vadd.f32 %v8074_v27, %v8073_v41  ;;  %v8067_v38 = vrot.slane %v8066_v34, 2  ;;  %10780 = vmatmul.mubr.msk.f32.vlgmr.msra.gmra.mxu0 %vm185_vm0, %v8107_v7  ;;  %10802 = vmatprep.subr.mxu1 %v11281_v20  ;;  %v8743_v41 = vpop.permute.xlu0 %8742 }
0x1aec   :  { %10788 = vmatpush3.xpose.msk.msra.mxu0 %vm185_vm0, %v8117_v0  ;;  %10789 = vmatprep.mubr.msk.f32.mxu0 %vm11282_vm1, %v11281_v20  ;;  %v8747_v19 = vrot.slane %v8743_v41, %v11494_v36 }
0x1aed   :  { %v8076_v24 = vrot.slane %v8075_v52, 1  ;;  %v8068_v11 = vadd.f32 %v8067_v38, %v8066_v34  ;;  %10797 = vmatprep.subr.mxu0 %v11281_v20  ;;  %v8757_v7 = vpop.permute.xlu1 %8756 }
0x1aee   :  { %vm8797_vm4 = vcmp.lt.s32.totalorder %v8732_v22, %v8747_v19 }
0x1aef   :  { %v8077_v10 = vadd.f32 %v8076_v24, %v8075_v52  ;;  %v8069_v25 = vrot.slane %v8068_v11, 1 }
0x1af0   :  { %v10773_v18 = vpop.f32.mrf.mxu1 }
0x1af1   :  { %v8110_v29 = vmul.f32 0.125, %v8077_v10  ;;  %v8070_v47 = vadd.f32 %v8069_v25, %v8068_v11  ;;  %v8037_v28 = vadd.f32 %v10773_v18, %v13350_v35  ;;  %v8764_v24 = vpop.permute.xlu1 %8763  ;;  %v8761_v18 = vrot.slane %v8757_v7, %v11494_v36 }
0x1af2   :  { %v8031_v37 = vpop.f32.mrf.mxu1  ;;  %v8768_v10 = vrot.slane %v8764_v24, %v11494_v36 }
0x1af3   :  { %v8109_v62 = vmul.f32 0.125, %v8070_v47  ;;  %v8085_v13 = vsel %vm185_vm0, %v8037_v28, 0.0  ;;  %v8032_v9 = vadd.f32 %v13350_v35, %v8031_v37  ;;  %10795 = vmatmul.mubr.msk.f32.vlgmr.msra.gmra.mxu1 %vm185_vm0, %v8110_v29  ;;  %vm8799_vm6 = vcmp.lt.s32.totalorder %v8732_v22, %v8761_v18 }
0x1af4   :  { %v8086_v40 = vrot.slane %v8085_v13, 4  ;;  %10803 = vmatpush3.xpose.msk.msra.mxu1 %vm185_vm0, %v8120_v42  ;;  %10804 = vmatprep.mubr.msk.f32.mxu1 %vm11282_vm1, %v11281_v20  ;;  %vm8800_vm5 = vcmp.lt.s32.totalorder %v8732_v22, %v8768_v10 }
0x1af5   :  { %v8078_v16 = vsel %vm185_vm0, %v8032_v9, 0.0  ;;  %10790 = vmatmul.mubr.msk.f32.vlgmr.msra.gmra.mxu0 %vm185_vm0, %v8109_v62  ;;  %10812 = vmatprep.subr.mxu1 %v11281_v20 }
0x1af6   :  { %v8087_v3 = vadd.f32 %v8086_v40, %v8085_v13  ;;  %v8079_v60 = vrot.slane %v8078_v16, 4  ;;  %10798 = vmatpush3.xpose.msk.msra.mxu0 %vm185_vm0, %v8119_v59  ;;  %10799 = vmatprep.mubr.msk.f32.mxu0 %vm11282_vm1, %v11281_v20  ;;  %v8771_v13 = vpop.permute.xlu1 %8770 }
0x1af7   :  { %10807 = vmatprep.subr.mxu0 %v11281_v20 }
0x1af8   :  { %v8088_v58 = vrot.slane %v8087_v3, 2  ;;  %v8080_v6 = vadd.f32 %v8079_v60, %v8078_v16 }
0x1afa   :  { %v8089_v63 = vadd.f32 %v8088_v58, %v8087_v3  ;;  %v8081_v5 = vrot.slane %v8080_v6, 2  ;;  %v8778_v40 = vpop.permute.xlu1 %8777  ;;  %v8775_v3 = vrot.slane %v8771_v13, %v11494_v36 }
0x1afb   :  { %v8782_v16 = vrot.slane %v8778_v40, %v11494_v36 }
0x1afc   :  { %v8090_v55 = vrot.slane %v8089_v63, 1  ;;  %v8082_v30 = vadd.f32 %v8081_v5, %v8080_v6  ;;  %vm8801_vm8 = vcmp.lt.s32.totalorder %v8732_v22, %v8775_v3 }
0x1afd   :  { %vm8802_vm7 = vcmp.lt.s32.totalorder %v8732_v22, %v8782_v16 }
0x1afe   :  { %v8091_v31 = vadd.f32 %v8090_v55, %v8089_v63  ;;  %v8083_v32 = vrot.slane %v8082_v30, 1  ;;  %v8785_v55 = vpop.permute.xlu1 %8784 }
0x1b00   :  { %v8112_v12 = vmul.f32 0.125, %v8091_v31  ;;  %v8084_v1 = vadd.f32 %v8083_v32, %v8082_v30  ;;  %v10776_v53 = vpop.f32.mrf.mxu1 }
0x1b01   :  { %v8047_v2 = vadd.f32 %v10776_v53, %v13350_v35  ;;  %v8789_v53 = vrot.slane %v8785_v55, %v11494_v36 }
0x1b02   :  { %v8111_v43 = vmul.f32 0.125, %v8084_v1  ;;  %v8041_v17 = vpop.f32.mrf.mxu1  ;;  %10805 = vmatmul.mubr.msk.f32.vlgmr.msra.gmra.mxu1 %vm185_vm0, %v8112_v12  ;;  %v8792_v12 = vpop.permute.xlu1 %8791 }
0x1b03   :  { %v8099_v48 = vsel %vm185_vm0, %v8047_v2, 0.0  ;;  %v8042_v50 = vadd.f32 %v13350_v35, %v8041_v17  ;;  %10813 = vmatpush3.xpose.msk.msra.mxu1 %vm185_vm0, %v8122_v46  ;;  %10814 = vmatprep.mubr.msk.f32.mxu1 %vm11282_vm1, %v11281_v20  ;;  %v8796_v1 = vrot.slane %v8792_v12, %v11494_v36  ;;  %vm8803_vm10 = vcmp.lt.s32.totalorder %v8732_v22, %v8789_v53 }
0x1b04   :  { %v8100_v39 = vrot.slane %v8099_v48, 4  ;;  %10800 = vmatmul.mubr.msk.f32.vlgmr.msra.gmra.mxu0 %vm185_vm0, %v8111_v43 }
0x1b05   :  { %v8092_v4 = vsel %vm185_vm0, %v8042_v50, 0.0  ;;  %10808 = vmatpush3.xpose.msk.msra.mxu0 %vm185_vm0, %v8121_v49  ;;  %10809 = vmatprep.mubr.msk.f32.mxu0 %vm11282_vm1, %v11281_v20  ;;  %v8754_v20 = vrot.slane %v8750_v51, %v11494_v36  ;;  %vm8804_vm9 = vcmp.lt.s32.totalorder %v8732_v22, %v8796_v1 }
0x1b06   :  { %v8101_v26 = vadd.f32 %v8100_v39, %v8099_v48  ;;  %v8093_v57 = vrot.slane %v8092_v4, 4 }
0x1b07   :  { %vm8798_vm2 = vcmp.lt.s32.totalorder %v8732_v22, %v8754_v20 }
0x1b08   :  { %v8102_v8 = vrot.slane %v8101_v26, 2  ;;  %v8094_v33 = vadd.f32 %v8093_v57, %v8092_v4 }
0x1b0a   :  { %v8103_v35 = vadd.f32 %v8102_v8, %v8101_v26  ;;  %v8095_v44 = vrot.slane %v8094_v33, 2 }
0x1b0c   :  { %v8104_v54 = vrot.slane %v8103_v35, 1  ;;  %v8096_v15 = vadd.f32 %v8095_v44, %v8094_v33 }
0x1b0e   :  { %v8105_v45 = vadd.f32 %v8104_v54, %v8103_v35  ;;  %v8097_v56 = vrot.slane %v8096_v15, 1 }
0x1b10   :  { %v8114_v23 = vmul.f32 0.125, %v8105_v45  ;;  %v8098_v61 = vadd.f32 %v8097_v56, %v8096_v15 }
0x1b12   :  { %v8113_v14 = vmul.f32 0.125, %v8098_v61  ;;  %10815 = vmatmul.mubr.msk.f32.vlgmr.msra.gmra.mxu1 %vm185_vm0, %v8114_v23 }
0x1b14   :  { %10810 = vmatmul.mubr.msk.f32.vlgmr.msra.gmra.mxu0 %vm185_vm0, %v8113_v14 }
0x1ba9   :  { %v8271_v27 = vpop.f32.mrf.mxu1 }
0x1baa   :  { %v8806_v34 = vsel %vm8798_vm2, %v8271_v27, -inf }
0x1bab   :  { %v8817_v0 = vsel %vm8813_vm3, %v8806_v34, -inf  ;;  %v8195_v52 = vpop.f32.mrf.mxu0  ;;  %v10786_v38 = vpop.f32.mrf.mxu1 }
0x1bac   :  { %v8805_v11 = vsel %vm8797_vm4, %v8195_v52, -inf  ;;  %8818 = vmax.xlane.f32.xlu0 %v8817_v0 }
0x1bad   :  { %v8814_v25 = vsel %vm8813_vm3, %v8805_v11, -inf  ;;  %v10781_v21 = vpop.f32.mrf.mxu0 }
0x1bae   :  { %8815 = vmax.xlane.f32.xlu1 %v8814_v25 }
0x1bb3   :  { %v8423_v29 = vpop.f32.mrf.mxu1 }
0x1bb4   :  { %v8808_v47 = vsel %vm8800_vm5, %v8423_v29, -inf }
0x1bb5   :  { %v8823_v28 = vsel %vm8813_vm3, %v8808_v47, -inf  ;;  %v8347_v42 = vpop.f32.mrf.mxu0  ;;  %v10796_v37 = vpop.f32.mrf.mxu1 }
0x1bb6   :  { %v8807_v62 = vsel %vm8799_vm6, %v8347_v42, -inf  ;;  %8824 = vmax.xlane.f32.xlu1 %v8823_v28 }
0x1bb7   :  { %v8820_v9 = vsel %vm8813_vm3, %v8807_v62, -inf  ;;  %v10791_v59 = vpop.f32.mrf.mxu0 }
0x1bb8   :  { %8821 = vmax.xlane.f32.xlu0 %v8820_v9 }
0x1bc2   :  { %v8575_v60 = vpop.f32.mrf.mxu1 }
0x1bc3   :  { %v8810_v58 = vsel %vm8802_vm7, %v8575_v60, -inf }
0x1bc4   :  { %v8829_v6 = vsel %vm8813_vm3, %v8810_v58, -inf  ;;  %v8499_v63 = vpop.f32.mrf.mxu0  ;;  %v10806_v5 = vpop.f32.mrf.mxu1 }
0x1bc5   :  { %v8809_v30 = vsel %vm8801_vm8, %v8499_v63, -inf  ;;  %8830 = vmax.xlane.f32.xlu1 %v8829_v6 }
0x1bc6   :  { %v8826_v31 = vsel %vm8813_vm3, %v8809_v30, -inf  ;;  %v10801_v32 = vpop.f32.mrf.mxu0 }
0x1bc7   :  { %8827 = vmax.xlane.f32.xlu0 %v8826_v31 }
0x1bd2   :  { %v8727_v46 = vpop.f32.mrf.mxu1 }
0x1bd3   :  { %v8812_v2 = vsel %vm8804_vm9, %v8727_v46, -inf }
0x1bd4   :  { %v8835_v43 = vsel %vm8813_vm3, %v8812_v2, -inf  ;;  %v8651_v17 = vpop.f32.mrf.mxu0  ;;  %v10816_v49 = vpop.f32.mrf.mxu1 }
0x1bd5   :  { %v8811_v48 = vsel %vm8803_vm10, %v8651_v17, -inf  ;;  %8836 = vmax.xlane.f32.xlu1 %v8835_v43 }
0x1bd6   :  { %v8832_v50 = vsel %vm8813_vm3, %v8811_v48, -inf  ;;  %v10811_v39 = vpop.f32.mrf.mxu0 }
0x1bd7   :  { %8833 = vmax.xlane.f32.xlu0 %v8832_v50 }
0x1c35   :  { %v8819_v4 = vpop.xlane.xlu0 %8818 }
0x1c36   :  { %v8839_v26 = vsub.f32 %v8806_v34, %v8819_v4 }
0x1c37   :  { %v8816_v57 = vpop.xlane.xlu1 %8815 }
0x1c38   :  { %v8848_v8 = vmul.f32 1.442695, %v8839_v26  ;;  %v8838_v33 = vsub.f32 %v8805_v11, %v8816_v57 }
0x1c3a   :  { %11027 = vpow2.f32 %v8848_v8  ;;  %v8846_v36 = vmul.f32 1.442695, %v8838_v33 }
0x1c3c   :  { %11029 = vpow2.f32 %v8846_v36 }
0x1c3f   :  { %v8825_v35 = vpop.xlane.xlu1 %8824 }
0x1c40   :  { %v8841_v44 = vsub.f32 %v8808_v47, %v8825_v35 }
0x1c41   :  { %v8822_v54 = vpop.xlane.xlu0 %8821 }
0x1c42   :  { %v8852_v15 = vmul.f32 1.442695, %v8841_v44  ;;  %v8840_v45 = vsub.f32 %v8807_v62, %v8822_v54 }
0x1c44   :  { %11031 = vpow2.f32 %v8852_v15  ;;  %v8850_v56 = vmul.f32 1.442695, %v8840_v45 }
0x1c46   :  { %11033 = vpow2.f32 %v8850_v56 }
0x1c47   :  { %v11028_v23 = vpop.eup %11027 }
0x1c48   :  { %v8865_v61 = vsel %vm8813_vm3, %v11028_v23, 0.0 }
0x1c49   :  { %v11030_v14 = vpop.eup %11029  ;;  %8866 = vadd.xlane.f32.xlu1 %v8865_v61 }
0x1c4a   :  { %v8862_v51 = vsel %vm8813_vm3, %v11030_v14, 0.0 }
0x1c4b   :  { %8863 = vadd.xlane.f32.xlu0 %v8862_v51 }
0x1c4e   :  { %v8831_v41 = vpop.xlane.xlu1 %8830 }
0x1c4f   :  { %v8843_v20 = vsub.f32 %v8810_v58, %v8831_v41 }
0x1c50   :  { %v8828_v22 = vpop.xlane.xlu0 %8827 }
0x1c51   :  { %v11032_v19 = vpop.eup %11031  ;;  %v8856_v7 = vmul.f32 1.442695, %v8843_v20  ;;  %v8842_v27 = vsub.f32 %v8809_v30, %v8828_v22 }
0x1c52   :  { %v8871_v34 = vsel %vm8813_vm3, %v11032_v19, 0.0 }
0x1c53   :  { %v11034_v0 = vpop.eup %11033  ;;  %11035 = vpow2.f32 %v8856_v7  ;;  %v8854_v52 = vmul.f32 1.442695, %v8842_v27  ;;  %8872 = vadd.xlane.f32.xlu1 %v8871_v34 }
0x1c54   :  { %v8868_v38 = vsel %vm8813_vm3, %v11034_v0, 0.0 }
0x1c55   :  { %11037 = vpow2.f32 %v8854_v52  ;;  %8869 = vadd.xlane.f32.xlu0 %v8868_v38 }
0x1c5e   :  { %v8837_v24 = vpop.xlane.xlu1 %8836 }
0x1c5f   :  { %v8845_v11 = vsub.f32 %v8812_v2, %v8837_v24 }
0x1c60   :  { %v11036_v10 = vpop.eup %11035  ;;  %v8834_v25 = vpop.xlane.xlu0 %8833 }
0x1c61   :  { %v8860_v21 = vmul.f32 1.442695, %v8845_v11  ;;  %v8844_v18 = vsub.f32 %v8811_v48, %v8834_v25  ;;  %v8877_v29 = vsel %vm8813_vm3, %v11036_v10, 0.0 }
0x1c62   :  { %v11038_v47 = vpop.eup %11037  ;;  %8878 = vadd.xlane.f32.xlu1 %v8877_v29 }
0x1c63   :  { %11039 = vpow2.f32 %v8860_v21  ;;  %v8858_v28 = vmul.f32 1.442695, %v8844_v18  ;;  %v8874_v42 = vsel %vm8813_vm3, %v11038_v47, 0.0 }
0x1c64   :  { %8875 = vadd.xlane.f32.xlu0 %v8874_v42 }
0x1c65   :  { %11041 = vpow2.f32 %v8858_v28 }
0x1c70   :  { %v11040_v37 = vpop.eup %11039 }
0x1c71   :  { %v8883_v62 = vsel %vm8813_vm3, %v11040_v37, 0.0 }
0x1c72   :  { %v11042_v13 = vpop.eup %11041  ;;  %8884 = vadd.xlane.f32.xlu1 %v8883_v62 }
0x1c73   :  { %v8880_v9 = vsel %vm8813_vm3, %v11042_v13, 0.0 }
0x1c74   :  { %8881 = vadd.xlane.f32.xlu0 %v8880_v9 }
0x1cd2   :  { %v8867_v59 = vpop.xlane.xlu1 %8866 }
0x1cd3   :  { %11043 = vrcp.f32 %v8867_v59 }
0x1cd4   :  { %v8864_v40 = vpop.xlane.xlu0 %8863 }
0x1cd5   :  { %11045 = vrcp.f32 %v8864_v40 }
0x1cdc   :  { %v8873_v16 = vpop.xlane.xlu1 %8872 }
0x1cdd   :  { %11047 = vrcp.f32 %v8873_v16 }
0x1cde   :  { %v8870_v3 = vpop.xlane.xlu0 %8869 }
0x1cdf   :  { %11049 = vrcp.f32 %v8870_v3 }
0x1ce0   :  { %v11044_v60 = vpop.eup %11043 }
0x1ce1   :  { %v8895_v58 = vmul.f32 %v11044_v60, %v11028_v23 }
0x1ce2   :  { %v11046_v6 = vpop.eup %11045 }
0x1ce3   :  { %v8904_v63 = vsel %vm8902_vm11, %v8895_v58, 0.0  ;;  %v8894_v5 = vmul.f32 %v11046_v6, %v11030_v14 }
0x1ce4   :  { %8912 = vst [vmem:[#allocation16 + $0x1] sm:$0x1] %v8904_v63 }
0x1ce5   :  { %v8903_v55 = vsel %vm8902_vm11, %v8894_v5, 0.0 }
0x1ce6   :  { %8911 = vst [vmem:[#allocation16] sm:$0x1] %v8903_v55 }
0x1cea   :  { %v11048_v30 = vpop.eup %11047 }
0x1ceb   :  { %v8897_v31 = vmul.f32 %v11048_v30, %v11032_v19  ;;  %v8879_v32 = vpop.xlane.xlu1 %8878 }
0x1cec   :  { %v11050_v12 = vpop.eup %11049  ;;  %11051 = vrcp.f32 %v8879_v32 }
0x1ced   :  { %v8906_v1 = vsel %vm8902_vm11, %v8897_v31, 0.0  ;;  %v8896_v53 = vmul.f32 %v11050_v12, %v11034_v0  ;;  %v8876_v46 = vpop.xlane.xlu0 %8875 }
0x1cee   :  { %8914 = vst [vmem:[#allocation16 + $0x3] sm:$0x1] %v8906_v1  ;;  %11053 = vrcp.f32 %v8876_v46 }
0x1cef   :  { %v8905_v2 = vsel %vm8902_vm11, %v8896_v53, 0.0 }
0x1cf0   :  { %8913 = vst [vmem:[#allocation16 + $0x2] sm:$0x1] %v8905_v2 }
0x1cf9   :  { %v11052_v43 = vpop.eup %11051 }
0x1cfa   :  { %v8899_v17 = vmul.f32 %v11052_v43, %v11036_v10 }
0x1cfb   :  { %v11054_v49 = vpop.eup %11053  ;;  %v8885_v48 = vpop.xlane.xlu1 %8884 }
0x1cfc   :  { %v8908_v50 = vsel %vm8902_vm11, %v8899_v17, 0.0  ;;  %v8898_v39 = vmul.f32 %v11054_v49, %v11038_v47  ;;  %11055 = vrcp.f32 %v8885_v48 }
0x1cfd   :  { %8916 = vst [vmem:[#allocation16 + $0x5] sm:$0x1] %v8908_v50  ;;  %v8882_v4 = vpop.xlane.xlu0 %8881 }
0x1cfe   :  { %v8907_v26 = vsel %vm8902_vm11, %v8898_v39, 0.0  ;;  %11057 = vrcp.f32 %v8882_v4 }
0x1cff   :  { %8915 = vst [vmem:[#allocation16 + $0x4] sm:$0x1] %v8907_v26 }
0x1d09   :  { %v11056_v57 = vpop.eup %11055 }
0x1d0a   :  { %v8901_v8 = vmul.f32 %v11056_v57, %v11040_v37 }
0x1d0b   :  { %v11058_v33 = vpop.eup %11057 }
0x1d0c   :  { %v8910_v36 = vsel %vm8902_vm11, %v8901_v8, 0.0  ;;  %v8900_v35 = vmul.f32 %v11058_v33, %v11042_v13 }
0x1d0d   :  { %8918 = vst [vmem:[#allocation16 + $0x7] sm:$0x1] %v8910_v36 }
0x1d0e   :  { %v8909_v44 = vsel %vm8902_vm11, %v8900_v35, 0.0 }
0x1d0f   :  { %8917 = vst [vmem:[#allocation16 + $0x6] sm:$0x1] %v8909_v44 }
0x1d10   :  { %11250 = shalt.err (!%p11247_p2)
}
0x1d11   :  { %s11285_s24 = smov 16   ;;  %s11286_s25 = smov 1  }
0x1d12   :  { %8930 = dma.vmem_to_hbm [thread:$0]  %s8925_s9, 128, %s13446_s12, [#allocation4], %s11285_s24, %s11285_s24, %s11286_s25  }
0x1d13   :  { %11269 = dma.done.wait [#allocation4], 128  }
0x1d14   :  { %11270 = vsyncadd [#allocation4], 4294967168 }
0x1d15   :  { %8934 = vsyncpa [#allocation3], 1 }
0x1d16   :  { %8935 = vsyncpa [#allocation6], 1 }
0x1d17   :  { %8936 = vsyncpa [#allocation9], 1 }
0x1d18   :  { %8937 = vsyncpa [#allocation12], 1 }
0x1d19   :  { %8938 = vsyncpa [#allocation15], 1 }
0x1d1a   :  { %8939 = vsyncpa [#allocation4], 1 }

</bundles_post_ra>
